<compile_context>
chip_gen: v5e
topology: v5e:2x2
jax: 0.10.0
libtpu: 0.0.40
codegen_flags: <defaults>
</compile_context>

<pallas_src>
import numpy as np
import jax
import jax.numpy as jnp
from jax.experimental import pallas as pl
from jax.experimental.pallas import tpu as pltpu

NEG_SLOPE = 0.01            # F.leaky_relu default negative slope
KSIZE, STRIDE, PAD = 5, 2, 2
N_TAPS = KSIZE * KSIZE
K1_PAD = 32                 # conv1 GEMM K padded 25 -> 32


def _leaky(v):
    return jnp.where(v >= 0, v, NEG_SLOPE * v)


# ----------------------------- static layout --------------------------------
def make_layout(batch, input_dims, conv_channels, hidden_size, n_act_flat):
    c1, c2, c3 = conv_channels
    H, W = input_dims
    sh1, sw1 = H // 2, W // 2
    sh2, sw2 = sh1 // 2, sw1 // 2
    sh3, sw3 = sh2 // 2, sw2 // 2
    n_pos = sh3 * sw3

    def pad16(n):               # keep weight-slab segments 16-row aligned (bf16)
        return -(-n // 16) * 16

    seg, off = {}, 0
    for name, rows in (("w1", K1_PAD), ("w2", N_TAPS * c1),
                       ("w3", N_TAPS * c2), ("f1", n_pos * c3)):
        seg[name] = off
        off += pad16(rows)

    return dict(sh1=sh1, sw1=sw1, sh2=sh2, sw2=sw2, sh3=sh3, sw3=sw3,
                n_pos=n_pos,
                r1=batch * sh1 * sw1,            # conv1 out rows (b-major)
                r2=batch * sh2 * sw2,            # conv2 out rows (b-major)
                r3=batch * n_pos,                # conv3 out rows (pos-major)
                lane_w=max(c1, c2, c3, hidden_size),
                bias_lanes=max(128, c1, c2, c3, hidden_size, n_act_flat),
                seg=seg, w_rows=off)


def _selection_mats(batch, in_h, in_w, out_h, out_w, out_batch_major):
    """0/1 matrices S[t]: (S[t] @ Y)[r_out, :] = Y[r_in(t, r_out), :] (0 if padded)."""
    s = np.zeros((N_TAPS, batch * out_h * out_w, batch * in_h * in_w), np.float32)
    for kh in range(KSIZE):
        for kw in range(KSIZE):
            t = kh * KSIZE + kw
            for b in range(batch):
                for oh in range(out_h):
                    for ow in range(out_w):
                        ih = oh * STRIDE + kh - PAD
                        iw = ow * STRIDE + kw - PAD
                        if 0 <= ih < in_h and 0 <= iw < in_w:
                            if out_batch_major:
                                r_out = (b * out_h + oh) * out_w + ow
                            else:                      # position-major (for fc1)
                                r_out = (oh * out_w + ow) * batch + b
                            r_in = (b * in_h + ih) * in_w + iw
                            s[t, r_out, r_in] = 1.0
    return s


def _conv1_patches(state):
    """state (B,1,H,W) -> (B*OH*OW, 32) bf16 im2col (taps on lanes, K padded)."""
    B, _, H, W = state.shape
    OH, OW = H // 2, W // 2
    xp = jnp.pad(state[:, 0].astype(jnp.float32),
                 ((0, 0), (PAD, PAD), (PAD, PAD)))
    cols = [xp[:, kh:kh + STRIDE * OH:STRIDE, kw:kw + STRIDE * OW:STRIDE]
            for kh in range(KSIZE) for kw in range(KSIZE)]      # each (B,OH,OW)
    p = jnp.stack(cols, axis=-1).reshape(B * OH * OW, N_TAPS)
    p = jnp.pad(p, ((0, 0), (0, K1_PAD - N_TAPS)))
    return p.astype(jnp.bfloat16)


# --------------------------- parameter creation ------------------------------
def init_params(key, input_dims, n_actions, conv_channels, hidden_size,
                n_choices_per_finger):
    """PyTorch-equivalent layouts (conv OIHW, linear stored as weight.T)."""
    def uniform(k, shape, fan_in):
        bound = 1.0 / np.sqrt(fan_in)
        return jax.random.uniform(k, shape, jnp.float32, -bound, bound)

    ks = jax.random.split(key, 12)
    c1, c2, c3 = conv_channels
    flat = c3 * (input_dims[0] // 8) * (input_dims[1] // 8)
    in3 = 1 + n_actions * n_choices_per_finger
    return {
        "conv1_w": uniform(ks[0], (c1, 1, KSIZE, KSIZE), 1 * N_TAPS),
        "conv1_b": uniform(ks[1], (c1,), 1 * N_TAPS),
        "conv2_w": uniform(ks[2], (c2, c1, KSIZE, KSIZE), c1 * N_TAPS),
        "conv2_b": uniform(ks[3], (c2,), c1 * N_TAPS),
        "conv3_w": uniform(ks[4], (c3, c2, KSIZE, KSIZE), c2 * N_TAPS),
        "conv3_b": uniform(ks[5], (c3,), c2 * N_TAPS),
        "fc1_w": uniform(ks[6], (flat, hidden_size), flat),
        "fc1_b": uniform(ks[7], (hidden_size,), flat),
        "fc2_w": uniform(ks[8], (hidden_size, 1), hidden_size),
        "fc2_b": uniform(ks[9], (1,), hidden_size),
        "fc3_w": uniform(ks[10], (in3, 1), in3),
        "fc3_b": uniform(ks[11], (1,), in3),
    }


def prepare_params(params, batch, input_dims, conv_channels, hidden_size,
                   n_actions, n_choices_per_finger):
    """One-time re-layout into 4 kernel-ready slabs (bf16 weights/selections)."""
    c1, c2, c3 = conv_channels
    n_act_flat = n_actions * n_choices_per_finger
    lay = make_layout(batch, input_dims, conv_channels, hidden_size, n_act_flat)
    n_pos = lay["n_pos"]

    # conv weights -> GEMM layouts: taps ordered (kh, kw), input-channel minor.
    w1m = np.zeros((K1_PAD, c1), np.float32)
    w1m[:N_TAPS] = np.transpose(np.asarray(params["conv1_w"]),
                                (2, 3, 1, 0)).reshape(N_TAPS, c1)
    w2b = np.transpose(np.asarray(params["conv2_w"]),
                       (2, 3, 1, 0)).reshape(N_TAPS * c1, c2)
    w3b = np.transpose(np.asarray(params["conv3_w"]),
                       (2, 3, 1, 0)).reshape(N_TAPS * c2, c3)
    # fc1 rows reordered from torch's (channel, pos) flatten to (pos, channel).
    wf1 = np.asarray(params["fc1_w"]).reshape(c3, n_pos, hidden_size)
    wf1 = np.transpose(wf1, (1, 0, 2)).reshape(n_pos * c3, hidden_size)

    wslab = np.zeros((lay["w_rows"], lay["lane_w"]), np.float32)
    for name, arr in (("w1", w1m), ("w2", w2b), ("w3", w3b), ("f1", wf1)):
        off = lay["seg"][name]
        wslab[off:off + arr.shape[0], :arr.shape[1]] = arr

    s2 = _selection_mats(batch, lay["sh1"], lay["sw1"], lay["sh2"], lay["sw2"],
                         out_batch_major=True)
    s3 = _selection_mats(batch, lay["sh2"], lay["sw2"], lay["sh3"], lay["sw3"],
                         out_batch_major=False)

    bslab = np.zeros((8, lay["bias_lanes"]), np.float32)
    bslab[0, :c1] = np.asarray(params["conv1_b"])
    bslab[1, :c2] = np.asarray(params["conv2_b"])
    bslab[2, :c3] = np.asarray(params["conv3_b"])
    bslab[3, :hidden_size] = np.asarray(params["fc1_b"])
    bslab[4, :hidden_size] = np.asarray(params["fc2_w"])[:, 0]   # fc2 weight row
    bslab[5, 0] = float(np.asarray(params["fc2_b"])[0])
    bslab[5, 1] = float(np.asarray(params["fc3_w"])[0, 0])       # fc3 weight on h
    bslab[5, 2] = float(np.asarray(params["fc3_b"])[0])
    bslab[6, :n_act_flat] = np.asarray(params["fc3_w"])[1:, 0]   # fc3 weight on ap

    return {"wslab": jnp.asarray(wslab, jnp.bfloat16),
            "s2": jnp.asarray(s2, jnp.bfloat16),
            "s3": jnp.asarray(s3, jnp.bfloat16),
            "bslab": jnp.asarray(bslab, jnp.float32)}


# ------------------------------ fused kernel ---------------------------------
def make_critic_forward(batch, input_dims, conv_channels, hidden_size,
                        n_actions, n_choices_per_finger):
    c1, c2, c3 = conv_channels
    n_act_flat = n_actions * n_choices_per_finger
    lay = make_layout(batch, input_dims, conv_channels, hidden_size, n_act_flat)
    n_pos = lay["n_pos"]
    r1, r2, r3 = lay["r1"], lay["r2"], lay["r3"]
    o_w1 = lay["seg"]["w1"]
    o_w2 = lay["seg"]["w2"]
    o_w3 = lay["seg"]["w3"]
    o_f1 = lay["seg"]["f1"]
    hidden = hidden_size
    f32, bf16 = jnp.float32, jnp.bfloat16

    def kernel(p1_ref, ap_ref, w_ref, s2_ref, s3_ref, b_ref, q_ref):
        bias = b_ref[...]                                        # (8, >=128) f32

        # conv1: one GEMM on pre-extracted, K-padded patches.
        y = jnp.dot(p1_ref[...], w_ref[o_w1:o_w1 + K1_PAD, :c1],
                    preferred_element_type=f32)
        y = _leaky(y + bias[0:1, :c1])                           # (r1, c1) f32

        def conv_block(y_bf16, s_ref, w_off, cin, cout, bias_row):
            # 25 independent 0/1 row selections (MXU-pipelinable) ...
            taps = [jnp.dot(s_ref[t], y_bf16, preferred_element_type=f32)
                    for t in range(N_TAPS)]
            # ... concatenated along lanes into the im2col patch matrix,
            # then ONE wide-K GEMM against the block conv weight.
            patches = jnp.concatenate(taps, axis=1).astype(bf16)
            z = jnp.dot(patches, w_ref[w_off:w_off + N_TAPS * cin, :cout],
                        preferred_element_type=f32)
            return _leaky(z + bias[bias_row:bias_row + 1, :cout])

        y = conv_block(y.astype(bf16), s2_ref, o_w2, c1, c2, 1)  # (r2, c2) f32
        y = conv_block(y.astype(bf16), s3_ref, o_w3, c2, c3, 2)  # (r3, c3) f32
        # conv3 output rows are position-major: (pos, b).

        # fc1: channels-last flatten = concat of per-position row blocks,
        # then a single (B, n_pos*c3) @ (n_pos*c3, hidden) GEMM.
        xf = jnp.concatenate(
            [y[p * batch:(p + 1) * batch, :] for p in range(n_pos)],
            axis=1).astype(bf16)                                 # (B, n_pos*c3)
        h = jnp.dot(xf, w_ref[o_f1:o_f1 + n_pos * c3, :hidden],
                    preferred_element_type=f32)
        h = _leaky(h + bias[3:4, :hidden])                       # (B, hidden) f32

        # fc2 (hidden -> 1): VPU multiply + lane reduce (avoid an N=1 matmul).
        h2 = jnp.sum(h * bias[4:5, :hidden], axis=1, keepdims=True) \
            + bias[5:6, 0:1]
        h2 = _leaky(h2)                                          # (B, 1)

        # fc3 on cat([h2, action_probs]) -> scale + reduce; clamp(max=5).
        q = (h2 * bias[5:6, 1:2]
             + jnp.sum(ap_ref[...] * bias[6:7, :n_act_flat], axis=1,
                       keepdims=True)
             + bias[5:6, 2:3])
        q_ref[...] = jnp.minimum(q, 5.0)

    def forward(kparams, state, action_probs):
        p1 = _conv1_patches(state)
        ap = action_probs.reshape(action_probs.shape[0], -1).astype(jnp.float32)
        args = (p1, ap, kparams["wslab"], kparams["s2"], kparams["s3"],
                kparams["bslab"])

        flops = 2 * (r1 * K1_PAD * c1
                     + N_TAPS * r2 * r1 * c1 + r2 * N_TAPS * c1 * c2
                     + N_TAPS * r3 * r2 * c2 + r3 * N_TAPS * c2 * c3
                     + batch * n_pos * c3 * hidden
                     + batch * hidden + batch * n_act_flat)
        bytes_accessed = (sum(int(a.size) * a.dtype.itemsize for a in args)
                          + batch * 4)

        return pl.pallas_call(
            kernel,
            out_shape=jax.ShapeDtypeStruct((batch, 1), jnp.float32),
            in_specs=[pl.BlockSpec(memory_space=pltpu.MemorySpace.VMEM)]
            * len(args),
            out_specs=pl.BlockSpec(memory_space=pltpu.MemorySpace.VMEM),
            cost_estimate=pl.CostEstimate(flops=int(flops), transcendentals=0,
                                          bytes_accessed=int(bytes_accessed)),
        )(*args)

    return forward


# --------------------- pure-JAX reference (validation) -----------------------
def critic_forward_ref(params, state, action_probs):
    B = state.shape[0]
    ap = action_probs.reshape(B, -1).astype(jnp.float32)
    x = state.astype(jnp.float32)
    for i in (1, 2, 3):
        x = jax.lax.conv_general_dilated(
            x, params[f"conv{i}_w"], window_strides=(STRIDE, STRIDE),
            padding=((PAD, PAD), (PAD, PAD)),
            dimension_numbers=("NCHW", "OIHW", "NCHW"))
        x = _leaky(x + params[f"conv{i}_b"].reshape(1, -1, 1, 1))
    x = x.reshape(B, -1)
    x = _leaky(x @ params["fc1_w"] + params["fc1_b"])
    x = _leaky(x @ params["fc2_w"] + params["fc2_b"])
    x = jnp.concatenate([x, ap], axis=1)
    return jnp.minimum(x @ params["fc3_w"] + params["fc3_b"], 5.0)


if __name__ == "__main__":
    input_dims = (16, 16)
    n_actions = 2
    n_choices_per_finger = 3
    conv_channels = [16, 32, 64]
    hidden_size = 32
    batch = 2

    key = jax.random.PRNGKey(0)
    k_params, k_state, k_act = jax.random.split(key, 3)

    params = init_params(k_params, input_dims, n_actions, conv_channels,
                         hidden_size, n_choices_per_finger)
    kparams = prepare_params(params, batch, input_dims, conv_channels,
                             hidden_size, n_actions, n_choices_per_finger)

    state = jax.random.normal(k_state, (batch, 1, *input_dims), jnp.float32)
    action_probs = jax.random.uniform(
        k_act, (batch, n_actions, n_choices_per_finger), jnp.float32)

    forward = make_critic_forward(batch, input_dims, conv_channels, hidden_size,
                                  n_actions, n_choices_per_finger)
    fwd = jax.jit(forward)
    q = jax.block_until_ready(fwd(kparams, state, action_probs))
    q_ref = jax.block_until_ready(critic_forward_ref(params, state, action_probs))

    assert q.shape == (batch, 1)
    assert bool(jnp.all(q <= 5.0))
    # bf16 matmul operands (f32 accumulate) -> widened tolerance vs f32 reference.
    np.testing.assert_allclose(np.asarray(q), np.asarray(q_ref),
                               rtol=5e-2, atol=5e-2)
    print("KERNEL_OK")
</pallas_src>

<mosaic_0001>
module attributes {stable_mosaic.version = 11 : i64} {
  func.func @kernel(%arg0: memref<128x32xbf16, #tpu.memory_space<vmem>>, %arg1: memref<2x6xf32, #tpu.memory_space<vmem>>, %arg2: memref<1488x64xbf16, #tpu.memory_space<vmem>>, %arg3: memref<25x32x128xbf16, #tpu.memory_space<vmem>>, %arg4: memref<25x8x32xbf16, #tpu.memory_space<vmem>>, %arg5: memref<8x128xf32, #tpu.memory_space<vmem>>, %arg6: memref<2x1xf32, #tpu.memory_space<vmem>>) attributes {dimension_semantics = [], scalar_prefetch = 0 : i64, scratch_operands = 0 : i64, tpu.core_type = #tpu.core_type<tc>} {
    %c0 = arith.constant 0 : index
    %c0_0 = arith.constant 0 : index
    %0 = vector.load %arg5[%c0, %c0_0] : memref<8x128xf32, #tpu.memory_space<vmem>>, vector<8x128xf32>
    %c0_1 = arith.constant 0 : index
    %c0_2 = arith.constant 0 : index
    %1 = vector.load %arg0[%c0_1, %c0_2] : memref<128x32xbf16, #tpu.memory_space<vmem>>, vector<128x32xbf16>
    %c0_3 = arith.constant 0 : index
    %c0_4 = arith.constant 0 : index
    %2 = vector.load %arg2[%c0_3, %c0_4] : memref<1488x64xbf16, #tpu.memory_space<vmem>>, vector<32x16xbf16>
    %cst = arith.constant dense<0.000000e+00> : vector<128x16xf32>
    %3 = tpu.matmul %1, %2, %cst {dimension_numbers = #tpu.dot_dimension_numbers<[1], [0], [0], [1], [0, 0, 1, 1], [], []>} : vector<128x32xbf16>, vector<32x16xbf16>, vector<128x16xf32> -> vector<128x16xf32>
    %4 = vector.extract_strided_slice %0 {offsets = [0, 0], sizes = [1, 16], strides = [1, 1]} : vector<8x128xf32> to vector<1x16xf32>
    %5 = vector.broadcast %4 : vector<1x16xf32> to vector<128x16xf32>
    %6 = arith.addf %3, %5 : vector<128x16xf32>
    %cst_5 = arith.constant 0.000000e+00 : f32
    %7 = vector.broadcast %cst_5 : f32 to vector<128x16xf32>
    %8 = arith.cmpf oge, %6, %7 : vector<128x16xf32>
    %cst_6 = arith.constant 0.00999999977 : f32
    %9 = vector.broadcast %cst_6 : f32 to vector<128x16xf32>
    %10 = arith.mulf %9, %6 : vector<128x16xf32>
    %11 = arith.select %8, %6, %10 : vector<128x16xi1>, vector<128x16xf32>
    %12 = arith.truncf %11 : vector<128x16xf32> to vector<128x16xbf16>
    %c0_7 = arith.constant 0 : index
    %c0_8 = arith.constant 0 : index
    %c0_9 = arith.constant 0 : index
    %13 = vector.load %arg3[%c0_7, %c0_8, %c0_9] : memref<25x32x128xbf16, #tpu.memory_space<vmem>>, vector<1x32x128xbf16>
    %14 = vector.shape_cast %13 : vector<1x32x128xbf16> to vector<32x128xbf16>
    %cst_10 = arith.constant dense<0.000000e+00> : vector<32x16xf32>
    %15 = tpu.matmul %14, %12, %cst_10 {dimension_numbers = #tpu.dot_dimension_numbers<[1], [0], [0], [1], [0, 0, 1, 1], [], []>} : vector<32x128xbf16>, vector<128x16xbf16>, vector<32x16xf32> -> vector<32x16xf32>
    %c1 = arith.constant 1 : index
    %c0_11 = arith.constant 0 : index
    %c0_12 = arith.constant 0 : index
    %16 = vector.load %arg3[%c1, %c0_11, %c0_12] : memref<25x32x128xbf16, #tpu.memory_space<vmem>>, vector<1x32x128xbf16>
    %17 = vector.shape_cast %16 : vector<1x32x128xbf16> to vector<32x128xbf16>
    %cst_13 = arith.constant dense<0.000000e+00> : vector<32x16xf32>
    %18 = tpu.matmul %17, %12, %cst_13 {dimension_numbers = #tpu.dot_dimension_numbers<[1], [0], [0], [1], [0, 0, 1, 1], [], []>} : vector<32x128xbf16>, vector<128x16xbf16>, vector<32x16xf32> -> vector<32x16xf32>
    %c2 = arith.constant 2 : index
    %c0_14 = arith.constant 0 : index
    %c0_15 = arith.constant 0 : index
    %19 = vector.load %arg3[%c2, %c0_14, %c0_15] : memref<25x32x128xbf16, #tpu.memory_space<vmem>>, vector<1x32x128xbf16>
    %20 = vector.shape_cast %19 : vector<1x32x128xbf16> to vector<32x128xbf16>
    %cst_16 = arith.constant dense<0.000000e+00> : vector<32x16xf32>
    %21 = tpu.matmul %20, %12, %cst_16 {dimension_numbers = #tpu.dot_dimension_numbers<[1], [0], [0], [1], [0, 0, 1, 1], [], []>} : vector<32x128xbf16>, vector<128x16xbf16>, vector<32x16xf32> -> vector<32x16xf32>
    %c3 = arith.constant 3 : index
    %c0_17 = arith.constant 0 : index
    %c0_18 = arith.constant 0 : index
    %22 = vector.load %arg3[%c3, %c0_17, %c0_18] : memref<25x32x128xbf16, #tpu.memory_space<vmem>>, vector<1x32x128xbf16>
    %23 = vector.shape_cast %22 : vector<1x32x128xbf16> to vector<32x128xbf16>
    %cst_19 = arith.constant dense<0.000000e+00> : vector<32x16xf32>
    %24 = tpu.matmul %23, %12, %cst_19 {dimension_numbers = #tpu.dot_dimension_numbers<[1], [0], [0], [1], [0, 0, 1, 1], [], []>} : vector<32x128xbf16>, vector<128x16xbf16>, vector<32x16xf32> -> vector<32x16xf32>
    %c4 = arith.constant 4 : index
    %c0_20 = arith.constant 0 : index
    %c0_21 = arith.constant 0 : index
    %25 = vector.load %arg3[%c4, %c0_20, %c0_21] : memref<25x32x128xbf16, #tpu.memory_space<vmem>>, vector<1x32x128xbf16>
    %26 = vector.shape_cast %25 : vector<1x32x128xbf16> to vector<32x128xbf16>
    %cst_22 = arith.constant dense<0.000000e+00> : vector<32x16xf32>
    %27 = tpu.matmul %26, %12, %cst_22 {dimension_numbers = #tpu.dot_dimension_numbers<[1], [0], [0], [1], [0, 0, 1, 1], [], []>} : vector<32x128xbf16>, vector<128x16xbf16>, vector<32x16xf32> -> vector<32x16xf32>
    %c5 = arith.constant 5 : index
    %c0_23 = arith.constant 0 : index
    %c0_24 = arith.constant 0 : index
    %28 = vector.load %arg3[%c5, %c0_23, %c0_24] : memref<25x32x128xbf16, #tpu.memory_space<vmem>>, vector<1x32x128xbf16>
    %29 = vector.shape_cast %28 : vector<1x32x128xbf16> to vector<32x128xbf16>
    %cst_25 = arith.constant dense<0.000000e+00> : vector<32x16xf32>
    %30 = tpu.matmul %29, %12, %cst_25 {dimension_numbers = #tpu.dot_dimension_numbers<[1], [0], [0], [1], [0, 0, 1, 1], [], []>} : vector<32x128xbf16>, vector<128x16xbf16>, vector<32x16xf32> -> vector<32x16xf32>
    %c6 = arith.constant 6 : index
    %c0_26 = arith.constant 0 : index
    %c0_27 = arith.constant 0 : index
    %31 = vector.load %arg3[%c6, %c0_26, %c0_27] : memref<25x32x128xbf16, #tpu.memory_space<vmem>>, vector<1x32x128xbf16>
    %32 = vector.shape_cast %31 : vector<1x32x128xbf16> to vector<32x128xbf16>
    %cst_28 = arith.constant dense<0.000000e+00> : vector<32x16xf32>
    %33 = tpu.matmul %32, %12, %cst_28 {dimension_numbers = #tpu.dot_dimension_numbers<[1], [0], [0], [1], [0, 0, 1, 1], [], []>} : vector<32x128xbf16>, vector<128x16xbf16>, vector<32x16xf32> -> vector<32x16xf32>
    %c7 = arith.constant 7 : index
    %c0_29 = arith.constant 0 : index
    %c0_30 = arith.constant 0 : index
    %34 = vector.load %arg3[%c7, %c0_29, %c0_30] : memref<25x32x128xbf16, #tpu.memory_space<vmem>>, vector<1x32x128xbf16>
    %35 = vector.shape_cast %34 : vector<1x32x128xbf16> to vector<32x128xbf16>
    %cst_31 = arith.constant dense<0.000000e+00> : vector<32x16xf32>
    %36 = tpu.matmul %35, %12, %cst_31 {dimension_numbers = #tpu.dot_dimension_numbers<[1], [0], [0], [1], [0, 0, 1, 1], [], []>} : vector<32x128xbf16>, vector<128x16xbf16>, vector<32x16xf32> -> vector<32x16xf32>
    %c8 = arith.constant 8 : index
    %c0_32 = arith.constant 0 : index
    %c0_33 = arith.constant 0 : index
    %37 = vector.load %arg3[%c8, %c0_32, %c0_33] : memref<25x32x128xbf16, #tpu.memory_space<vmem>>, vector<1x32x128xbf16>
    %38 = vector.shape_cast %37 : vector<1x32x128xbf16> to vector<32x128xbf16>
    %cst_34 = arith.constant dense<0.000000e+00> : vector<32x16xf32>
    %39 = tpu.matmul %38, %12, %cst_34 {dimension_numbers = #tpu.dot_dimension_numbers<[1], [0], [0], [1], [0, 0, 1, 1], [], []>} : vector<32x128xbf16>, vector<128x16xbf16>, vector<32x16xf32> -> vector<32x16xf32>
    %c9 = arith.constant 9 : index
    %c0_35 = arith.constant 0 : index
    %c0_36 = arith.constant 0 : index
    %40 = vector.load %arg3[%c9, %c0_35, %c0_36] : memref<25x32x128xbf16, #tpu.memory_space<vmem>>, vector<1x32x128xbf16>
    %41 = vector.shape_cast %40 : vector<1x32x128xbf16> to vector<32x128xbf16>
    %cst_37 = arith.constant dense<0.000000e+00> : vector<32x16xf32>
    %42 = tpu.matmul %41, %12, %cst_37 {dimension_numbers = #tpu.dot_dimension_numbers<[1], [0], [0], [1], [0, 0, 1, 1], [], []>} : vector<32x128xbf16>, vector<128x16xbf16>, vector<32x16xf32> -> vector<32x16xf32>
    %c10 = arith.constant 10 : index
    %c0_38 = arith.constant 0 : index
    %c0_39 = arith.constant 0 : index
    %43 = vector.load %arg3[%c10, %c0_38, %c0_39] : memref<25x32x128xbf16, #tpu.memory_space<vmem>>, vector<1x32x128xbf16>
    %44 = vector.shape_cast %43 : vector<1x32x128xbf16> to vector<32x128xbf16>
    %cst_40 = arith.constant dense<0.000000e+00> : vector<32x16xf32>
    %45 = tpu.matmul %44, %12, %cst_40 {dimension_numbers = #tpu.dot_dimension_numbers<[1], [0], [0], [1], [0, 0, 1, 1], [], []>} : vector<32x128xbf16>, vector<128x16xbf16>, vector<32x16xf32> -> vector<32x16xf32>
    %c11 = arith.constant 11 : index
    %c0_41 = arith.constant 0 : index
    %c0_42 = arith.constant 0 : index
    %46 = vector.load %arg3[%c11, %c0_41, %c0_42] : memref<25x32x128xbf16, #tpu.memory_space<vmem>>, vector<1x32x128xbf16>
    %47 = vector.shape_cast %46 : vector<1x32x128xbf16> to vector<32x128xbf16>
    %cst_43 = arith.constant dense<0.000000e+00> : vector<32x16xf32>
    %48 = tpu.matmul %47, %12, %cst_43 {dimension_numbers = #tpu.dot_dimension_numbers<[1], [0], [0], [1], [0, 0, 1, 1], [], []>} : vector<32x128xbf16>, vector<128x16xbf16>, vector<32x16xf32> -> vector<32x16xf32>
    %c12 = arith.constant 12 : index
    %c0_44 = arith.constant 0 : index
    %c0_45 = arith.constant 0 : index
    %49 = vector.load %arg3[%c12, %c0_44, %c0_45] : memref<25x32x128xbf16, #tpu.memory_space<vmem>>, vector<1x32x128xbf16>
    %50 = vector.shape_cast %49 : vector<1x32x128xbf16> to vector<32x128xbf16>
    %cst_46 = arith.constant dense<0.000000e+00> : vector<32x16xf32>
    %51 = tpu.matmul %50, %12, %cst_46 {dimension_numbers = #tpu.dot_dimension_numbers<[1], [0], [0], [1], [0, 0, 1, 1], [], []>} : vector<32x128xbf16>, vector<128x16xbf16>, vector<32x16xf32> -> vector<32x16xf32>
    %c13 = arith.constant 13 : index
    %c0_47 = arith.constant 0 : index
    %c0_48 = arith.constant 0 : index
    %52 = vector.load %arg3[%c13, %c0_47, %c0_48] : memref<25x32x128xbf16, #tpu.memory_space<vmem>>, vector<1x32x128xbf16>
    %53 = vector.shape_cast %52 : vector<1x32x128xbf16> to vector<32x128xbf16>
    %cst_49 = arith.constant dense<0.000000e+00> : vector<32x16xf32>
    %54 = tpu.matmul %53, %12, %cst_49 {dimension_numbers = #tpu.dot_dimension_numbers<[1], [0], [0], [1], [0, 0, 1, 1], [], []>} : vector<32x128xbf16>, vector<128x16xbf16>, vector<32x16xf32> -> vector<32x16xf32>
    %c14 = arith.constant 14 : index
    %c0_50 = arith.constant 0 : index
    %c0_51 = arith.constant 0 : index
    %55 = vector.load %arg3[%c14, %c0_50, %c0_51] : memref<25x32x128xbf16, #tpu.memory_space<vmem>>, vector<1x32x128xbf16>
    %56 = vector.shape_cast %55 : vector<1x32x128xbf16> to vector<32x128xbf16>
    %cst_52 = arith.constant dense<0.000000e+00> : vector<32x16xf32>
    %57 = tpu.matmul %56, %12, %cst_52 {dimension_numbers = #tpu.dot_dimension_numbers<[1], [0], [0], [1], [0, 0, 1, 1], [], []>} : vector<32x128xbf16>, vector<128x16xbf16>, vector<32x16xf32> -> vector<32x16xf32>
    %c15 = arith.constant 15 : index
    %c0_53 = arith.constant 0 : index
    %c0_54 = arith.constant 0 : index
    %58 = vector.load %arg3[%c15, %c0_53, %c0_54] : memref<25x32x128xbf16, #tpu.memory_space<vmem>>, vector<1x32x128xbf16>
    %59 = vector.shape_cast %58 : vector<1x32x128xbf16> to vector<32x128xbf16>
    %cst_55 = arith.constant dense<0.000000e+00> : vector<32x16xf32>
    %60 = tpu.matmul %59, %12, %cst_55 {dimension_numbers = #tpu.dot_dimension_numbers<[1], [0], [0], [1], [0, 0, 1, 1], [], []>} : vector<32x128xbf16>, vector<128x16xbf16>, vector<32x16xf32> -> vector<32x16xf32>
    %c16 = arith.constant 16 : index
    %c0_56 = arith.constant 0 : index
    %c0_57 = arith.constant 0 : index
    %61 = vector.load %arg3[%c16, %c0_56, %c0_57] : memref<25x32x128xbf16, #tpu.memory_space<vmem>>, vector<1x32x128xbf16>
    %62 = vector.shape_cast %61 : vector<1x32x128xbf16> to vector<32x128xbf16>
    %cst_58 = arith.constant dense<0.000000e+00> : vector<32x16xf32>
    %63 = tpu.matmul %62, %12, %cst_58 {dimension_numbers = #tpu.dot_dimension_numbers<[1], [0], [0], [1], [0, 0, 1, 1], [], []>} : vector<32x128xbf16>, vector<128x16xbf16>, vector<32x16xf32> -> vector<32x16xf32>
    %c17 = arith.constant 17 : index
    %c0_59 = arith.constant 0 : index
    %c0_60 = arith.constant 0 : index
    %64 = vector.load %arg3[%c17, %c0_59, %c0_60] : memref<25x32x128xbf16, #tpu.memory_space<vmem>>, vector<1x32x128xbf16>
    %65 = vector.shape_cast %64 : vector<1x32x128xbf16> to vector<32x128xbf16>
    %cst_61 = arith.constant dense<0.000000e+00> : vector<32x16xf32>
    %66 = tpu.matmul %65, %12, %cst_61 {dimension_numbers = #tpu.dot_dimension_numbers<[1], [0], [0], [1], [0, 0, 1, 1], [], []>} : vector<32x128xbf16>, vector<128x16xbf16>, vector<32x16xf32> -> vector<32x16xf32>
    %c18 = arith.constant 18 : index
    %c0_62 = arith.constant 0 : index
    %c0_63 = arith.constant 0 : index
    %67 = vector.load %arg3[%c18, %c0_62, %c0_63] : memref<25x32x128xbf16, #tpu.memory_space<vmem>>, vector<1x32x128xbf16>
    %68 = vector.shape_cast %67 : vector<1x32x128xbf16> to vector<32x128xbf16>
    %cst_64 = arith.constant dense<0.000000e+00> : vector<32x16xf32>
    %69 = tpu.matmul %68, %12, %cst_64 {dimension_numbers = #tpu.dot_dimension_numbers<[1], [0], [0], [1], [0, 0, 1, 1], [], []>} : vector<32x128xbf16>, vector<128x16xbf16>, vector<32x16xf32> -> vector<32x16xf32>
    %c19 = arith.constant 19 : index
    %c0_65 = arith.constant 0 : index
    %c0_66 = arith.constant 0 : index
    %70 = vector.load %arg3[%c19, %c0_65, %c0_66] : memref<25x32x128xbf16, #tpu.memory_space<vmem>>, vector<1x32x128xbf16>
    %71 = vector.shape_cast %70 : vector<1x32x128xbf16> to vector<32x128xbf16>
    %cst_67 = arith.constant dense<0.000000e+00> : vector<32x16xf32>
    %72 = tpu.matmul %71, %12, %cst_67 {dimension_numbers = #tpu.dot_dimension_numbers<[1], [0], [0], [1], [0, 0, 1, 1], [], []>} : vector<32x128xbf16>, vector<128x16xbf16>, vector<32x16xf32> -> vector<32x16xf32>
    %c20 = arith.constant 20 : index
    %c0_68 = arith.constant 0 : index
    %c0_69 = arith.constant 0 : index
    %73 = vector.load %arg3[%c20, %c0_68, %c0_69] : memref<25x32x128xbf16, #tpu.memory_space<vmem>>, vector<1x32x128xbf16>
    %74 = vector.shape_cast %73 : vector<1x32x128xbf16> to vector<32x128xbf16>
    %cst_70 = arith.constant dense<0.000000e+00> : vector<32x16xf32>
    %75 = tpu.matmul %74, %12, %cst_70 {dimension_numbers = #tpu.dot_dimension_numbers<[1], [0], [0], [1], [0, 0, 1, 1], [], []>} : vector<32x128xbf16>, vector<128x16xbf16>, vector<32x16xf32> -> vector<32x16xf32>
    %c21 = arith.constant 21 : index
    %c0_71 = arith.constant 0 : index
    %c0_72 = arith.constant 0 : index
    %76 = vector.load %arg3[%c21, %c0_71, %c0_72] : memref<25x32x128xbf16, #tpu.memory_space<vmem>>, vector<1x32x128xbf16>
    %77 = vector.shape_cast %76 : vector<1x32x128xbf16> to vector<32x128xbf16>
    %cst_73 = arith.constant dense<0.000000e+00> : vector<32x16xf32>
    %78 = tpu.matmul %77, %12, %cst_73 {dimension_numbers = #tpu.dot_dimension_numbers<[1], [0], [0], [1], [0, 0, 1, 1], [], []>} : vector<32x128xbf16>, vector<128x16xbf16>, vector<32x16xf32> -> vector<32x16xf32>
    %c22 = arith.constant 22 : index
    %c0_74 = arith.constant 0 : index
    %c0_75 = arith.constant 0 : index
    %79 = vector.load %arg3[%c22, %c0_74, %c0_75] : memref<25x32x128xbf16, #tpu.memory_space<vmem>>, vector<1x32x128xbf16>
    %80 = vector.shape_cast %79 : vector<1x32x128xbf16> to vector<32x128xbf16>
    %cst_76 = arith.constant dense<0.000000e+00> : vector<32x16xf32>
    %81 = tpu.matmul %80, %12, %cst_76 {dimension_numbers = #tpu.dot_dimension_numbers<[1], [0], [0], [1], [0, 0, 1, 1], [], []>} : vector<32x128xbf16>, vector<128x16xbf16>, vector<32x16xf32> -> vector<32x16xf32>
    %c23 = arith.constant 23 : index
    %c0_77 = arith.constant 0 : index
    %c0_78 = arith.constant 0 : index
    %82 = vector.load %arg3[%c23, %c0_77, %c0_78] : memref<25x32x128xbf16, #tpu.memory_space<vmem>>, vector<1x32x128xbf16>
    %83 = vector.shape_cast %82 : vector<1x32x128xbf16> to vector<32x128xbf16>
    %cst_79 = arith.constant dense<0.000000e+00> : vector<32x16xf32>
    %84 = tpu.matmul %83, %12, %cst_79 {dimension_numbers = #tpu.dot_dimension_numbers<[1], [0], [0], [1], [0, 0, 1, 1], [], []>} : vector<32x128xbf16>, vector<128x16xbf16>, vector<32x16xf32> -> vector<32x16xf32>
    %c24 = arith.constant 24 : index
    %c0_80 = arith.constant 0 : index
    %c0_81 = arith.constant 0 : index
    %85 = vector.load %arg3[%c24, %c0_80, %c0_81] : memref<25x32x128xbf16, #tpu.memory_space<vmem>>, vector<1x32x128xbf16>
    %86 = vector.shape_cast %85 : vector<1x32x128xbf16> to vector<32x128xbf16>
    %cst_82 = arith.constant dense<0.000000e+00> : vector<32x16xf32>
    %87 = tpu.matmul %86, %12, %cst_82 {dimension_numbers = #tpu.dot_dimension_numbers<[1], [0], [0], [1], [0, 0, 1, 1], [], []>} : vector<32x128xbf16>, vector<128x16xbf16>, vector<32x16xf32> -> vector<32x16xf32>
    %88 = tpu.concatenate %15, %18, %21, %24, %27, %30, %33, %36, %39, %42, %45, %48, %51, %54, %57, %60 in 1 : vector<32x16xf32>, vector<32x16xf32>, vector<32x16xf32>, vector<32x16xf32>, vector<32x16xf32>, vector<32x16xf32>, vector<32x16xf32>, vector<32x16xf32>, vector<32x16xf32>, vector<32x16xf32>, vector<32x16xf32>, vector<32x16xf32>, vector<32x16xf32>, vector<32x16xf32>, vector<32x16xf32>, vector<32x16xf32> -> vector<32x256xf32>
    %89 = tpu.concatenate %63, %66, %69, %72, %75, %78, %81, %84, %87 in 1 : vector<32x16xf32>, vector<32x16xf32>, vector<32x16xf32>, vector<32x16xf32>, vector<32x16xf32>, vector<32x16xf32>, vector<32x16xf32>, vector<32x16xf32>, vector<32x16xf32> -> vector<32x144xf32>
    %90 = tpu.concatenate %88, %89 in 1 : vector<32x256xf32>, vector<32x144xf32> -> vector<32x400xf32>
    %91 = arith.truncf %90 : vector<32x400xf32> to vector<32x400xbf16>
    %c32 = arith.constant 32 : index
    %c0_83 = arith.constant 0 : index
    %92 = vector.load %arg2[%c32, %c0_83] : memref<1488x64xbf16, #tpu.memory_space<vmem>>, vector<400x32xbf16>
    %cst_84 = arith.constant dense<0.000000e+00> : vector<32x32xf32>
    %93 = tpu.matmul %91, %92, %cst_84 {dimension_numbers = #tpu.dot_dimension_numbers<[1], [0], [0], [1], [0, 0, 1, 1], [], []>} : vector<32x400xbf16>, vector<400x32xbf16>, vector<32x32xf32> -> vector<32x32xf32>
    %94 = vector.extract_strided_slice %0 {offsets = [1, 0], sizes = [1, 32], strides = [1, 1]} : vector<8x128xf32> to vector<1x32xf32>
    %95 = vector.broadcast %94 : vector<1x32xf32> to vector<32x32xf32>
    %96 = arith.addf %93, %95 : vector<32x32xf32>
    %cst_85 = arith.constant 0.000000e+00 : f32
    %97 = vector.broadcast %cst_85 : f32 to vector<32x32xf32>
    %98 = arith.cmpf oge, %96, %97 : vector<32x32xf32>
    %cst_86 = arith.constant 0.00999999977 : f32
    %99 = vector.broadcast %cst_86 : f32 to vector<32x32xf32>
    %100 = arith.mulf %99, %96 : vector<32x32xf32>
    %101 = arith.select %98, %96, %100 : vector<32x32xi1>, vector<32x32xf32>
    %102 = arith.truncf %101 : vector<32x32xf32> to vector<32x32xbf16>
    %c0_87 = arith.constant 0 : index
    %c0_88 = arith.constant 0 : index
    %c0_89 = arith.constant 0 : index
    %103 = vector.load %arg4[%c0_87, %c0_88, %c0_89] : memref<25x8x32xbf16, #tpu.memory_space<vmem>>, vector<1x8x32xbf16>
    %104 = vector.shape_cast %103 : vector<1x8x32xbf16> to vector<8x32xbf16>
    %cst_90 = arith.constant dense<0.000000e+00> : vector<8x32xf32>
    %105 = tpu.matmul %104, %102, %cst_90 {dimension_numbers = #tpu.dot_dimension_numbers<[1], [0], [0], [1], [0, 0, 1, 1], [], []>} : vector<8x32xbf16>, vector<32x32xbf16>, vector<8x32xf32> -> vector<8x32xf32>
    %c1_91 = arith.constant 1 : index
    %c0_92 = arith.constant 0 : index
    %c0_93 = arith.constant 0 : index
    %106 = vector.load %arg4[%c1_91, %c0_92, %c0_93] : memref<25x8x32xbf16, #tpu.memory_space<vmem>>, vector<1x8x32xbf16>
    %107 = vector.shape_cast %106 : vector<1x8x32xbf16> to vector<8x32xbf16>
    %cst_94 = arith.constant dense<0.000000e+00> : vector<8x32xf32>
    %108 = tpu.matmul %107, %102, %cst_94 {dimension_numbers = #tpu.dot_dimension_numbers<[1], [0], [0], [1], [0, 0, 1, 1], [], []>} : vector<8x32xbf16>, vector<32x32xbf16>, vector<8x32xf32> -> vector<8x32xf32>
    %c2_95 = arith.constant 2 : index
    %c0_96 = arith.constant 0 : index
    %c0_97 = arith.constant 0 : index
    %109 = vector.load %arg4[%c2_95, %c0_96, %c0_97] : memref<25x8x32xbf16, #tpu.memory_space<vmem>>, vector<1x8x32xbf16>
    %110 = vector.shape_cast %109 : vector<1x8x32xbf16> to vector<8x32xbf16>
    %cst_98 = arith.constant dense<0.000000e+00> : vector<8x32xf32>
    %111 = tpu.matmul %110, %102, %cst_98 {dimension_numbers = #tpu.dot_dimension_numbers<[1], [0], [0], [1], [0, 0, 1, 1], [], []>} : vector<8x32xbf16>, vector<32x32xbf16>, vector<8x32xf32> -> vector<8x32xf32>
    %c3_99 = arith.constant 3 : index
    %c0_100 = arith.constant 0 : index
    %c0_101 = arith.constant 0 : index
    %112 = vector.load %arg4[%c3_99, %c0_100, %c0_101] : memref<25x8x32xbf16, #tpu.memory_space<vmem>>, vector<1x8x32xbf16>
    %113 = vector.shape_cast %112 : vector<1x8x32xbf16> to vector<8x32xbf16>
    %cst_102 = arith.constant dense<0.000000e+00> : vector<8x32xf32>
    %114 = tpu.matmul %113, %102, %cst_102 {dimension_numbers = #tpu.dot_dimension_numbers<[1], [0], [0], [1], [0, 0, 1, 1], [], []>} : vector<8x32xbf16>, vector<32x32xbf16>, vector<8x32xf32> -> vector<8x32xf32>
    %c4_103 = arith.constant 4 : index
    %c0_104 = arith.constant 0 : index
    %c0_105 = arith.constant 0 : index
    %115 = vector.load %arg4[%c4_103, %c0_104, %c0_105] : memref<25x8x32xbf16, #tpu.memory_space<vmem>>, vector<1x8x32xbf16>
    %116 = vector.shape_cast %115 : vector<1x8x32xbf16> to vector<8x32xbf16>
    %cst_106 = arith.constant dense<0.000000e+00> : vector<8x32xf32>
    %117 = tpu.matmul %116, %102, %cst_106 {dimension_numbers = #tpu.dot_dimension_numbers<[1], [0], [0], [1], [0, 0, 1, 1], [], []>} : vector<8x32xbf16>, vector<32x32xbf16>, vector<8x32xf32> -> vector<8x32xf32>
    %c5_107 = arith.constant 5 : index
    %c0_108 = arith.constant 0 : index
    %c0_109 = arith.constant 0 : index
    %118 = vector.load %arg4[%c5_107, %c0_108, %c0_109] : memref<25x8x32xbf16, #tpu.memory_space<vmem>>, vector<1x8x32xbf16>
    %119 = vector.shape_cast %118 : vector<1x8x32xbf16> to vector<8x32xbf16>
    %cst_110 = arith.constant dense<0.000000e+00> : vector<8x32xf32>
    %120 = tpu.matmul %119, %102, %cst_110 {dimension_numbers = #tpu.dot_dimension_numbers<[1], [0], [0], [1], [0, 0, 1, 1], [], []>} : vector<8x32xbf16>, vector<32x32xbf16>, vector<8x32xf32> -> vector<8x32xf32>
    %c6_111 = arith.constant 6 : index
    %c0_112 = arith.constant 0 : index
    %c0_113 = arith.constant 0 : index
    %121 = vector.load %arg4[%c6_111, %c0_112, %c0_113] : memref<25x8x32xbf16, #tpu.memory_space<vmem>>, vector<1x8x32xbf16>
    %122 = vector.shape_cast %121 : vector<1x8x32xbf16> to vector<8x32xbf16>
    %cst_114 = arith.constant dense<0.000000e+00> : vector<8x32xf32>
    %123 = tpu.matmul %122, %102, %cst_114 {dimension_numbers = #tpu.dot_dimension_numbers<[1], [0], [0], [1], [0, 0, 1, 1], [], []>} : vector<8x32xbf16>, vector<32x32xbf16>, vector<8x32xf32> -> vector<8x32xf32>
    %c7_115 = arith.constant 7 : index
    %c0_116 = arith.constant 0 : index
    %c0_117 = arith.constant 0 : index
    %124 = vector.load %arg4[%c7_115, %c0_116, %c0_117] : memref<25x8x32xbf16, #tpu.memory_space<vmem>>, vector<1x8x32xbf16>
    %125 = vector.shape_cast %124 : vector<1x8x32xbf16> to vector<8x32xbf16>
    %cst_118 = arith.constant dense<0.000000e+00> : vector<8x32xf32>
    %126 = tpu.matmul %125, %102, %cst_118 {dimension_numbers = #tpu.dot_dimension_numbers<[1], [0], [0], [1], [0, 0, 1, 1], [], []>} : vector<8x32xbf16>, vector<32x32xbf16>, vector<8x32xf32> -> vector<8x32xf32>
    %c8_119 = arith.constant 8 : index
    %c0_120 = arith.constant 0 : index
    %c0_121 = arith.constant 0 : index
    %127 = vector.load %arg4[%c8_119, %c0_120, %c0_121] : memref<25x8x32xbf16, #tpu.memory_space<vmem>>, vector<1x8x32xbf16>
    %128 = vector.shape_cast %127 : vector<1x8x32xbf16> to vector<8x32xbf16>
    %cst_122 = arith.constant dense<0.000000e+00> : vector<8x32xf32>
    %129 = tpu.matmul %128, %102, %cst_122 {dimension_numbers = #tpu.dot_dimension_numbers<[1], [0], [0], [1], [0, 0, 1, 1], [], []>} : vector<8x32xbf16>, vector<32x32xbf16>, vector<8x32xf32> -> vector<8x32xf32>
    %c9_123 = arith.constant 9 : index
    %c0_124 = arith.constant 0 : index
    %c0_125 = arith.constant 0 : index
    %130 = vector.load %arg4[%c9_123, %c0_124, %c0_125] : memref<25x8x32xbf16, #tpu.memory_space<vmem>>, vector<1x8x32xbf16>
    %131 = vector.shape_cast %130 : vector<1x8x32xbf16> to vector<8x32xbf16>
    %cst_126 = arith.constant dense<0.000000e+00> : vector<8x32xf32>
    %132 = tpu.matmul %131, %102, %cst_126 {dimension_numbers = #tpu.dot_dimension_numbers<[1], [0], [0], [1], [0, 0, 1, 1], [], []>} : vector<8x32xbf16>, vector<32x32xbf16>, vector<8x32xf32> -> vector<8x32xf32>
    %c10_127 = arith.constant 10 : index
    %c0_128 = arith.constant 0 : index
    %c0_129 = arith.constant 0 : index
    %133 = vector.load %arg4[%c10_127, %c0_128, %c0_129] : memref<25x8x32xbf16, #tpu.memory_space<vmem>>, vector<1x8x32xbf16>
    %134 = vector.shape_cast %133 : vector<1x8x32xbf16> to vector<8x32xbf16>
    %cst_130 = arith.constant dense<0.000000e+00> : vector<8x32xf32>
    %135 = tpu.matmul %134, %102, %cst_130 {dimension_numbers = #tpu.dot_dimension_numbers<[1], [0], [0], [1], [0, 0, 1, 1], [], []>} : vector<8x32xbf16>, vector<32x32xbf16>, vector<8x32xf32> -> vector<8x32xf32>
    %c11_131 = arith.constant 11 : index
    %c0_132 = arith.constant 0 : index
    %c0_133 = arith.constant 0 : index
    %136 = vector.load %arg4[%c11_131, %c0_132, %c0_133] : memref<25x8x32xbf16, #tpu.memory_space<vmem>>, vector<1x8x32xbf16>
    %137 = vector.shape_cast %136 : vector<1x8x32xbf16> to vector<8x32xbf16>
    %cst_134 = arith.constant dense<0.000000e+00> : vector<8x32xf32>
    %138 = tpu.matmul %137, %102, %cst_134 {dimension_numbers = #tpu.dot_dimension_numbers<[1], [0], [0], [1], [0, 0, 1, 1], [], []>} : vector<8x32xbf16>, vector<32x32xbf16>, vector<8x32xf32> -> vector<8x32xf32>
    %c12_135 = arith.constant 12 : index
    %c0_136 = arith.constant 0 : index
    %c0_137 = arith.constant 0 : index
    %139 = vector.load %arg4[%c12_135, %c0_136, %c0_137] : memref<25x8x32xbf16, #tpu.memory_space<vmem>>, vector<1x8x32xbf16>
    %140 = vector.shape_cast %139 : vector<1x8x32xbf16> to vector<8x32xbf16>
    %cst_138 = arith.constant dense<0.000000e+00> : vector<8x32xf32>
    %141 = tpu.matmul %140, %102, %cst_138 {dimension_numbers = #tpu.dot_dimension_numbers<[1], [0], [0], [1], [0, 0, 1, 1], [], []>} : vector<8x32xbf16>, vector<32x32xbf16>, vector<8x32xf32> -> vector<8x32xf32>
    %c13_139 = arith.constant 13 : index
    %c0_140 = arith.constant 0 : index
    %c0_141 = arith.constant 0 : index
    %142 = vector.load %arg4[%c13_139, %c0_140, %c0_141] : memref<25x8x32xbf16, #tpu.memory_space<vmem>>, vector<1x8x32xbf16>
    %143 = vector.shape_cast %142 : vector<1x8x32xbf16> to vector<8x32xbf16>
    %cst_142 = arith.constant dense<0.000000e+00> : vector<8x32xf32>
    %144 = tpu.matmul %143, %102, %cst_142 {dimension_numbers = #tpu.dot_dimension_numbers<[1], [0], [0], [1], [0, 0, 1, 1], [], []>} : vector<8x32xbf16>, vector<32x32xbf16>, vector<8x32xf32> -> vector<8x32xf32>
    %c14_143 = arith.constant 14 : index
    %c0_144 = arith.constant 0 : index
    %c0_145 = arith.constant 0 : index
    %145 = vector.load %arg4[%c14_143, %c0_144, %c0_145] : memref<25x8x32xbf16, #tpu.memory_space<vmem>>, vector<1x8x32xbf16>
    %146 = vector.shape_cast %145 : vector<1x8x32xbf16> to vector<8x32xbf16>
    %cst_146 = arith.constant dense<0.000000e+00> : vector<8x32xf32>
    %147 = tpu.matmul %146, %102, %cst_146 {dimension_numbers = #tpu.dot_dimension_numbers<[1], [0], [0], [1], [0, 0, 1, 1], [], []>} : vector<8x32xbf16>, vector<32x32xbf16>, vector<8x32xf32> -> vector<8x32xf32>
    %c15_147 = arith.constant 15 : index
    %c0_148 = arith.constant 0 : index
    %c0_149 = arith.constant 0 : index
    %148 = vector.load %arg4[%c15_147, %c0_148, %c0_149] : memref<25x8x32xbf16, #tpu.memory_space<vmem>>, vector<1x8x32xbf16>
    %149 = vector.shape_cast %148 : vector<1x8x32xbf16> to vector<8x32xbf16>
    %cst_150 = arith.constant dense<0.000000e+00> : vector<8x32xf32>
    %150 = tpu.matmul %149, %102, %cst_150 {dimension_numbers = #tpu.dot_dimension_numbers<[1], [0], [0], [1], [0, 0, 1, 1], [], []>} : vector<8x32xbf16>, vector<32x32xbf16>, vector<8x32xf32> -> vector<8x32xf32>
    %c16_151 = arith.constant 16 : index
    %c0_152 = arith.constant 0 : index
    %c0_153 = arith.constant 0 : index
    %151 = vector.load %arg4[%c16_151, %c0_152, %c0_153] : memref<25x8x32xbf16, #tpu.memory_space<vmem>>, vector<1x8x32xbf16>
    %152 = vector.shape_cast %151 : vector<1x8x32xbf16> to vector<8x32xbf16>
    %cst_154 = arith.constant dense<0.000000e+00> : vector<8x32xf32>
    %153 = tpu.matmul %152, %102, %cst_154 {dimension_numbers = #tpu.dot_dimension_numbers<[1], [0], [0], [1], [0, 0, 1, 1], [], []>} : vector<8x32xbf16>, vector<32x32xbf16>, vector<8x32xf32> -> vector<8x32xf32>
    %c17_155 = arith.constant 17 : index
    %c0_156 = arith.constant 0 : index
    %c0_157 = arith.constant 0 : index
    %154 = vector.load %arg4[%c17_155, %c0_156, %c0_157] : memref<25x8x32xbf16, #tpu.memory_space<vmem>>, vector<1x8x32xbf16>
    %155 = vector.shape_cast %154 : vector<1x8x32xbf16> to vector<8x32xbf16>
    %cst_158 = arith.constant dense<0.000000e+00> : vector<8x32xf32>
    %156 = tpu.matmul %155, %102, %cst_158 {dimension_numbers = #tpu.dot_dimension_numbers<[1], [0], [0], [1], [0, 0, 1, 1], [], []>} : vector<8x32xbf16>, vector<32x32xbf16>, vector<8x32xf32> -> vector<8x32xf32>
    %c18_159 = arith.constant 18 : index
    %c0_160 = arith.constant 0 : index
    %c0_161 = arith.constant 0 : index
    %157 = vector.load %arg4[%c18_159, %c0_160, %c0_161] : memref<25x8x32xbf16, #tpu.memory_space<vmem>>, vector<1x8x32xbf16>
    %158 = vector.shape_cast %157 : vector<1x8x32xbf16> to vector<8x32xbf16>
    %cst_162 = arith.constant dense<0.000000e+00> : vector<8x32xf32>
    %159 = tpu.matmul %158, %102, %cst_162 {dimension_numbers = #tpu.dot_dimension_numbers<[1], [0], [0], [1], [0, 0, 1, 1], [], []>} : vector<8x32xbf16>, vector<32x32xbf16>, vector<8x32xf32> -> vector<8x32xf32>
    %c19_163 = arith.constant 19 : index
    %c0_164 = arith.constant 0 : index
    %c0_165 = arith.constant 0 : index
    %160 = vector.load %arg4[%c19_163, %c0_164, %c0_165] : memref<25x8x32xbf16, #tpu.memory_space<vmem>>, vector<1x8x32xbf16>
    %161 = vector.shape_cast %160 : vector<1x8x32xbf16> to vector<8x32xbf16>
    %cst_166 = arith.constant dense<0.000000e+00> : vector<8x32xf32>
    %162 = tpu.matmul %161, %102, %cst_166 {dimension_numbers = #tpu.dot_dimension_numbers<[1], [0], [0], [1], [0, 0, 1, 1], [], []>} : vector<8x32xbf16>, vector<32x32xbf16>, vector<8x32xf32> -> vector<8x32xf32>
    %c20_167 = arith.constant 20 : index
    %c0_168 = arith.constant 0 : index
    %c0_169 = arith.constant 0 : index
    %163 = vector.load %arg4[%c20_167, %c0_168, %c0_169] : memref<25x8x32xbf16, #tpu.memory_space<vmem>>, vector<1x8x32xbf16>
    %164 = vector.shape_cast %163 : vector<1x8x32xbf16> to vector<8x32xbf16>
    %cst_170 = arith.constant dense<0.000000e+00> : vector<8x32xf32>
    %165 = tpu.matmul %164, %102, %cst_170 {dimension_numbers = #tpu.dot_dimension_numbers<[1], [0], [0], [1], [0, 0, 1, 1], [], []>} : vector<8x32xbf16>, vector<32x32xbf16>, vector<8x32xf32> -> vector<8x32xf32>
    %c21_171 = arith.constant 21 : index
    %c0_172 = arith.constant 0 : index
    %c0_173 = arith.constant 0 : index
    %166 = vector.load %arg4[%c21_171, %c0_172, %c0_173] : memref<25x8x32xbf16, #tpu.memory_space<vmem>>, vector<1x8x32xbf16>
    %167 = vector.shape_cast %166 : vector<1x8x32xbf16> to vector<8x32xbf16>
    %cst_174 = arith.constant dense<0.000000e+00> : vector<8x32xf32>
    %168 = tpu.matmul %167, %102, %cst_174 {dimension_numbers = #tpu.dot_dimension_numbers<[1], [0], [0], [1], [0, 0, 1, 1], [], []>} : vector<8x32xbf16>, vector<32x32xbf16>, vector<8x32xf32> -> vector<8x32xf32>
    %c22_175 = arith.constant 22 : index
    %c0_176 = arith.constant 0 : index
    %c0_177 = arith.constant 0 : index
    %169 = vector.load %arg4[%c22_175, %c0_176, %c0_177] : memref<25x8x32xbf16, #tpu.memory_space<vmem>>, vector<1x8x32xbf16>
    %170 = vector.shape_cast %169 : vector<1x8x32xbf16> to vector<8x32xbf16>
    %cst_178 = arith.constant dense<0.000000e+00> : vector<8x32xf32>
    %171 = tpu.matmul %170, %102, %cst_178 {dimension_numbers = #tpu.dot_dimension_numbers<[1], [0], [0], [1], [0, 0, 1, 1], [], []>} : vector<8x32xbf16>, vector<32x32xbf16>, vector<8x32xf32> -> vector<8x32xf32>
    %c23_179 = arith.constant 23 : index
    %c0_180 = arith.constant 0 : index
    %c0_181 = arith.constant 0 : index
    %172 = vector.load %arg4[%c23_179, %c0_180, %c0_181] : memref<25x8x32xbf16, #tpu.memory_space<vmem>>, vector<1x8x32xbf16>
    %173 = vector.shape_cast %172 : vector<1x8x32xbf16> to vector<8x32xbf16>
    %cst_182 = arith.constant dense<0.000000e+00> : vector<8x32xf32>
    %174 = tpu.matmul %173, %102, %cst_182 {dimension_numbers = #tpu.dot_dimension_numbers<[1], [0], [0], [1], [0, 0, 1, 1], [], []>} : vector<8x32xbf16>, vector<32x32xbf16>, vector<8x32xf32> -> vector<8x32xf32>
    %c24_183 = arith.constant 24 : index
    %c0_184 = arith.constant 0 : index
    %c0_185 = arith.constant 0 : index
    %175 = vector.load %arg4[%c24_183, %c0_184, %c0_185] : memref<25x8x32xbf16, #tpu.memory_space<vmem>>, vector<1x8x32xbf16>
    %176 = vector.shape_cast %175 : vector<1x8x32xbf16> to vector<8x32xbf16>
    %cst_186 = arith.constant dense<0.000000e+00> : vector<8x32xf32>
    %177 = tpu.matmul %176, %102, %cst_186 {dimension_numbers = #tpu.dot_dimension_numbers<[1], [0], [0], [1], [0, 0, 1, 1], [], []>} : vector<8x32xbf16>, vector<32x32xbf16>, vector<8x32xf32> -> vector<8x32xf32>
    %178 = tpu.concatenate %105, %108, %111, %114, %117, %120, %123, %126, %129, %132, %135, %138, %141, %144, %147, %150 in 1 : vector<8x32xf32>, vector<8x32xf32>, vector<8x32xf32>, vector<8x32xf32>, vector<8x32xf32>, vector<8x32xf32>, vector<8x32xf32>, vector<8x32xf32>, vector<8x32xf32>, vector<8x32xf32>, vector<8x32xf32>, vector<8x32xf32>, vector<8x32xf32>, vector<8x32xf32>, vector<8x32xf32>, vector<8x32xf32> -> vector<8x512xf32>
    %179 = tpu.concatenate %153, %156, %159, %162, %165, %168, %171, %174, %177 in 1 : vector<8x32xf32>, vector<8x32xf32>, vector<8x32xf32>, vector<8x32xf32>, vector<8x32xf32>, vector<8x32xf32>, vector<8x32xf32>, vector<8x32xf32>, vector<8x32xf32> -> vector<8x288xf32>
    %180 = tpu.concatenate %178, %179 in 1 : vector<8x512xf32>, vector<8x288xf32> -> vector<8x800xf32>
    %181 = arith.truncf %180 : vector<8x800xf32> to vector<8x800xbf16>
    %c432 = arith.constant 432 : index
    %c0_187 = arith.constant 0 : index
    %182 = vector.load %arg2[%c432, %c0_187] : memref<1488x64xbf16, #tpu.memory_space<vmem>>, vector<800x64xbf16>
    %cst_188 = arith.constant dense<0.000000e+00> : vector<8x64xf32>
    %183 = tpu.matmul %181, %182, %cst_188 {dimension_numbers = #tpu.dot_dimension_numbers<[1], [0], [0], [1], [0, 0, 1, 1], [], []>} : vector<8x800xbf16>, vector<800x64xbf16>, vector<8x64xf32> -> vector<8x64xf32>
    %184 = vector.extract_strided_slice %0 {offsets = [2, 0], sizes = [1, 64], strides = [1, 1]} : vector<8x128xf32> to vector<1x64xf32>
    %185 = vector.broadcast %184 : vector<1x64xf32> to vector<8x64xf32>
    %186 = arith.addf %183, %185 : vector<8x64xf32>
    %cst_189 = arith.constant 0.000000e+00 : f32
    %187 = vector.broadcast %cst_189 : f32 to vector<8x64xf32>
    %188 = arith.cmpf oge, %186, %187 : vector<8x64xf32>
    %cst_190 = arith.constant 0.00999999977 : f32
    %189 = vector.broadcast %cst_190 : f32 to vector<8x64xf32>
    %190 = arith.mulf %189, %186 : vector<8x64xf32>
    %191 = arith.select %188, %186, %190 : vector<8x64xi1>, vector<8x64xf32>
    %192 = vector.extract_strided_slice %191 {offsets = [0, 0], sizes = [2, 64], strides = [1, 1]} : vector<8x64xf32> to vector<2x64xf32>
    %193 = vector.extract_strided_slice %191 {offsets = [2, 0], sizes = [2, 64], strides = [1, 1]} : vector<8x64xf32> to vector<2x64xf32>
    %194 = vector.extract_strided_slice %191 {offsets = [4, 0], sizes = [2, 64], strides = [1, 1]} : vector<8x64xf32> to vector<2x64xf32>
    %195 = vector.extract_strided_slice %191 {offsets = [6, 0], sizes = [2, 64], strides = [1, 1]} : vector<8x64xf32> to vector<2x64xf32>
    %196 = tpu.concatenate %192, %193, %194, %195 in 1 : vector<2x64xf32>, vector<2x64xf32>, vector<2x64xf32>, vector<2x64xf32> -> vector<2x256xf32>
    %197 = arith.truncf %196 : vector<2x256xf32> to vector<2x256xbf16>
    %c1232 = arith.constant 1232 : index
    %c0_191 = arith.constant 0 : index
    %198 = vector.load %arg2[%c1232, %c0_191] : memref<1488x64xbf16, #tpu.memory_space<vmem>>, vector<256x32xbf16>
    %cst_192 = arith.constant dense<0.000000e+00> : vector<2x32xf32>
    %199 = tpu.matmul %197, %198, %cst_192 {dimension_numbers = #tpu.dot_dimension_numbers<[1], [0], [0], [1], [0, 0, 1, 1], [], []>} : vector<2x256xbf16>, vector<256x32xbf16>, vector<2x32xf32> -> vector<2x32xf32>
    %200 = vector.extract_strided_slice %0 {offsets = [3, 0], sizes = [1, 32], strides = [1, 1]} : vector<8x128xf32> to vector<1x32xf32>
    %201 = vector.broadcast %200 : vector<1x32xf32> to vector<2x32xf32>
    %202 = arith.addf %199, %201 : vector<2x32xf32>
    %cst_193 = arith.constant 0.000000e+00 : f32
    %203 = vector.broadcast %cst_193 : f32 to vector<2x32xf32>
    %204 = arith.cmpf oge, %202, %203 : vector<2x32xf32>
    %cst_194 = arith.constant 0.00999999977 : f32
    %205 = vector.broadcast %cst_194 : f32 to vector<2x32xf32>
    %206 = arith.mulf %205, %202 : vector<2x32xf32>
    %207 = arith.select %204, %202, %206 : vector<2x32xi1>, vector<2x32xf32>
    %208 = vector.extract_strided_slice %0 {offsets = [4, 0], sizes = [1, 32], strides = [1, 1]} : vector<8x128xf32> to vector<1x32xf32>
    %209 = vector.broadcast %208 : vector<1x32xf32> to vector<2x32xf32>
    %210 = arith.mulf %207, %209 : vector<2x32xf32>
    %cst_195 = arith.constant dense<0.000000e+00> : vector<2xf32>
    %211 = vector.multi_reduction <add>, %210, %cst_195 [1] : vector<2x32xf32> to vector<2xf32>
    %212 = vector.shape_cast %211 : vector<2xf32> to vector<2x1xf32>
    %213 = vector.extract_strided_slice %0 {offsets = [5, 0], sizes = [1, 1], strides = [1, 1]} : vector<8x128xf32> to vector<1x1xf32>
    %214 = vector.broadcast %213 : vector<1x1xf32> to vector<2x1xf32>
    %215 = arith.addf %212, %214 : vector<2x1xf32>
    %cst_196 = arith.constant 0.000000e+00 : f32
    %216 = vector.broadcast %cst_196 : f32 to vector<2x1xf32>
    %217 = arith.cmpf oge, %215, %216 : vector<2x1xf32>
    %cst_197 = arith.constant 0.00999999977 : f32
    %218 = vector.broadcast %cst_197 : f32 to vector<2x1xf32>
    %219 = arith.mulf %218, %215 : vector<2x1xf32>
    %220 = arith.select %217, %215, %219 : vector<2x1xi1>, vector<2x1xf32>
    %221 = vector.extract_strided_slice %0 {offsets = [5, 1], sizes = [1, 1], strides = [1, 1]} : vector<8x128xf32> to vector<1x1xf32>
    %222 = vector.broadcast %221 : vector<1x1xf32> to vector<2x1xf32>
    %223 = arith.mulf %220, %222 : vector<2x1xf32>
    %c0_198 = arith.constant 0 : index
    %c0_199 = arith.constant 0 : index
    %224 = vector.load %arg1[%c0_198, %c0_199] : memref<2x6xf32, #tpu.memory_space<vmem>>, vector<2x6xf32>
    %225 = vector.extract_strided_slice %0 {offsets = [6, 0], sizes = [1, 6], strides = [1, 1]} : vector<8x128xf32> to vector<1x6xf32>
    %226 = vector.broadcast %225 : vector<1x6xf32> to vector<2x6xf32>
    %227 = arith.mulf %224, %226 : vector<2x6xf32>
    %cst_200 = arith.constant dense<0.000000e+00> : vector<2xf32>
    %228 = vector.multi_reduction <add>, %227, %cst_200 [1] : vector<2x6xf32> to vector<2xf32>
    %229 = vector.shape_cast %228 : vector<2xf32> to vector<2x1xf32>
    %230 = arith.addf %223, %229 : vector<2x1xf32>
    %231 = vector.extract_strided_slice %0 {offsets = [5, 2], sizes = [1, 1], strides = [1, 1]} : vector<8x128xf32> to vector<1x1xf32>
    %232 = vector.broadcast %231 : vector<1x1xf32> to vector<2x1xf32>
    %233 = arith.addf %230, %232 : vector<2x1xf32>
    %cst_201 = arith.constant 5.000000e+00 : f32
    %234 = vector.broadcast %cst_201 : f32 to vector<2x1xf32>
    %235 = arith.minimumf %233, %234 : vector<2x1xf32>
    %c0_202 = arith.constant 0 : index
    %c0_203 = arith.constant 0 : index
    %236 = vector.load %arg6[%c0_202, %c0_203] : memref<2x1xf32, #tpu.memory_space<vmem>>, vector<2x1xf32>
    tpu.vector_store %arg6[%c0_202, %c0_203], %235 {strides = array<i32>} : memref<2x1xf32, #tpu.memory_space<vmem>>, vector<2x1xf32>,
    return
  }
}

</mosaic_0001>

<bundles_post_ra>
// kernel: forward.1
= control target key start
LH: loop header
LB: loop body
LE: loop exit
PB: predicated region body
PF: predicated region fallthrough
CT: control target
= control target key end

     0   :  { %vm98_vm0 = vcmask 261120   ;;  %s4292_s10 = smov 16   ;;  %s4294_s23 = smov 48   ;;  %s5521_s2 = inlined_call_operand.vmem [shape: bf16[1488,64], index: 2, kind: input, shape index: {}]   ;;  %s5522_s0 = inlined_call_operand.vmem [shape: bf16[128,32], index: 0, kind: input, shape index: {}]   ;;  %s5523_s5 = inlined_call_operand.vmem [shape: f32[8,128], index: 5, kind: input, shape index: {}]   ;;  %s5524_s3 = inlined_call_operand.vmem [shape: bf16[25,32,128], index: 3, kind: input, shape index: {}]   ;;  %s5525_s4 = inlined_call_operand.vmem [shape: bf16[25,8,32], index: 4, kind: input, shape index: {}]   ;;  %s5526_s1 = inlined_call_operand.vmem [shape: f32[2,6], index: 1, kind: input, shape index: {}]   ;;  %s5527_s6 = inlined_call_operand.vmem [shape: f32[2,1], index: 6, kind: output, shape index: {}]  }
   0x1   :  { %v3879_v0 = vld [vmem:[%s5521_s2 + $0x8] sm:$0xff]  ;;  %v3878_v1 = vld [vmem:[%s5521_s2] sm:$0xff]  ;;  %v3872_v4 = vld [vmem:[%s5522_s0 + $0x10] sm:$0xff]  ;;  %s4295_s30 = smov 64   ;;  %s4296_s7 = smov 80  }
   0x2   :  { %129 = vmatpush.bf16.msra.mxu0 %v3879_v0  ;;  %v3870_v2 = vld [vmem:[%s5522_s0] sm:$0xff]  ;;  %v3871_v3 = vld [vmem:[%s5522_s0 + $0x8] sm:$0xff]  ;;  %v3873_v5 = vld [vmem:[%s5522_s0 + $0x18] sm:$0xff]  ;;  %s4297_s15 = smov 96   ;;  %s4298_s22 = smov 112  }
   0x3   :  { %v3874_v6 = vld [vmem:[%s5522_s0 + $0x20] sm:$0xff]  ;;  %v3875_v7 = vld [vmem:[%s5522_s0 + $0x28] sm:$0xff]  ;;  %v3876_v8 = vld [vmem:[%s5522_s0 + $0x30] sm:$0xff]  ;;  %s4300_s17 = smov 126  }
   0x4   :  { %v3877_v9 = vld [vmem:[%s5522_s0 + $0x38] sm:$0xff]  ;;  %v24_v24 = vld [vmem:[%s5523_s5] sm:$0xff]  ;;  %s4293_s0 = smov 32  }
   0x5   :  { %v4387_v26 = vperm.slane %v24_v24, 0  ;;  %v3881_v24 = vld [vmem:[%s5524_s3 + $0x8] sm:$0xff] }
   0x6   :  { %130 = vmatpush.bf16.msra.mxu0 %v3878_v1 }
   0x9   :  { %3150 = vmatmul.msk.bf16.vlgmr.msra.gmra.mxu0 %vm98_vm0, %v3870_v2 }
  0x19   :  { %3151 = vmatmul.msk.bf16.gmra.mxu0 %vm98_vm0, %v3871_v3 }
  0x29   :  { %3152 = vmatmul.msk.bf16.gmra.mxu0 %vm98_vm0, %v3872_v4 }
  0x39   :  { %3153 = vmatmul.msk.bf16.gmra.mxu0 %vm98_vm0, %v3873_v5 }
  0x49   :  { %3154 = vmatmul.msk.bf16.gmra.mxu0 %vm98_vm0, %v3874_v6 }
  0x59   :  { %3155 = vmatmul.msk.bf16.gmra.mxu0 %vm98_vm0, %v3875_v7 }
  0x69   :  { %3156 = vmatmul.msk.bf16.gmra.mxu0 %vm98_vm0, %v3876_v8 }
  0x79   :  { %3157 = vmatmul.msk.bf16.gmra.mxu0 %vm98_vm0, %v3877_v9 }
  0x86   :  { %v4374_v10 = vpop.f32.mrf.mxu0 }
  0x87   :  { %v133_v8 = vadd.f32 %v4374_v10, %v4387_v26 }
  0x8e   :  { %v4376_v11 = vpop.f32.mrf.mxu0 }
  0x8f   :  { %v135_v5 = vadd.f32 %v4376_v11, %v4387_v26 }
  0x91   :  { %v189_v11 = vmul.f32 0.01, %v135_v5  ;;  %vm173_vm15 = vcmp.ge.f32.partialorder %v135_v5, 0.0 }
  0x96   :  { %v4378_v12 = vpop.f32.mrf.mxu0 }
  0x97   :  { %v138_v1 = vadd.f32 %v4378_v12, %v4387_v26 }
  0x99   :  { %v190_v9 = vmul.f32 0.01, %v138_v1  ;;  %vm174_vm14 = vcmp.ge.f32.partialorder %v138_v1, 0.0 }
  0x9e   :  { %v4380_v13 = vpop.f32.mrf.mxu0 }
  0x9f   :  { %v140_v62 = vadd.f32 %v4380_v13, %v4387_v26 }
  0xa1   :  { %v191_v6 = vmul.f32 0.01, %v140_v62  ;;  %vm175_vm13 = vcmp.ge.f32.partialorder %v140_v62, 0.0 }
  0xa6   :  { %v4382_v14 = vpop.f32.mrf.mxu0 }
  0xa7   :  { %v143_v58 = vadd.f32 %v4382_v14, %v4387_v26  ;;  %v207_v14 = vsel %vm175_vm13, %v140_v62, %v191_v6  ;;  %v3909_v6 = vld [vmem:[%s5524_s3 + $0xe8] sm:$0xff] }
  0xa9   :  { %v192_v2 = vmul.f32 0.01, %v143_v58  ;;  %vm176_vm12 = vcmp.ge.f32.partialorder %v143_v58, 0.0 }
  0xab   :  { %v208_v12 = vsel %vm176_vm12, %v143_v58, %v192_v2  ;;  %vm3094_vm12 = vcmask 41984  }
  0xae   :  { %v144_v15 = vpop.f32.mrf.mxu0 }
  0xaf   :  { %v145_v55 = vadd.f32 %v144_v15, %v4387_v26  ;;  %v188_v15 = vmul.f32 0.01, %v133_v8 }
  0xb1   :  { %v193_v63 = vmul.f32 0.01, %v145_v55  ;;  %vm177_vm11 = vcmp.ge.f32.partialorder %v145_v55, 0.0 }
  0xb3   :  { %v209_v7 = vsel %vm177_vm11, %v145_v55, %v193_v63  ;;  %v3906_v55 = vld [vmem:[%s5524_s3 + $0xd0] sm:$0xff] }
  0xb4   :  { %v4440_v13 = vpack.c.bf16 %v209_v7, %v208_v12  ;;  %v3911_v7 = vld [vmem:[%s5524_s3 + $0xf8] sm:$0xff] }
  0xb6   :  { %v147_v16 = vpop.f32.mrf.mxu0 }
  0xb7   :  { %v148_v51 = vadd.f32 %v147_v16, %v4387_v26  ;;  %v206_v16 = vsel %vm174_vm14, %v138_v1, %v190_v9  ;;  %vm3077_vm14 = vcmask 254976  }
  0xb8   :  { %v4446_v10 = vpack.c.bf16 %v207_v14, %v206_v16 }
  0xb9   :  { %v194_v59 = vmul.f32 0.01, %v148_v51  ;;  %vm178_vm10 = vcmp.ge.f32.partialorder %v148_v51, 0.0 }
  0xbb   :  { %v210_v3 = vsel %vm178_vm10, %v148_v51, %v194_v59  ;;  %v3921_v51 = vld [vmem:[%s5524_s3 + $0x148] sm:$0xff] }
  0xbe   :  { %v149_v17 = vpop.f32.mrf.mxu0 }
  0xbf   :  { %v150_v48 = vadd.f32 %v149_v17, %v4387_v26  ;;  %v205_v17 = vsel %vm173_vm15, %v135_v5, %v189_v11  ;;  %v3907_v5 = vld [vmem:[%s5524_s3 + $0xd8] sm:$0xff] }
  0xc1   :  { %v195_v56 = vmul.f32 0.01, %v150_v48  ;;  %vm179_vm9 = vcmp.ge.f32.partialorder %v150_v48, 0.0 }
  0xc3   :  { %v211_v0 = vsel %vm179_vm9, %v150_v48, %v195_v56  ;;  %v3899_v48 = vld [vmem:[%s5524_s3 + $0x98] sm:$0xff]  ;;  %v3908_v56 = vld [vmem:[%s5524_s3 + $0xe0] sm:$0xff] }
  0xc4   :  { %v4430_v4 = vpack.c.bf16 %v211_v0, %v210_v3 }
  0xc6   :  { %v152_v18 = vpop.f32.mrf.mxu0 }
  0xc7   :  { %v153_v44 = vadd.f32 %v152_v18, %v4387_v26 }
  0xc9   :  { %v196_v52 = vmul.f32 0.01, %v153_v44  ;;  %vm180_vm8 = vcmp.ge.f32.partialorder %v153_v44, 0.0 }
  0xcb   :  { %v212_v60 = vsel %vm180_vm8, %v153_v44, %v196_v52  ;;  %v3898_v44 = vld [vmem:[%s5524_s3 + $0x90] sm:$0xff] }
  0xce   :  { %v154_v19 = vpop.f32.mrf.mxu0 }
  0xcf   :  { %v155_v41 = vadd.f32 %v154_v19, %v4387_v26 }
  0xd1   :  { %v197_v49 = vmul.f32 0.01, %v155_v41  ;;  %vm181_vm7 = vcmp.ge.f32.partialorder %v155_v41, 0.0 }
  0xd3   :  { %v213_v57 = vsel %vm181_vm7, %v155_v41, %v197_v49  ;;  %v3893_v41 = vld [vmem:[%s5524_s3 + $0x68] sm:$0xff]  ;;  %vm1380_vm7 = vcmask 916480  }
  0xd4   :  { %v4420_v61 = vpack.c.bf16 %v213_v57, %v212_v60  ;;  %v3901_v49 = vld [vmem:[%s5524_s3 + $0xa8] sm:$0xff]  ;;  %v3910_v57 = vld [vmem:[%s5524_s3 + $0xf0] sm:$0xff] }
  0xd6   :  { %v157_v20 = vpop.f32.mrf.mxu0 }
  0xd7   :  { %v158_v36 = vadd.f32 %v157_v20, %v4387_v26  ;;  %v3880_v20 = vld [vmem:[%s5524_s3] sm:$0xff] }
  0xd9   :  { %v198_v45 = vmul.f32 0.01, %v158_v36  ;;  %vm182_vm6 = vcmp.ge.f32.partialorder %v158_v36, 0.0 }
  0xdb   :  { %v214_v53 = vsel %vm182_vm6, %v158_v36, %v198_v45  ;;  %v3892_v36 = vld [vmem:[%s5524_s3 + $0x60] sm:$0xff]  ;;  %vm1375_vm6 = vcmask 785408  }
  0xdc   :  { %v3900_v45 = vld [vmem:[%s5524_s3 + $0xa0] sm:$0xff] }
  0xde   :  { %v159_v21 = vpop.f32.mrf.mxu0 }
  0xdf   :  { %v160_v33 = vadd.f32 %v159_v21, %v4387_v26  ;;  %v3882_v21 = vld [vmem:[%s5524_s3 + $0x10] sm:$0xff] }
  0xe1   :  { %v199_v42 = vmul.f32 0.01, %v160_v33  ;;  %vm183_vm5 = vcmp.ge.f32.partialorder %v160_v33, 0.0 }
  0xe3   :  { %v215_v50 = vsel %vm183_vm5, %v160_v33, %v199_v42  ;;  %v3889_v33 = vld [vmem:[%s5524_s3 + $0x48] sm:$0xff]  ;;  %v3895_v42 = vld [vmem:[%s5524_s3 + $0x78] sm:$0xff]  ;;  %vm1370_vm5 = vcmask 654336  }
  0xe4   :  { %v4411_v54 = vpack.c.bf16 %v215_v50, %v214_v53  ;;  %v3903_v50 = vld [vmem:[%s5524_s3 + $0xb8] sm:$0xff] }
  0xe6   :  { %v162_v22 = vpop.f32.mrf.mxu0 }
  0xe7   :  { %v163_v30 = vadd.f32 %v162_v22, %v4387_v26  ;;  %v3884_v22 = vld [vmem:[%s5524_s3 + $0x20] sm:$0xff] }
  0xe9   :  { %v200_v37 = vmul.f32 0.01, %v163_v30  ;;  %vm184_vm4 = vcmp.ge.f32.partialorder %v163_v30, 0.0 }
  0xeb   :  { %v216_v46 = vsel %vm184_vm4, %v163_v30, %v200_v37  ;;  %v3890_v30 = vld [vmem:[%s5524_s3 + $0x50] sm:$0xff]  ;;  %vm1365_vm4 = vcmask 523264  }
  0xec   :  { %v3894_v37 = vld [vmem:[%s5524_s3 + $0x70] sm:$0xff] }
  0xee   :  { %v164_v23 = vpop.f32.mrf.mxu0 }
  0xef   :  { %v165_v28 = vadd.f32 %v164_v23, %v4387_v26  ;;  %v3904_v23 = vld [vmem:[%s5524_s3 + $0xc0] sm:$0xff] }
  0xf1   :  { %v201_v34 = vmul.f32 0.01, %v165_v28  ;;  %vm185_vm3 = vcmp.ge.f32.partialorder %v165_v28, 0.0 }
  0xf3   :  { %v217_v43 = vsel %vm185_vm3, %v165_v28, %v201_v34  ;;  %v3886_v28 = vld [vmem:[%s5524_s3 + $0x30] sm:$0xff]  ;;  %v3891_v34 = vld [vmem:[%s5524_s3 + $0x58] sm:$0xff]  ;;  %vm1360_vm3 = vcmask 392192  }
  0xf4   :  { %v4403_v47 = vpack.c.bf16 %v217_v43, %v216_v46  ;;  %v3897_v43 = vld [vmem:[%s5524_s3 + $0x88] sm:$0xff]  ;;  %v3902_v46 = vld [vmem:[%s5524_s3 + $0xb0] sm:$0xff] }
  0xf6   :  { %v167_v25 = vpop.f32.mrf.mxu0 }
  0xf7   :  { %v168_v27 = vadd.f32 %v167_v25, %v4387_v26  ;;  %v3883_v25 = vld [vmem:[%s5524_s3 + $0x18] sm:$0xff] }
  0xf9   :  { %v202_v31 = vmul.f32 0.01, %v168_v27  ;;  %vm186_vm1 = vcmp.ge.f32.partialorder %v168_v27, 0.0 }
  0xfb   :  { %v218_v38 = vsel %vm186_vm1, %v168_v27, %v202_v31  ;;  %vm172_vm1 = vcmp.ge.f32.partialorder %v133_v8, 0.0  ;;  %v3905_v27 = vld [vmem:[%s5524_s3 + $0xc8] sm:$0xff]  ;;  %v3912_v31 = vld [vmem:[%s5524_s3 + $0x100] sm:$0xff] }
  0xfc   :  { %v204_v18 = vsel %vm172_vm1, %v133_v8, %v188_v15  ;;  %vm3104_vm1 = vcmask 1024  }
  0xfd   :  { %v4452_v19 = vpack.c.bf16 %v205_v17, %v204_v18 }
  0xfe   :  { %v169_v29 = vpop.f32.mrf.mxu0 }
  0xff   :  { %v170_v32 = vadd.f32 %v169_v29, %v4387_v26  ;;  %v3885_v26 = vld [vmem:[%s5524_s3 + $0x28] sm:$0xff]  ;;  %v3888_v29 = vld [vmem:[%s5524_s3 + $0x40] sm:$0xff] }
 0x101   :  { %vm187_vm2 = vcmp.ge.f32.partialorder %v170_v32, 0.0  ;;  %v203_v35 = vmul.f32 0.01, %v170_v32 }
 0x103   :  { %v219_v39 = vsel %vm187_vm2, %v170_v32, %v203_v35  ;;  %v3887_v32 = vld [vmem:[%s5524_s3 + $0x38] sm:$0xff]  ;;  %v3913_v35 = vld [vmem:[%s5524_s3 + $0x108] sm:$0xff]  ;;  %vm1351_vm2 = vcmask 130048  }
 0x104   :  { %v4395_v40 = vpack.c.bf16 %v219_v39, %v218_v38  ;;  %v3896_v38 = vld [vmem:[%s5524_s3 + $0x80] sm:$0xff] }
 0x105   :  { %v3920_v39 = vld [vmem:[%s5524_s3 + $0x140] sm:$0xff] }
 0x106   :  { %244 = vmatpush.bf16.msra.mxu1 %v4395_v40  ;;  %280 = vmatpush.bf16.msra.mxu2 %v4395_v40 }
 0x107   :  { %316 = vmatpush.bf16.msra.mxu3 %v4395_v40  ;;  %676 = vmatpush.bf16.msrb.mxu0 %v4395_v40 }
 0x10a   :  { %245 = vmatpush.bf16.msra.mxu1 %v4403_v47  ;;  %281 = vmatpush.bf16.msra.mxu2 %v4403_v47 }
 0x10b   :  { %317 = vmatpush.bf16.msra.mxu3 %v4403_v47  ;;  %677 = vmatpush.bf16.msrb.mxu0 %v4403_v47 }
 0x10e   :  { %246 = vmatpush.bf16.msra.mxu1 %v4411_v54  ;;  %282 = vmatpush.bf16.msra.mxu2 %v4411_v54 }
 0x10f   :  { %318 = vmatpush.bf16.msra.mxu3 %v4411_v54  ;;  %678 = vmatpush.bf16.msrb.mxu0 %v4411_v54 }
 0x112   :  { %247 = vmatpush.bf16.msra.mxu1 %v4420_v61  ;;  %283 = vmatpush.bf16.msra.mxu2 %v4420_v61 }
 0x113   :  { %319 = vmatpush.bf16.msra.mxu3 %v4420_v61  ;;  %679 = vmatpush.bf16.msrb.mxu0 %v4420_v61 }
 0x116   :  { %248 = vmatpush.bf16.msra.mxu1 %v4430_v4  ;;  %284 = vmatpush.bf16.msra.mxu2 %v4430_v4 }
 0x117   :  { %320 = vmatpush.bf16.msra.mxu3 %v4430_v4  ;;  %680 = vmatpush.bf16.msrb.mxu0 %v4430_v4 }
 0x11a   :  { %249 = vmatpush.bf16.msra.mxu1 %v4440_v13  ;;  %285 = vmatpush.bf16.msra.mxu2 %v4440_v13 }
 0x11b   :  { %321 = vmatpush.bf16.msra.mxu3 %v4440_v13  ;;  %681 = vmatpush.bf16.msrb.mxu0 %v4440_v13 }
 0x11e   :  { %250 = vmatpush.bf16.msra.mxu1 %v4446_v10  ;;  %286 = vmatpush.bf16.msra.mxu2 %v4446_v10 }
 0x11f   :  { %322 = vmatpush.bf16.msra.mxu3 %v4446_v10  ;;  %682 = vmatpush.bf16.msrb.mxu0 %v4446_v10 }
 0x122   :  { %251 = vmatpush.bf16.msra.mxu1 %v4452_v19  ;;  %287 = vmatpush.bf16.msra.mxu2 %v4452_v19 }
 0x123   :  { %323 = vmatpush.bf16.msra.mxu3 %v4452_v19  ;;  %683 = vmatpush.bf16.msrb.mxu0 %v4452_v19 }
 0x125   :  { %252 = vmatmul.bf16.vlgmr.msra.gmra.mxu1 %v3880_v20  ;;  %288 = vmatmul.bf16.vlgmr.msra.gmra.mxu2 %v3882_v21  ;;  %v3918_v21 = vld [vmem:[%s5524_s3 + $0x130] sm:$0xff] }
 0x126   :  { %352 = vmatpush.bf16.msrb.mxu1 %v4395_v40  ;;  %388 = vmatpush.bf16.msrb.mxu2 %v4395_v40 }
 0x127   :  { %424 = vmatpush.bf16.msrb.mxu3 %v4395_v40  ;;  %820 = vmatpush.bf16.msra.mxu0 %v4395_v40 }
 0x128   :  { %324 = vmatmul.bf16.vlgmr.msra.gmra.mxu3 %v3884_v22  ;;  %684 = vmatmul.bf16.vlgmr.msrb.gmra.mxu0 %v3904_v23 }
 0x12a   :  { %353 = vmatpush.bf16.msrb.mxu1 %v4403_v47  ;;  %389 = vmatpush.bf16.msrb.mxu2 %v4403_v47 }
 0x12b   :  { %425 = vmatpush.bf16.msrb.mxu3 %v4403_v47  ;;  %821 = vmatpush.bf16.msra.mxu0 %v4403_v47 }
 0x12e   :  { %354 = vmatpush.bf16.msrb.mxu1 %v4411_v54  ;;  %390 = vmatpush.bf16.msrb.mxu2 %v4411_v54 }
 0x12f   :  { %426 = vmatpush.bf16.msrb.mxu3 %v4411_v54  ;;  %822 = vmatpush.bf16.msra.mxu0 %v4411_v54 }
 0x132   :  { %355 = vmatpush.bf16.msrb.mxu1 %v4420_v61  ;;  %391 = vmatpush.bf16.msrb.mxu2 %v4420_v61 }
 0x133   :  { %427 = vmatpush.bf16.msrb.mxu3 %v4420_v61  ;;  %823 = vmatpush.bf16.msra.mxu0 %v4420_v61 }
 0x135   :  { %257 = vmatmul.bf16.gmra.mxu1 %v3881_v24  ;;  %293 = vmatmul.bf16.gmra.mxu2 %v3883_v25 }
 0x136   :  { %356 = vmatpush.bf16.msrb.mxu1 %v4430_v4  ;;  %392 = vmatpush.bf16.msrb.mxu2 %v4430_v4 }
 0x137   :  { %428 = vmatpush.bf16.msrb.mxu3 %v4430_v4  ;;  %824 = vmatpush.bf16.msra.mxu0 %v4430_v4 }
 0x138   :  { %329 = vmatmul.bf16.gmra.mxu3 %v3885_v26  ;;  %689 = vmatmul.bf16.gmra.mxu0 %v3905_v27 }
 0x13a   :  { %357 = vmatpush.bf16.msrb.mxu1 %v4440_v13  ;;  %393 = vmatpush.bf16.msrb.mxu2 %v4440_v13 }
 0x13b   :  { %429 = vmatpush.bf16.msrb.mxu3 %v4440_v13  ;;  %825 = vmatpush.bf16.msra.mxu0 %v4440_v13 }
 0x13e   :  { %358 = vmatpush.bf16.msrb.mxu1 %v4446_v10  ;;  %394 = vmatpush.bf16.msrb.mxu2 %v4446_v10 }
 0x13f   :  { %430 = vmatpush.bf16.msrb.mxu3 %v4446_v10  ;;  %826 = vmatpush.bf16.msra.mxu0 %v4446_v10 }
 0x142   :  { %359 = vmatpush.bf16.msrb.mxu1 %v4452_v19  ;;  %395 = vmatpush.bf16.msrb.mxu2 %v4452_v19 }
 0x143   :  { %431 = vmatpush.bf16.msrb.mxu3 %v4452_v19  ;;  %827 = vmatpush.bf16.msra.mxu0 %v4452_v19 }
 0x145   :  { %360 = vmatmul.bf16.vlgmr.msrb.gmra.mxu1 %v3886_v28  ;;  %396 = vmatmul.bf16.vlgmr.msrb.gmra.mxu2 %v3888_v29 }
 0x146   :  { %460 = vmatpush.bf16.msra.mxu1 %v4395_v40  ;;  %496 = vmatpush.bf16.msra.mxu2 %v4395_v40 }
 0x147   :  { %532 = vmatpush.bf16.msra.mxu3 %v4395_v40  ;;  %964 = vmatpush.bf16.msrb.mxu0 %v4395_v40 }
 0x148   :  { %432 = vmatmul.bf16.vlgmr.msrb.gmra.mxu3 %v3890_v30  ;;  %828 = vmatmul.bf16.vlgmr.msra.gmra.mxu0 %v3912_v31  ;;  %v3919_v30 = vld [vmem:[%s5524_s3 + $0x138] sm:$0xff] }
 0x14a   :  { %461 = vmatpush.bf16.msra.mxu1 %v4403_v47  ;;  %497 = vmatpush.bf16.msra.mxu2 %v4403_v47 }
 0x14b   :  { %533 = vmatpush.bf16.msra.mxu3 %v4403_v47  ;;  %965 = vmatpush.bf16.msrb.mxu0 %v4403_v47 }
 0x14e   :  { %462 = vmatpush.bf16.msra.mxu1 %v4411_v54  ;;  %498 = vmatpush.bf16.msra.mxu2 %v4411_v54 }
 0x14f   :  { %534 = vmatpush.bf16.msra.mxu3 %v4411_v54  ;;  %966 = vmatpush.bf16.msrb.mxu0 %v4411_v54 }
 0x152   :  { %463 = vmatpush.bf16.msra.mxu1 %v4420_v61  ;;  %499 = vmatpush.bf16.msra.mxu2 %v4420_v61 }
 0x153   :  { %535 = vmatpush.bf16.msra.mxu3 %v4420_v61  ;;  %967 = vmatpush.bf16.msrb.mxu0 %v4420_v61 }
 0x155   :  { %365 = vmatmul.bf16.gmra.mxu1 %v3887_v32  ;;  %401 = vmatmul.bf16.gmra.mxu2 %v3889_v33 }
 0x156   :  { %464 = vmatpush.bf16.msra.mxu1 %v4430_v4  ;;  %500 = vmatpush.bf16.msra.mxu2 %v4430_v4 }
 0x157   :  { %536 = vmatpush.bf16.msra.mxu3 %v4430_v4  ;;  %968 = vmatpush.bf16.msrb.mxu0 %v4430_v4 }
 0x158   :  { %437 = vmatmul.bf16.gmra.mxu3 %v3891_v34  ;;  %833 = vmatmul.bf16.gmra.mxu0 %v3913_v35 }
 0x15a   :  { %465 = vmatpush.bf16.msra.mxu1 %v4440_v13  ;;  %501 = vmatpush.bf16.msra.mxu2 %v4440_v13 }
 0x15b   :  { %537 = vmatpush.bf16.msra.mxu3 %v4440_v13  ;;  %969 = vmatpush.bf16.msrb.mxu0 %v4440_v13 }
 0x15e   :  { %466 = vmatpush.bf16.msra.mxu1 %v4446_v10  ;;  %502 = vmatpush.bf16.msra.mxu2 %v4446_v10 }
 0x15f   :  { %538 = vmatpush.bf16.msra.mxu3 %v4446_v10  ;;  %970 = vmatpush.bf16.msrb.mxu0 %v4446_v10 }
 0x162   :  { %467 = vmatpush.bf16.msra.mxu1 %v4452_v19  ;;  %503 = vmatpush.bf16.msra.mxu2 %v4452_v19 }
 0x163   :  { %539 = vmatpush.bf16.msra.mxu3 %v4452_v19  ;;  %971 = vmatpush.bf16.msrb.mxu0 %v4452_v19 }
 0x165   :  { %468 = vmatmul.bf16.vlgmr.msra.gmra.mxu1 %v3892_v36  ;;  %504 = vmatmul.bf16.vlgmr.msra.gmra.mxu2 %v3894_v37 }
 0x166   :  { %568 = vmatpush.bf16.msrb.mxu1 %v4395_v40  ;;  %604 = vmatpush.bf16.msrb.mxu2 %v4395_v40 }
 0x167   :  { %640 = vmatpush.bf16.msrb.mxu3 %v4395_v40  ;;  %1108 = vmatpush.bf16.msra.mxu0 %v4395_v40 }
 0x168   :  { %540 = vmatmul.bf16.vlgmr.msra.gmra.mxu3 %v3896_v38  ;;  %972 = vmatmul.bf16.vlgmr.msrb.gmra.mxu0 %v3920_v39 }
 0x16a   :  { %569 = vmatpush.bf16.msrb.mxu1 %v4403_v47  ;;  %605 = vmatpush.bf16.msrb.mxu2 %v4403_v47 }
 0x16b   :  { %641 = vmatpush.bf16.msrb.mxu3 %v4403_v47  ;;  %1109 = vmatpush.bf16.msra.mxu0 %v4403_v47 }
 0x16e   :  { %570 = vmatpush.bf16.msrb.mxu1 %v4411_v54  ;;  %606 = vmatpush.bf16.msrb.mxu2 %v4411_v54 }
 0x16f   :  { %642 = vmatpush.bf16.msrb.mxu3 %v4411_v54  ;;  %1110 = vmatpush.bf16.msra.mxu0 %v4411_v54 }
 0x172   :  { %571 = vmatpush.bf16.msrb.mxu1 %v4420_v61  ;;  %607 = vmatpush.bf16.msrb.mxu2 %v4420_v61 }
 0x173   :  { %643 = vmatpush.bf16.msrb.mxu3 %v4420_v61  ;;  %1111 = vmatpush.bf16.msra.mxu0 %v4420_v61 }
 0x175   :  { %473 = vmatmul.bf16.gmra.mxu1 %v3893_v41  ;;  %509 = vmatmul.bf16.gmra.mxu2 %v3895_v42  ;;  %v3922_v41 = vld [vmem:[%s5524_s3 + $0x150] sm:$0xff] }
 0x176   :  { %572 = vmatpush.bf16.msrb.mxu1 %v4430_v4  ;;  %608 = vmatpush.bf16.msrb.mxu2 %v4430_v4 }
 0x177   :  { %644 = vmatpush.bf16.msrb.mxu3 %v4430_v4  ;;  %1112 = vmatpush.bf16.msra.mxu0 %v4430_v4 }
 0x178   :  { %545 = vmatmul.bf16.gmra.mxu3 %v3897_v43  ;;  %977 = vmatmul.bf16.gmra.mxu0 %v3921_v51  ;;  %v3924_v43 = vld [vmem:[%s5524_s3 + $0x160] sm:$0xff] }
 0x17a   :  { %573 = vmatpush.bf16.msrb.mxu1 %v4440_v13  ;;  %609 = vmatpush.bf16.msrb.mxu2 %v4440_v13 }
 0x17b   :  { %645 = vmatpush.bf16.msrb.mxu3 %v4440_v13  ;;  %1113 = vmatpush.bf16.msra.mxu0 %v4440_v13 }
 0x17e   :  { %574 = vmatpush.bf16.msrb.mxu1 %v4446_v10  ;;  %610 = vmatpush.bf16.msrb.mxu2 %v4446_v10 }
 0x17f   :  { %646 = vmatpush.bf16.msrb.mxu3 %v4446_v10  ;;  %1114 = vmatpush.bf16.msra.mxu0 %v4446_v10 }
 0x182   :  { %575 = vmatpush.bf16.msrb.mxu1 %v4452_v19  ;;  %611 = vmatpush.bf16.msrb.mxu2 %v4452_v19 }
 0x183   :  { %647 = vmatpush.bf16.msrb.mxu3 %v4452_v19  ;;  %1115 = vmatpush.bf16.msra.mxu0 %v4452_v19 }
 0x185   :  { %576 = vmatmul.bf16.vlgmr.msrb.gmra.mxu1 %v3898_v44  ;;  %612 = vmatmul.bf16.vlgmr.msrb.gmra.mxu2 %v3900_v45  ;;  %v3926_v44 = vld [vmem:[%s5524_s3 + $0x170] sm:$0xff] }
 0x186   :  { %712 = vmatpush.bf16.msra.mxu1 %v4395_v40  ;;  %748 = vmatpush.bf16.msra.mxu2 %v4395_v40 }
 0x187   :  { %784 = vmatpush.bf16.msra.mxu3 %v4395_v40 }
 0x188   :  { %648 = vmatmul.bf16.vlgmr.msrb.gmra.mxu3 %v3902_v46 }
 0x18a   :  { %713 = vmatpush.bf16.msra.mxu1 %v4403_v47  ;;  %749 = vmatpush.bf16.msra.mxu2 %v4403_v47 }
 0x18b   :  { %785 = vmatpush.bf16.msra.mxu3 %v4403_v47 }
 0x18e   :  { %714 = vmatpush.bf16.msra.mxu1 %v4411_v54  ;;  %750 = vmatpush.bf16.msra.mxu2 %v4411_v54 }
 0x18f   :  { %786 = vmatpush.bf16.msra.mxu3 %v4411_v54 }
 0x192   :  { %715 = vmatpush.bf16.msra.mxu1 %v4420_v61  ;;  %751 = vmatpush.bf16.msra.mxu2 %v4420_v61 }
 0x193   :  { %787 = vmatpush.bf16.msra.mxu3 %v4420_v61 }
 0x195   :  { %581 = vmatmul.bf16.gmra.mxu1 %v3899_v48  ;;  %617 = vmatmul.bf16.gmra.mxu2 %v3901_v49 }
 0x196   :  { %716 = vmatpush.bf16.msra.mxu1 %v4430_v4  ;;  %752 = vmatpush.bf16.msra.mxu2 %v4430_v4 }
 0x197   :  { %788 = vmatpush.bf16.msra.mxu3 %v4430_v4 }
 0x198   :  { %653 = vmatmul.bf16.gmra.mxu3 %v3903_v50 }
 0x19a   :  { %717 = vmatpush.bf16.msra.mxu1 %v4440_v13  ;;  %753 = vmatpush.bf16.msra.mxu2 %v4440_v13 }
 0x19b   :  { %789 = vmatpush.bf16.msra.mxu3 %v4440_v13 }
 0x19e   :  { %718 = vmatpush.bf16.msra.mxu1 %v4446_v10  ;;  %754 = vmatpush.bf16.msra.mxu2 %v4446_v10 }
 0x19f   :  { %790 = vmatpush.bf16.msra.mxu3 %v4446_v10 }
 0x1a2   :  { %719 = vmatpush.bf16.msra.mxu1 %v4452_v19  ;;  %755 = vmatpush.bf16.msra.mxu2 %v4452_v19  ;;  %v4674_v52 = vpop.f32.mrf.mxu1 }
 0x1a3   :  { %791 = vmatpush.bf16.msra.mxu3 %v4452_v19 }
 0x1a5   :  { %v4677_v53 = vpop.f32.mrf.mxu0  ;;  %720 = vmatmul.bf16.vlgmr.msra.gmra.mxu1 %v3906_v55  ;;  %756 = vmatmul.bf16.vlgmr.msra.gmra.mxu2 %v3908_v56 }
 0x1a6   :  { %856 = vmatpush.bf16.msrb.mxu1 %v4395_v40  ;;  %892 = vmatpush.bf16.msrb.mxu2 %v4395_v40 }
 0x1a7   :  { %928 = vmatpush.bf16.msrb.mxu3 %v4395_v40 }
 0x1a8   :  { %v289_v58 = vpop.f32.mrf.mxu2  ;;  %792 = vmatmul.bf16.vlgmr.msra.gmra.mxu3 %v3910_v57  ;;  %v3923_v57 = vld [vmem:[%s5524_s3 + $0x158] sm:$0xff] }
 0x1aa   :  { %857 = vmatpush.bf16.msrb.mxu1 %v4403_v47  ;;  %893 = vmatpush.bf16.msrb.mxu2 %v4403_v47  ;;  %v4693_v60 = vpop.f32.mrf.mxu1 }
 0x1ab   :  { %929 = vmatpush.bf16.msrb.mxu3 %v4403_v47  ;;  %v325_v59 = vpop.f32.mrf.mxu3 }
 0x1ad   :  { %v4696_v62 = vpop.f32.mrf.mxu0 }
 0x1ae   :  { %858 = vmatpush.bf16.msrb.mxu1 %v4411_v54  ;;  %894 = vmatpush.bf16.msrb.mxu2 %v4411_v54  ;;  %v4031_v35 = vpack.i.bf16 %v4696_v62, %v4677_v53 }
 0x1af   :  { %930 = vmatpush.bf16.msrb.mxu3 %v4411_v54 }
 0x1b0   :  { %v291_v63 = vpop.f32.mrf.mxu2  ;;  %4032 = vrot.lane.b32.xlu1 %v4031_v35, %s4295_s30 }
 0x1b1   :  { %v4036_v1 = vpack.i.bf16 %v291_v63, %v289_v58  ;;  %v3925_v58 = vld [vmem:[%s5524_s3 + $0x168] sm:$0xff] }
 0x1b2   :  { %859 = vmatpush.bf16.msrb.mxu1 %v4420_v61  ;;  %895 = vmatpush.bf16.msrb.mxu2 %v4420_v61  ;;  %v4703_v2 = vpop.f32.mrf.mxu1 }
 0x1b3   :  { %931 = vmatpush.bf16.msrb.mxu3 %v4420_v61  ;;  %v327_v0 = vpop.f32.mrf.mxu3  ;;  %4037 = vrot.lane.b32.xlu0 %v4036_v1, %s4292_s10 }
 0x1b4   :  { %v4041_v12 = vpack.i.bf16 %v327_v0, %v325_v59  ;;  %v3927_v59 = vld [vmem:[%s5524_s3 + $0x178] sm:$0xff] }
 0x1b5   :  { %v4706_v3 = vpop.f32.mrf.mxu0  ;;  %725 = vmatmul.bf16.gmra.mxu1 %v3907_v5  ;;  %761 = vmatmul.bf16.gmra.mxu2 %v3909_v6 }
 0x1b6   :  { %860 = vmatpush.bf16.msrb.mxu1 %v4430_v4  ;;  %896 = vmatpush.bf16.msrb.mxu2 %v4430_v4 }
 0x1b7   :  { %932 = vmatpush.bf16.msrb.mxu3 %v4430_v4 }
 0x1b8   :  { %v294_v8 = vpop.f32.mrf.mxu2  ;;  %797 = vmatmul.bf16.gmra.mxu3 %v3911_v7 }
 0x1ba   :  { %861 = vmatpush.bf16.msrb.mxu1 %v4440_v13  ;;  %897 = vmatpush.bf16.msrb.mxu2 %v4440_v13  ;;  %v4726_v11 = vpop.f32.mrf.mxu1 }
 0x1bb   :  { %933 = vmatpush.bf16.msrb.mxu3 %v4440_v13  ;;  %v330_v9 = vpop.f32.mrf.mxu3  ;;  %4042 = vrot.lane.b32.xlu0 %v4041_v12, %s4293_s0 }
 0x1bd   :  { %v4728_v14 = vpop.f32.mrf.mxu0 }
 0x1be   :  { %862 = vmatpush.bf16.msrb.mxu1 %v4446_v10  ;;  %898 = vmatpush.bf16.msrb.mxu2 %v4446_v10  ;;  %v4046_v37 = vpack.i.bf16 %v4728_v14, %v4706_v3 }
 0x1bf   :  { %934 = vmatpush.bf16.msrb.mxu3 %v4446_v10 }
 0x1c0   :  { %v296_v15 = vpop.f32.mrf.mxu2  ;;  %4047 = vrot.lane.b32.xlu1 %v4046_v37, %s4295_s30 }
 0x1c2   :  { %863 = vmatpush.bf16.msrb.mxu1 %v4452_v19  ;;  %899 = vmatpush.bf16.msrb.mxu2 %v4452_v19  ;;  %v361_v18 = vpop.f32.mrf.mxu1 }
 0x1c3   :  { %935 = vmatpush.bf16.msrb.mxu3 %v4452_v19  ;;  %v332_v16 = vpop.f32.mrf.mxu3 }
 0x1c4   :  { %v4056_v17 = vpack.i.bf16 %v332_v16, %v330_v9 }
 0x1c5   :  { %v4740_v20 = vpop.f32.mrf.mxu0 }
 0x1c6   :  { %1000 = vmatpush.bf16.msra.mxu1 %v4395_v40  ;;  %1036 = vmatpush.bf16.msra.mxu2 %v4395_v40 }
 0x1c7   :  { %1072 = vmatpush.bf16.msra.mxu3 %v4395_v40  ;;  %v4051_v40 = vpack.i.bf16 %v296_v15, %v294_v8  ;;  %4057 = vrot.lane.b32.xlu2 %v4056_v17, %s4293_s0 }
 0x1c8   :  { %936 = vmatmul.bf16.vlgmr.msrb.gmra.mxu3 %v3918_v21 }
 0x1c9   :  { %4052 = vrot.lane.b32.xlu0 %v4051_v40, %s4292_s10 }
 0x1ca   :  { %1001 = vmatpush.bf16.msra.mxu1 %v4403_v47  ;;  %1037 = vmatpush.bf16.msra.mxu2 %v4403_v47  ;;  %v363_v23 = vpop.f32.mrf.mxu1 }
 0x1cb   :  { %1073 = vmatpush.bf16.msra.mxu3 %v4403_v47  ;;  %v3914_v47 = vld [vmem:[%s5524_s3 + $0x110] sm:$0xff]  ;;  %v433_v22 = vpop.f32.mrf.mxu3  ;;  %v4061_v24 = vpack.i.bf16 %v363_v23, %v361_v18 }
 0x1cc   :  { %864 = vmatmul.bf16.vlgmr.msrb.gmra.mxu1 %v3914_v47 }
 0x1cd   :  { %v4758_v25 = vpop.f32.mrf.mxu0 }
 0x1ce   :  { %1002 = vmatpush.bf16.msra.mxu1 %v4411_v54  ;;  %1038 = vmatpush.bf16.msra.mxu2 %v4411_v54 }
 0x1cf   :  { %1074 = vmatpush.bf16.msra.mxu3 %v4411_v54  ;;  %v3916_v54 = vld [vmem:[%s5524_s3 + $0x120] sm:$0xff] }
 0x1d0   :  { %900 = vmatmul.bf16.vlgmr.msrb.gmra.mxu2 %v3916_v54 }
 0x1d1   :  { %4062 = vrot.lane.b32.xlu0 %v4061_v24, %s4294_s23 }
 0x1d2   :  { %1003 = vmatpush.bf16.msra.mxu1 %v4420_v61  ;;  %1039 = vmatpush.bf16.msra.mxu2 %v4420_v61  ;;  %v4766_v27 = vpop.f32.mrf.mxu1 }
 0x1d3   :  { %1075 = vmatpush.bf16.msra.mxu3 %v4420_v61  ;;  %v397_v61 = vpop.f32.mrf.mxu2  ;;  %v435_v26 = vpop.f32.mrf.mxu3 }
 0x1d4   :  { %v4071_v33 = vpack.i.bf16 %v435_v26, %v433_v22  ;;  %v3937_v26 = vld [vmem:[%s5521_s2 + $0x48] sm:$0xff] }
 0x1d5   :  { %v4769_v29 = vpop.f32.mrf.mxu0 }
 0x1d6   :  { %1004 = vmatpush.bf16.msra.mxu1 %v4430_v4  ;;  %1040 = vmatpush.bf16.msra.mxu2 %v4430_v4 }
 0x1d7   :  { %1076 = vmatpush.bf16.msra.mxu3 %v4430_v4 }
 0x1d8   :  { %941 = vmatmul.bf16.gmra.mxu3 %v3919_v30 }
 0x1da   :  { %1005 = vmatpush.bf16.msra.mxu1 %v4440_v13  ;;  %1041 = vmatpush.bf16.msra.mxu2 %v4440_v13  ;;  %v4786_v32 = vpop.f32.mrf.mxu1 }
 0x1db   :  { %1077 = vmatpush.bf16.msra.mxu3 %v4440_v13  ;;  %v399_v4 = vpop.f32.mrf.mxu2  ;;  %v3915_v13 = vld [vmem:[%s5524_s3 + $0x118] sm:$0xff] }
 0x1dc   :  { %v4066_v28 = vpack.i.bf16 %v399_v4, %v397_v61  ;;  %869 = vmatmul.bf16.gmra.mxu1 %v3915_v13 }
 0x1dd   :  { %v4788_v34 = vpop.f32.mrf.mxu0 }
 0x1de   :  { %1006 = vmatpush.bf16.msra.mxu1 %v4446_v10  ;;  %1042 = vmatpush.bf16.msra.mxu2 %v4446_v10 }
 0x1df   :  { %1078 = vmatpush.bf16.msra.mxu3 %v4446_v10  ;;  %v3917_v10 = vld [vmem:[%s5524_s3 + $0x128] sm:$0xff]  ;;  %4067 = vrot.lane.b32.xlu0 %v4066_v28, %s4295_s30 }
 0x1e0   :  { %905 = vmatmul.bf16.gmra.mxu2 %v3917_v10 }
 0x1e2   :  { %1007 = vmatpush.bf16.msra.mxu1 %v4452_v19  ;;  %1043 = vmatpush.bf16.msra.mxu2 %v4452_v19  ;;  %v469_v39 = vpop.f32.mrf.mxu1 }
 0x1e3   :  { %1079 = vmatpush.bf16.msra.mxu3 %v4452_v19  ;;  %v4782_v31 = vpop.f32.mrf.mxu2  ;;  %v4784_v19 = vpop.f32.mrf.mxu3 }
 0x1e5   :  { %v973_v42 = vpop.f32.mrf.mxu0 }
 0x1e6   :  { %1768 = vmatpush.bf16.msrb.mxu1 %v3937_v26 }
 0x1e7   :  { %4072 = vrot.lane.b32.xlu0 %v4071_v33, %s4296_s7 }
 0x1e8   :  { %1080 = vmatmul.bf16.vlgmr.msra.gmra.mxu3 %v3926_v44 }
 0x1ea   :  { %v471_v48 = vpop.f32.mrf.mxu1 }
 0x1eb   :  { %v4794_v36 = vpop.f32.mrf.mxu2  ;;  %v4798_v38 = vpop.f32.mrf.mxu3  ;;  %v4081_v49 = vpack.i.bf16 %v471_v48, %v469_v39  ;;  %v3936_v39 = vld [vmem:[%s5521_s2 + $0x40] sm:$0xff] }
 0x1ec   :  { %1008 = vmatmul.bf16.vlgmr.msra.gmra.mxu1 %v3922_v41  ;;  %v3935_v41 = vld [vmem:[%s5521_s2 + $0x38] sm:$0xff] }
 0x1ed   :  { %v975_v50 = vpop.f32.mrf.mxu0  ;;  %1769 = vmatpush.bf16.msrb.mxu1 %v3936_v39 }
 0x1ee   :  { %v4076_v51 = vpack.i.bf16 %v975_v50, %v973_v42 }
 0x1ef   :  { %4082 = vrot.lane.b32.xlu0 %v4081_v49, %s4297_s15 }
 0x1f0   :  { %1044 = vmatmul.bf16.vlgmr.msra.gmra.mxu2 %v3924_v43  ;;  %4077 = vrot.lane.b32.xlu2 %v4076_v51, %s4295_s30  ;;  %v4141_v43 = vpack.i.bf16 %v4786_v32, %v4766_v27 }
 0x1f1   :  { %1770 = vmatpush.bf16.msrb.mxu1 %v3935_v41 }
 0x1f2   :  { %v4816_v56 = vpop.f32.mrf.mxu1 }
 0x1f3   :  { %v505_v45 = vpop.f32.mrf.mxu2  ;;  %v4810_v46 = vpop.f32.mrf.mxu3 }
 0x1f5   :  { %v978_v37 = vpop.f32.mrf.mxu0 }
 0x1f8   :  { %1085 = vmatmul.bf16.gmra.mxu3 %v3927_v59 }
 0x1fa   :  { %v4832_v1 = vpop.f32.mrf.mxu1 }
 0x1fb   :  { %v507_v53 = vpop.f32.mrf.mxu2  ;;  %v4814_v55 = vpop.f32.mrf.mxu3 }
 0x1fc   :  { %v4086_v62 = vpack.i.bf16 %v507_v53, %v505_v45  ;;  %1013 = vmatmul.bf16.gmra.mxu1 %v3923_v57  ;;  %v3934_v53 = vld [vmem:[%s5521_s2 + $0x30] sm:$0xff] }
 0x1fd   :  { %v980_v59 = vpop.f32.mrf.mxu0  ;;  %1771 = vmatpush.bf16.msrb.mxu1 %v3934_v53 }
 0x1fe   :  { %4087 = vrot.lane.b32.xlu2 %v4086_v62, %s4298_s22  ;;  %v3933_v62 = vld [vmem:[%s5521_s2 + $0x28] sm:$0xff] }
 0x200   :  { %1049 = vmatmul.bf16.gmra.mxu2 %v3925_v58 }
 0x201   :  { %1772 = vmatpush.bf16.msrb.mxu1 %v3933_v62 }
 0x202   :  { %v577_v6 = vpop.f32.mrf.mxu1 }
 0x203   :  { %v4828_v63 = vpop.f32.mrf.mxu2  ;;  %v4830_v0 = vpop.f32.mrf.mxu3 }
 0x20a   :  { %v579_v9 = vpop.f32.mrf.mxu1 }
 0x20b   :  { %v4834_v3 = vpop.f32.mrf.mxu2  ;;  %v4836_v5 = vpop.f32.mrf.mxu3  ;;  %v4091_v12 = vpack.i.bf16 %v579_v9, %v577_v6 }
 0x20d   :  { %4092 = vrot.lane.b32.xlu0 %v4091_v12, %s4292_s10  ;;  %v4136_v12 = vpack.i.bf16 %v980_v59, %v978_v37 }
 0x212   :  { %v582_v40 = vpop.f32.mrf.mxu1 }
 0x213   :  { %v613_v7 = vpop.f32.mrf.mxu2  ;;  %v649_v8 = vpop.f32.mrf.mxu3 }
 0x21a   :  { %v584_v54 = vpop.f32.mrf.mxu1 }
 0x21b   :  { %v615_v14 = vpop.f32.mrf.mxu2  ;;  %v651_v15 = vpop.f32.mrf.mxu3  ;;  %v4106_v21 = vpack.i.bf16 %v584_v54, %v582_v40 }
 0x21c   :  { %v4096_v16 = vpack.i.bf16 %v615_v14, %v613_v7  ;;  %v4101_v17 = vpack.i.bf16 %v651_v15, %v649_v8 }
 0x21e   :  { %4102 = vrot.lane.b32.xlu1 %v4101_v17, %s4294_s23  ;;  %4097 = vrot.lane.b32.xlu0 %v4096_v16, %s4293_s0  ;;  %v3932_v16 = vld [vmem:[%s5521_s2 + $0x20] sm:$0xff] }
 0x21f   :  { %1773 = vmatpush.bf16.msrb.mxu1 %v3932_v16 }
 0x221   :  { %v4058_v45 = vpop.permute.xlu2 %4057 }
 0x222   :  { %v721_v24 = vpop.f32.mrf.mxu1  ;;  %v4060_v27 = vunpack.i.h.bf16 %v4058_v45  ;;  %v4059_v32 = vunpack.i.l.bf16 %v4058_v45 }
 0x223   :  { %v618_v18 = vpop.f32.mrf.mxu2  ;;  %v654_v47 = vpop.f32.mrf.mxu3 }
 0x225   :  { %v4842_v4 = vpop.permute.xlu0 %4037 }
 0x226   :  { %4107 = vrot.lane.b32.xlu1 %v4106_v21, %s4292_s10 }
 0x22a   :  { %v723_v30 = vpop.f32.mrf.mxu1 }
 0x22b   :  { %v620_v61 = vpop.f32.mrf.mxu2  ;;  %v656_v22 = vpop.f32.mrf.mxu3  ;;  %v4121_v33 = vpack.i.bf16 %v723_v30, %v721_v24 }
 0x22c   :  { %v4111_v23 = vpack.i.bf16 %v620_v61, %v618_v18  ;;  %v4116_v13 = vpack.i.bf16 %v656_v22, %v654_v47  ;;  %v3930_v22 = vld [vmem:[%s5521_s2 + $0x10] sm:$0xff] }
 0x22d   :  { %v4848_v35 = vpop.permute.xlu0 %4042  ;;  %4122 = vrot.lane.b32.xlu2 %v4121_v33, %s4296_s7  ;;  %v3929_v33 = vld [vmem:[%s5524_s3 + $0x188] sm:$0xff] }
 0x22e   :  { %4112 = vrot.lane.b32.xlu1 %v4111_v23, %s4293_s0  ;;  %v4045_v45 = vunpack.i.h.bf16 %v4848_v35 }
 0x232   :  { %v726_v50 = vpop.f32.mrf.mxu1 }
 0x233   :  { %v757_v28 = vpop.f32.mrf.mxu2  ;;  %v793_v10 = vpop.f32.mrf.mxu3 }
 0x236   :  { %4117 = vrot.lane.b32.xlu1 %v4116_v13, %s4294_s23 }
 0x23a   :  { %v728_v40 = vpop.f32.mrf.mxu1 }
 0x23b   :  { %v759_v42 = vpop.f32.mrf.mxu2  ;;  %v795_v44 = vpop.f32.mrf.mxu3  ;;  %v4146_v17 = vpack.i.bf16 %v728_v40, %v726_v50 }
 0x23c   :  { %v4126_v48 = vpack.i.bf16 %v759_v42, %v757_v28  ;;  %v4131_v49 = vpack.i.bf16 %v795_v44, %v793_v10  ;;  %v4053_v51 = vpop.permute.xlu0 %4052  ;;  %v4161_v28 = vpack.i.bf16 %v4794_v36, %v4782_v31  ;;  %v4040_v31 = vunpack.i.h.bf16 %v4842_v4 }
 0x23d   :  { %v4055_v57 = vunpack.i.h.bf16 %v4053_v51  ;;  %v4054_v58 = vunpack.i.l.bf16 %v4053_v51  ;;  %v4039_v36 = vunpack.i.l.bf16 %v4842_v4 }
 0x23e   :  { %4142 = vrot.lane.b32.xlu1 %v4141_v43, %s4294_s23  ;;  %4132 = vrot.lane.b32.xlu0 %v4131_v49, %s4298_s22  ;;  %v1353_v53 = vsel %vm1351_vm2, %v4693_v60, %v4040_v31 }
 0x23f   :  { %4127 = vrot.lane.b32.xlu2 %v4126_v48, %s4297_s15  ;;  %v1354_v6 = vsel %vm1351_vm2, %v4703_v2, %v4054_v58  ;;  %v1355_v7 = vsel %vm1351_vm2, %v4726_v11, %v4055_v57  ;;  %v3928_v2 = vld [vmem:[%s5524_s3 + $0x180] sm:$0xff]  ;;  %v3931_v11 = vld [vmem:[%s5521_s2 + $0x18] sm:$0xff]  ;;  %v4044_v48 = vunpack.i.l.bf16 %v4848_v35  ;;  %v1352_v51 = vsel %vm1351_vm2, %v4674_v52, %v4039_v36 }
 0x240   :  { %v4874_v8 = vsel %vm98_vm0, %v1354_v6, %v4059_v32  ;;  %v4877_v9 = vsel %vm98_vm0, %v1355_v7, %v4060_v27  ;;  %1116 = vmatmul.bf16.vlgmr.msra.gmra.mxu0 %v3928_v2  ;;  %1774 = vmatpush.bf16.msrb.mxu1 %v3931_v11  ;;  %v1357_v7 = vsel %vm98_vm0, %v1353_v53, %v4045_v45  ;;  %v3943_v45 = vld [vmem:[%s5521_s2 + $0x78] sm:$0xff] }
 0x241   :  { %v1356_v35 = vsel %vm98_vm0, %v1352_v51, %v4044_v48  ;;  %v4939_v48 = vpop.permute.xlu1 %4032 }
 0x243   :  { %v762_v14 = vpop.f32.mrf.mxu2  ;;  %v798_v15 = vpop.f32.mrf.mxu3 }
 0x244   :  { %v4063_v18 = vpop.permute.xlu0 %4062  ;;  %1775 = vmatpush.bf16.msrb.mxu1 %v3930_v22 }
 0x245   :  { %v4065_v49 = vunpack.i.h.bf16 %v4063_v18  ;;  %v4064_v50 = vunpack.i.l.bf16 %v4063_v18 }
 0x246   :  { %4137 = vrot.lane.b32.xlu0 %v4136_v12, %s4295_s30  ;;  %4147 = vrot.lane.b32.xlu1 %v4146_v17, %s4296_s7 }
 0x247   :  { %v1362_v52 = vsel %vm1360_vm3, %v1357_v7, %v4065_v49  ;;  %v1361_v60 = vsel %vm1360_vm3, %v1356_v35, %v4064_v50  ;;  %v3942_v50 = vld [vmem:[%s5521_s2 + $0x70] sm:$0xff] }
 0x249   :  { %v865_v61 = vpop.f32.mrf.mxu1 }
 0x24a   :  { %v4902_v37 = vpop.permute.xlu2 %4077 }
 0x24b   :  { %v764_v47 = vpop.f32.mrf.mxu2  ;;  %v800_v54 = vpop.f32.mrf.mxu3 }
 0x24c   :  { %v4156_v21 = vpack.i.bf16 %v800_v54, %v798_v15  ;;  %v4151_v23 = vpack.i.bf16 %v764_v47, %v762_v14 }
 0x24e   :  { %4157 = vrot.lane.b32.xlu0 %v4156_v21, %s4298_s22  ;;  %4152 = vrot.lane.b32.xlu1 %v4151_v23, %s4297_s15 }
 0x250   :  { %1121 = vmatmul.bf16.gmra.mxu0 %v3929_v33 }
 0x251   :  { %v4068_v13 = vpop.permute.xlu0 %4067  ;;  %v867_v10 = vpop.f32.mrf.mxu1 }
 0x252   :  { %v4166_v30 = vpack.i.bf16 %v867_v10, %v865_v61  ;;  %v4070_v57 = vunpack.i.h.bf16 %v4068_v13  ;;  %v4069_v58 = vunpack.i.l.bf16 %v4068_v13 }
 0x253   :  { %v901_v24 = vpop.f32.mrf.mxu2  ;;  %v937_v26 = vpop.f32.mrf.mxu3 }
 0x254   :  { %v1366_v40 = vsel %vm1365_vm4, %v1361_v60, %v4069_v58  ;;  %v1367_v16 = vsel %vm1365_vm4, %v1362_v52, %v4070_v57  ;;  %v3941_v57 = vld [vmem:[%s5521_s2 + $0x68] sm:$0xff]  ;;  %v4948_v58 = vpop.permute.xlu1 %4047  ;;  %v3938_v60 = vld [vmem:[%s5521_s2 + $0x50] sm:$0xff] }
 0x256   :  { %4162 = vrot.lane.b32.xlu0 %v4161_v28, %s4295_s30  ;;  %4167 = vrot.lane.b32.xlu1 %v4166_v30, %s4292_s10 }
 0x258   :  { %v4088_v12 = vpop.permute.xlu2 %4087 }
 0x259   :  { %v870_v43 = vpop.f32.mrf.mxu1  ;;  %v4073_v44 = vpop.permute.xlu0 %4072  ;;  %v4090_v11 = vunpack.i.h.bf16 %v4088_v12  ;;  %v4089_v18 = vunpack.i.l.bf16 %v4088_v12  ;;  %v4211_v12 = vpack.i.bf16 %v4798_v38, %v4784_v19  ;;  %v4236_v38 = vpack.i.bf16 %v4834_v3, %v4828_v63  ;;  %v3953_v3 = vld [vmem:[%s5521_s2 + $0xc8] sm:$0xff] }
 0x25a   :  { %v4075_v59 = vunpack.i.h.bf16 %v4073_v44  ;;  %v4074_v4 = vunpack.i.l.bf16 %v4073_v44  ;;  %v3944_v44 = vld [vmem:[%s5521_s2 + $0x80] sm:$0xff]  ;;  %1806 = vmatpush.bf16.msrb.mxu3 %v3953_v3 }
 0x25b   :  { %v903_v39 = vpop.f32.mrf.mxu2  ;;  %v939_v41 = vpop.f32.mrf.mxu3 }
 0x25c   :  { %v4171_v42 = vpack.i.bf16 %v903_v39, %v901_v24  ;;  %v4176_v62 = vpack.i.bf16 %v939_v41, %v937_v26  ;;  %v1371_v47 = vsel %vm1370_vm5, %v1366_v40, %v4074_v4  ;;  %v1372_v54 = vsel %vm1370_vm5, %v1367_v16, %v4075_v59  ;;  %v3940_v59 = vld [vmem:[%s5521_s2 + $0x60] sm:$0xff] }
 0x25d   :  { %v4231_v40 = vpack.i.bf16 %v4832_v1, %v4816_v56 }
 0x25e   :  { %4172 = vrot.lane.b32.xlu2 %v4171_v42, %s4293_s0 }
 0x261   :  { %v872_v6 = vpop.f32.mrf.mxu1  ;;  %v4083_v15 = vpop.permute.xlu0 %4082 }
 0x262   :  { %v4181_v14 = vpack.i.bf16 %v872_v6, %v870_v43  ;;  %v4085_v17 = vunpack.i.h.bf16 %v4083_v15  ;;  %v4084_v2 = vunpack.i.l.bf16 %v4083_v15  ;;  %v3945_v43 = vld [vmem:[%s5521_s2 + $0x88] sm:$0xff]  ;;  %v3939_v6 = vld [vmem:[%s5521_s2 + $0x58] sm:$0xff] }
 0x263   :  { %v906_v27 = vpop.f32.mrf.mxu2  ;;  %v942_v32 = vpop.f32.mrf.mxu3  ;;  %1787 = vmatpush.bf16.msrb.mxu2 %v3945_v43 }
 0x264   :  { %4182 = vrot.lane.b32.xlu1 %v4181_v14, %s4292_s10  ;;  %v1377_v21 = vsel %vm1375_vm6, %v1372_v54, %v4085_v17  ;;  %v1376_v61 = vsel %vm1375_vm6, %v1371_v47, %v4084_v2 }
 0x265   :  { %v1382_v22 = vsel %vm1380_vm7, %v1377_v21, %v4090_v11  ;;  %v1381_v23 = vsel %vm1380_vm7, %v1376_v61, %v4089_v18 }
 0x266   :  { %4177 = vrot.lane.b32.xlu2 %v4176_v62, %s4294_s23  ;;  %v1553_v24 = vpack.c.bf16 %v1382_v22, %v1381_v23 }
 0x267   :  { %1788 = vmatpush.bf16.msrb.mxu2 %v3944_v44  ;;  %v3951_v44 = vld [vmem:[%s5521_s2 + $0xb8] sm:$0xff] }
 0x268   :  { %1776 = vmatmul.bf16.vlgmr.msrb.gmra.mxu1 %v1553_v24 }
 0x269   :  { %v1009_v10 = vpop.f32.mrf.mxu1 }
 0x26b   :  { %v908_v26 = vpop.f32.mrf.mxu2  ;;  %v944_v28 = vpop.f32.mrf.mxu3  ;;  %1789 = vmatpush.bf16.msrb.mxu2 %v3943_v45 }
 0x26c   :  { %v4186_v13 = vpack.i.bf16 %v908_v26, %v906_v27  ;;  %v4191_v30 = vpack.i.bf16 %v944_v28, %v942_v32 }
 0x26e   :  { %4187 = vrot.lane.b32.xlu2 %v4186_v13, %s4293_s0  ;;  %4192 = vrot.lane.b32.xlu1 %v4191_v30, %s4294_s23  ;;  %v4035_v13 = vunpack.i.h.bf16 %v4939_v48 }
 0x26f   :  { %1790 = vmatpush.bf16.msrb.mxu2 %v3942_v50 }
 0x271   :  { %v1011_v41 = vpop.f32.mrf.mxu1 }
 0x272   :  { %v4196_v42 = vpack.i.bf16 %v1011_v41, %v1009_v10  ;;  %v3952_v10 = vld [vmem:[%s5521_s2 + $0xc0] sm:$0xff] }
 0x273   :  { %v1045_v33 = vpop.f32.mrf.mxu2  ;;  %v1081_v39 = vpop.f32.mrf.mxu3  ;;  %1791 = vmatpush.bf16.msrb.mxu2 %v3941_v57  ;;  %1807 = vmatpush.bf16.msrb.mxu3 %v3952_v10 }
 0x276   :  { %4197 = vrot.lane.b32.xlu2 %v4196_v42, %s4296_s7 }
 0x277   :  { %1792 = vmatpush.bf16.msrb.mxu2 %v3940_v59  ;;  %1808 = vmatpush.bf16.msrb.mxu3 %v3951_v44 }
 0x279   :  { %v1014_v32 = vpop.f32.mrf.mxu1 }
 0x27b   :  { %v1047_v31 = vpop.f32.mrf.mxu2  ;;  %v1083_v36 = vpop.f32.mrf.mxu3  ;;  %1793 = vmatpush.bf16.msrb.mxu2 %v3939_v6 }
 0x27c   :  { %v4201_v49 = vpack.i.bf16 %v1047_v31, %v1045_v33  ;;  %v4206_v27 = vpack.i.bf16 %v1083_v36, %v1081_v39 }
 0x27e   :  { %4202 = vrot.lane.b32.xlu2 %v4201_v49, %s4297_s15 }
 0x27f   :  { %1794 = vmatpush.bf16.msrb.mxu2 %v3938_v60  ;;  %v4093_v16 = vpop.permute.xlu0 %4092 }
 0x280   :  { %v4095_v18 = vunpack.i.h.bf16 %v4093_v16  ;;  %v4094_v47 = vunpack.i.l.bf16 %v4093_v16 }
 0x281   :  { %v1016_v52 = vpop.f32.mrf.mxu1 }
 0x282   :  { %v4216_v15 = vpack.i.bf16 %v1016_v52, %v1014_v32  ;;  %v1386_v1 = vsel %vm1351_vm2, %v4814_v55, %v4095_v18  ;;  %v1385_v21 = vsel %vm1351_vm2, %v4810_v46, %v4094_v47  ;;  %v4034_v46 = vunpack.i.l.bf16 %v4939_v48 }
 0x283   :  { %v1050_v51 = vpop.f32.mrf.mxu2  ;;  %v1086_v53 = vpop.f32.mrf.mxu3 }
 0x286   :  { %4207 = vrot.lane.b32.xlu2 %v4206_v27, %s4298_s22 }
 0x287   :  { %v4123_v11 = vpop.permute.xlu2 %4122 }
 0x288   :  { %v4125_v30 = vunpack.i.h.bf16 %v4123_v11  ;;  %v4124_v33 = vunpack.i.l.bf16 %v4123_v11 }
 0x28b   :  { %v1052_v4 = vpop.f32.mrf.mxu2  ;;  %v1088_v62 = vpop.f32.mrf.mxu3 }
 0x28c   :  { %v4221_v35 = vpack.i.bf16 %v1052_v4, %v1050_v51  ;;  %v4226_v7 = vpack.i.bf16 %v1088_v62, %v1086_v53 }
 0x28e   :  { %4227 = vrot.lane.b32.xlu0 %v4226_v7, %s4298_s22  ;;  %4222 = vrot.lane.b32.xlu1 %v4221_v35, %s4297_s15  ;;  %v3950_v35 = vld [vmem:[%s5521_s2 + $0xb0] sm:$0xff] }
 0x28f   :  { %4212 = vrot.lane.b32.xlu2 %v4211_v12, %s4296_s7  ;;  %1809 = vmatpush.bf16.msrb.mxu3 %v3950_v35 }
 0x290   :  { %v4103_v14 = vpop.permute.xlu1 %4102  ;;  %v4098_v2 = vpop.permute.xlu0 %4097 }
 0x291   :  { %v4100_v54 = vunpack.i.h.bf16 %v4098_v2  ;;  %v4099_v56 = vunpack.i.l.bf16 %v4098_v2  ;;  %v4105_v23 = vunpack.i.h.bf16 %v4103_v14  ;;  %v4104_v24 = vunpack.i.l.bf16 %v4103_v14 }
 0x293   :  { %v1389_v22 = vsel %vm98_vm0, %v1385_v21, %v4099_v56  ;;  %v1390_v63 = vsel %vm98_vm0, %v1386_v1, %v4100_v54  ;;  %v4049_v21 = vunpack.i.l.bf16 %v4948_v58 }
 0x294   :  { %v1393_v26 = vsel %vm1360_vm3, %v1389_v22, %v4104_v24  ;;  %v1394_v28 = vsel %vm1360_vm3, %v1390_v63, %v4105_v23 }
 0x295   :  { %v1397_v39 = vsel %vm1365_vm4, %v1393_v26, %v4034_v46  ;;  %v1398_v41 = vsel %vm1365_vm4, %v1394_v28, %v4035_v13 }
 0x296   :  { %4232 = vrot.lane.b32.xlu1 %v4231_v40, %s4297_s15  ;;  %v1402_v49 = vsel %vm1370_vm5, %v1398_v41, %v4125_v30  ;;  %v1401_v50 = vsel %vm1370_vm5, %v1397_v39, %v4124_v33 }
 0x297   :  { %4217 = vrot.lane.b32.xlu2 %v4216_v15, %s4296_s7 }
 0x298   :  { %v4968_v19 = vpop.permute.xlu1 %4107 }
 0x299   :  { %v4128_v55 = vpop.permute.xlu2 %4127  ;;  %v4110_v12 = vunpack.i.h.bf16 %v4968_v19  ;;  %v4109_v14 = vunpack.i.l.bf16 %v4968_v19  ;;  %v3947_v19 = vld [vmem:[%s5521_s2 + $0x98] sm:$0xff] }
 0x29a   :  { %v4130_v42 = vunpack.i.h.bf16 %v4128_v55  ;;  %v4129_v43 = vunpack.i.l.bf16 %v4128_v55 }
 0x29b   :  { %v1388_v2 = vsel %vm1351_vm2, %v4836_v5, %v4110_v12  ;;  %v1387_v11 = vsel %vm1351_vm2, %v4830_v0, %v4109_v14  ;;  %v4050_v5 = vunpack.i.h.bf16 %v4948_v58  ;;  %v3946_v58 = vld [vmem:[%s5521_s2 + $0x90] sm:$0xff] }
 0x29c   :  { %v1405_v57 = vsel %vm1375_vm6, %v1401_v50, %v4129_v43  ;;  %v1406_v27 = vsel %vm1375_vm6, %v1402_v49, %v4130_v42  ;;  %v3954_v43 = vld [vmem:[%s5521_s2 + $0xd0] sm:$0xff] }
 0x29d   :  { %1832 = vmatpush.bf16.msrb.mxu0 %v3954_v43  ;;  %4021 = vmatpush.bf16.msra.mxu2 %v3954_v43 }
 0x29f   :  { %4237 = vrot.lane.b32.xlu2 %v4236_v38, %s4298_s22  ;;  %v3948_v38 = vld [vmem:[%s5521_s2 + $0xa0] sm:$0xff] }
 0x2a0   :  { %v4973_v17 = vpop.permute.xlu1 %4112 }
 0x2a1   :  { %v4115_v60 = vunpack.i.h.bf16 %v4973_v17  ;;  %v4114_v15 = vunpack.i.l.bf16 %v4973_v17 }
 0x2a3   :  { %v1391_v18 = vsel %vm98_vm0, %v1387_v11, %v4114_v15  ;;  %v1392_v17 = vsel %vm98_vm0, %v1388_v2, %v4115_v60 }
 0x2a8   :  { %v4118_v61 = vpop.permute.xlu1 %4117 }
 0x2a9   :  { %v4120_v40 = vunpack.i.h.bf16 %v4118_v61  ;;  %v4119_v16 = vunpack.i.l.bf16 %v4118_v61 }
 0x2ab   :  { %v1395_v47 = vsel %vm1360_vm3, %v1391_v18, %v4119_v16  ;;  %v1396_v54 = vsel %vm1360_vm3, %v1392_v17, %v4120_v40  ;;  %v4079_v40 = vunpack.i.l.bf16 %v4902_v37 }
 0x2ac   :  { %v1399_v63 = vsel %vm1365_vm4, %v1395_v47, %v4049_v21  ;;  %v1400_v3 = vsel %vm1365_vm4, %v1396_v54, %v4050_v5 }
 0x2b0   :  { %v4143_v31 = vpop.permute.xlu1 %4142  ;;  %v4133_v36 = vpop.permute.xlu0 %4132 }
 0x2b1   :  { %v4145_v45 = vunpack.i.h.bf16 %v4143_v31  ;;  %v4144_v48 = vunpack.i.l.bf16 %v4143_v31  ;;  %v4135_v51 = vunpack.i.h.bf16 %v4133_v36  ;;  %v4134_v53 = vunpack.i.l.bf16 %v4133_v36 }
 0x2b3   :  { %v5003_v32 = vsel %vm1360_vm3, %v4877_v9, %v4145_v45  ;;  %v5007_v59 = vsel %vm1360_vm3, %v4874_v8, %v4144_v48  ;;  %v1409_v4 = vsel %vm1380_vm7, %v1405_v57, %v4134_v53  ;;  %v1410_v62 = vsel %vm1380_vm7, %v1406_v27, %v4135_v51  ;;  %v3949_v9 = vld [vmem:[%s5521_s2 + $0xa8] sm:$0xff] }
 0x2b4   :  { %v1554_v6 = vpack.c.bf16 %v1410_v62, %v1409_v4  ;;  %1810 = vmatpush.bf16.msrb.mxu3 %v3949_v9 }
 0x2b6   :  { %1795 = vmatmul.bf16.vlgmr.msrb.gmra.mxu2 %v1554_v6 }
 0x2b8   :  { %v5017_v7 = vpop.permute.xlu0 %4137  ;;  %v5019_v8 = vpop.permute.xlu2 %4172  ;;  %1811 = vmatpush.bf16.msrb.mxu3 %v3948_v38 }
 0x2b9   :  { %v4148_v52 = vpop.permute.xlu1 %4147  ;;  %v4175_v57 = vunpack.i.h.bf16 %v5019_v8  ;;  %v4174_v27 = vunpack.i.l.bf16 %v5019_v8 }
 0x2ba   :  { %v4150_v56 = vunpack.i.h.bf16 %v4148_v52  ;;  %v4149_v1 = vunpack.i.l.bf16 %v4148_v52 }
 0x2bc   :  { %1812 = vmatpush.bf16.msrb.mxu3 %v3947_v19  ;;  %v1404_v26 = vsel %vm1370_vm5, %v1400_v3, %v4150_v56  ;;  %v1403_v28 = vsel %vm1370_vm5, %v1399_v63, %v4149_v1 }
 0x2bd   :  { %v1117_v30 = vpop.f32.mrf.mxu0 }
 0x2c0   :  { %v4158_v0 = vpop.permute.xlu0 %4157  ;;  %v4178_v61 = vpop.permute.xlu2 %4177  ;;  %1813 = vmatpush.bf16.msrb.mxu3 %v3946_v58 }
 0x2c1   :  { %v4153_v22 = vpop.permute.xlu1 %4152  ;;  %v4160_v55 = vunpack.i.h.bf16 %v4158_v0  ;;  %v4159_v13 = vunpack.i.l.bf16 %v4158_v0  ;;  %v4180_v35 = vunpack.i.h.bf16 %v4178_v61  ;;  %v4179_v9 = vunpack.i.l.bf16 %v4178_v61 }
 0x2c2   :  { %v4155_v23 = vunpack.i.h.bf16 %v4153_v22  ;;  %v4154_v24 = vunpack.i.l.bf16 %v4153_v22 }
 0x2c4   :  { %v1407_v46 = vsel %vm1375_vm6, %v1403_v28, %v4154_v24  ;;  %v1408_v10 = vsel %vm1375_vm6, %v1404_v26, %v4155_v23 }
 0x2c5   :  { %v1411_v33 = vsel %vm1380_vm7, %v1407_v46, %v4159_v13  ;;  %v1412_v39 = vsel %vm1380_vm7, %v1408_v10, %v4160_v55  ;;  %v1119_v44 = vpop.f32.mrf.mxu0  ;;  %v4140_v46 = vunpack.i.h.bf16 %v5017_v7  ;;  %v4139_v10 = vunpack.i.l.bf16 %v5017_v7 }
 0x2c6   :  { %v1558_v41 = vpack.c.bf16 %v1412_v39, %v1411_v33  ;;  %v1556_v31 = vpack.c.bf16 %v1119_v44, %v1117_v30 }
 0x2c8   :  { %1800 = vmatmul.bf16.gmra.mxu2 %v1558_v41  ;;  %v5052_v42 = vpop.permute.xlu2 %4187  ;;  %3554 = vmatmul.msk.bf16.vlgmr.msrb.gmra.mxu0 %vm1351_vm2, %v1556_v31  ;;  %v4163_v3 = vpop.permute.xlu0 %4162 }
 0x2c9   :  { %v4168_v36 = vpop.permute.xlu1 %4167  ;;  %v4190_v55 = vunpack.i.h.bf16 %v5052_v42  ;;  %v4189_v13 = vunpack.i.l.bf16 %v5052_v42 }
 0x2ca   :  { %v4170_v48 = vunpack.i.h.bf16 %v4168_v36  ;;  %v4169_v49 = vunpack.i.l.bf16 %v4168_v36 }
 0x2cc   :  { %v1526_v51 = vsel %vm1351_vm2, %v4758_v25, %v4170_v48  ;;  %v1525_v53 = vsel %vm1351_vm2, %v4740_v20, %v4169_v49  ;;  %v4080_v20 = vunpack.i.h.bf16 %v4902_v37 }
 0x2cd   :  { %v1122_v50 = vpop.f32.mrf.mxu0  ;;  %v1530_v62 = vsel %vm98_vm0, %v1526_v51, %v4175_v57  ;;  %v1529_v6 = vsel %vm98_vm0, %v1525_v53, %v4174_v27 }
 0x2ce   :  { %v1533_v52 = vsel %vm1360_vm3, %v1529_v6, %v4179_v9  ;;  %v1534_v25 = vsel %vm1360_vm3, %v1530_v62, %v4180_v35  ;;  %v4164_v62 = vunpack.i.l.bf16 %v4163_v3 }
 0x2cf   :  { %v1537_v38 = vsel %vm1365_vm4, %v1533_v52, %v4079_v40  ;;  %v1538_v2 = vsel %vm1365_vm4, %v1534_v25, %v4080_v20 }
 0x2d0   :  { %v4198_v45 = vpop.permute.xlu2 %4197  ;;  %v1368_v52 = vsel %vm1365_vm4, %v5007_v59, %v4164_v62  ;;  %v3557_v62 = vld [vmem:[%s5525_s4 + $0x4] sm:$0xf] }
 0x2d1   :  { %v4200_v60 = vunpack.i.h.bf16 %v4198_v45  ;;  %v4199_v15 = vunpack.i.l.bf16 %v4198_v45 }
 0x2d3   :  { %v1542_v19 = vsel %vm1370_vm5, %v1538_v2, %v4200_v60  ;;  %v1541_v18 = vsel %vm1370_vm5, %v1537_v38, %v4199_v15 }
 0x2d5   :  { %v1124_v12 = vpop.f32.mrf.mxu0 }
 0x2d6   :  { %v1560_v14 = vpack.c.bf16 %v1124_v12, %v1122_v50  ;;  %v4183_v21 = vpop.permute.xlu1 %4182 }
 0x2d7   :  { %v4185_v61 = vunpack.i.h.bf16 %v4183_v21  ;;  %v4184_v22 = vunpack.i.l.bf16 %v4183_v21 }
 0x2d8   :  { %v4203_v4 = vpop.permute.xlu2 %4202  ;;  %3555 = vmatmul.msk.bf16.vlgmr.msra.gmra.mxu2 %vm1351_vm2, %v1560_v14 }
 0x2d9   :  { %v4205_v8 = vunpack.i.h.bf16 %v4203_v4  ;;  %v4204_v16 = vunpack.i.l.bf16 %v4203_v4  ;;  %v1528_v23 = vsel %vm1351_vm2, %v4788_v34, %v4185_v61  ;;  %v1527_v24 = vsel %vm1351_vm2, %v4769_v29, %v4184_v22 }
 0x2da   :  { %v1531_v30 = vsel %vm98_vm0, %v1527_v24, %v4189_v13  ;;  %v1532_v33 = vsel %vm98_vm0, %v1528_v23, %v4190_v55  ;;  %v4165_v4 = vunpack.i.h.bf16 %v4163_v3 }
 0x2db   :  { %v1545_v54 = vsel %vm1375_vm6, %v1541_v18, %v4204_v16  ;;  %v1546_v56 = vsel %vm1375_vm6, %v1542_v19, %v4205_v8 }
 0x2dc   :  { %v1369_v25 = vsel %vm1365_vm4, %v5003_v32, %v4165_v4  ;;  %v1858_v4 = vld [vmem:[%s5525_s4] sm:$0xf] }
 0x2e0   :  { %v4208_v11 = vpop.permute.xlu2 %4207  ;;  %v4193_v63 = vpop.permute.xlu1 %4192 }
 0x2e1   :  { %v4210_v17 = vunpack.i.h.bf16 %v4208_v11  ;;  %v4209_v47 = vunpack.i.l.bf16 %v4208_v11  ;;  %v4195_v26 = vunpack.i.h.bf16 %v4193_v63  ;;  %v4194_v28 = vunpack.i.l.bf16 %v4193_v63 }
 0x2e3   :  { %v1549_v37 = vsel %vm1380_vm7, %v1545_v54, %v4209_v47  ;;  %v1550_v1 = vsel %vm1380_vm7, %v1546_v56, %v4210_v17  ;;  %v1535_v34 = vsel %vm1360_vm3, %v1531_v30, %v4194_v28  ;;  %v1536_v39 = vsel %vm1360_vm3, %v1532_v33, %v4195_v26 }
 0x2e4   :  { %v1555_v5 = vpack.c.bf16 %v1550_v1, %v1549_v37  ;;  %v1539_v43 = vsel %vm1365_vm4, %v1535_v34, %v4139_v10  ;;  %v1540_v44 = vsel %vm1365_vm4, %v1536_v39, %v4140_v46 }
 0x2e5   :  { %v1777_v17 = vpop.f32.mrf.mxu1 }
 0x2e6   :  { %1814 = vmatmul.bf16.vlgmr.msrb.gmra.mxu3 %v1555_v5  ;;  %v5112_v5 = vld [vmem:[%s5523_s5] sm:$0xff] }
 0x2e7   :  { %v1611_v21 = vperm.slane %v5112_v5, 1 }
 0x2e9   :  { %v4213_v0 = vpop.permute.xlu2 %4212  ;;  %v1778_v26 = vadd.f32 %v1777_v17, %v1611_v21  ;;  %v3601_v17 = vld [vmem:[%s5525_s4 + $0x5c] sm:$0xf] }
 0x2ea   :  { %v4215_v35 = vunpack.i.h.bf16 %v4213_v0  ;;  %v4214_v9 = vunpack.i.l.bf16 %v4213_v0 }
 0x2ec   :  { %v1374_v20 = vsel %vm1370_vm5, %v1369_v25, %v4215_v35  ;;  %v1373_v40 = vsel %vm1370_vm5, %v1368_v52, %v4214_v9  ;;  %v3561_v35 = vld [vmem:[%s5525_s4 + $0xc] sm:$0xf]  ;;  %v3563_v9 = vld [vmem:[%s5525_s4 + $0x10] sm:$0xf]  ;;  %v3569_v52 = vld [vmem:[%s5525_s4 + $0x1c] sm:$0xf] }
 0x2ed   :  { %v1779_v56 = vpop.f32.mrf.mxu1  ;;  %v3571_v25 = vld [vmem:[%s5525_s4 + $0x20] sm:$0xf] }
 0x2ee   :  { %v1780_v24 = vadd.f32 %v1779_v56, %v1611_v21 }
 0x2f1   :  { %v4218_v58 = vpop.permute.xlu2 %4217 }
 0x2f2   :  { %v4220_v29 = vunpack.i.h.bf16 %v4218_v58  ;;  %v4219_v41 = vunpack.i.l.bf16 %v4218_v58 }
 0x2f4   :  { %v1544_v49 = vsel %vm1370_vm5, %v1540_v44, %v4220_v29  ;;  %v1543_v50 = vsel %vm1370_vm5, %v1539_v43, %v4219_v41 }
 0x2f9   :  { %v4238_v12 = vpop.permute.xlu2 %4237 }
 0x2fa   :  { %v4240_v8 = vunpack.i.h.bf16 %v4238_v12  ;;  %v4239_v16 = vunpack.i.l.bf16 %v4238_v12  ;;  %v3565_v12 = vld [vmem:[%s5525_s4 + $0x14] sm:$0xf] }
 0x300   :  { %v4228_v42 = vpop.permute.xlu0 %4227  ;;  %v4223_v31 = vpop.permute.xlu1 %4222 }
 0x301   :  { %v4230_v36 = vunpack.i.h.bf16 %v4228_v42  ;;  %v4229_v45 = vunpack.i.l.bf16 %v4228_v42  ;;  %v4225_v48 = vunpack.i.h.bf16 %v4223_v31  ;;  %v4224_v7 = vunpack.i.l.bf16 %v4223_v31 }
 0x303   :  { %v1547_v51 = vsel %vm1375_vm6, %v1543_v50, %v4224_v7  ;;  %v1548_v53 = vsel %vm1375_vm6, %v1544_v49, %v4225_v48 }
 0x304   :  { %v1551_v57 = vsel %vm1380_vm7, %v1547_v51, %v4229_v45  ;;  %v1552_v27 = vsel %vm1380_vm7, %v1548_v53, %v4230_v36 }
 0x305   :  { %v1559_v6 = vpack.c.bf16 %v1552_v27, %v1551_v57 }
 0x307   :  { %1819 = vmatmul.bf16.gmra.mxu3 %v1559_v6  ;;  %v3559_v6 = vld [vmem:[%s5525_s4 + $0x8] sm:$0xf] }
 0x308   :  { %v4233_v14 = vpop.permute.xlu1 %4232 }
 0x309   :  { %v4235_v60 = vunpack.i.h.bf16 %v4233_v14  ;;  %v4234_v15 = vunpack.i.l.bf16 %v4233_v14  ;;  %v3567_v14 = vld [vmem:[%s5525_s4 + $0x18] sm:$0xf] }
 0x30b   :  { %v1378_v38 = vsel %vm1375_vm6, %v1373_v40, %v4234_v15  ;;  %v1379_v2 = vsel %vm1375_vm6, %v1374_v20, %v4235_v60  ;;  %v3573_v60 = vld [vmem:[%s5525_s4 + $0x24] sm:$0xf]  ;;  %v3575_v15 = vld [vmem:[%s5525_s4 + $0x28] sm:$0xf]  ;;  %v3577_v20 = vld [vmem:[%s5525_s4 + $0x2c] sm:$0xf] }
 0x30c   :  { %v1383_v11 = vsel %vm1380_vm7, %v1378_v38, %v4239_v16  ;;  %v1384_v19 = vsel %vm1380_vm7, %v1379_v2, %v4240_v8  ;;  %v3579_v40 = vld [vmem:[%s5525_s4 + $0x30] sm:$0xf]  ;;  %v3581_v8 = vld [vmem:[%s5525_s4 + $0x34] sm:$0xf]  ;;  %v3583_v16 = vld [vmem:[%s5525_s4 + $0x38] sm:$0xf] }
 0x30d   :  { %v1557_v59 = vpack.c.bf16 %v1384_v19, %v1383_v11  ;;  %v3585_v38 = vld [vmem:[%s5525_s4 + $0x3c] sm:$0xf]  ;;  %v3587_v2 = vld [vmem:[%s5525_s4 + $0x40] sm:$0xf]  ;;  %v3589_v11 = vld [vmem:[%s5525_s4 + $0x44] sm:$0xf] }
 0x30e   :  { %v3591_v19 = vld [vmem:[%s5525_s4 + $0x48] sm:$0xf] }
 0x30f   :  { %1781 = vmatmul.bf16.gmra.mxu1 %v1557_v59  ;;  %v3593_v59 = vld [vmem:[%s5525_s4 + $0x4c] sm:$0xf] }
 0x339   :  { %v1796_v18 = vpop.f32.mrf.mxu2 }
 0x33a   :  { %v1797_v58 = vadd.f32 %v1796_v18, %v1778_v26  ;;  %v3597_v18 = vld [vmem:[%s5525_s4 + $0x54] sm:$0xf] }
 0x341   :  { %v1798_v32 = vpop.f32.mrf.mxu2 }
 0x342   :  { %v1799_v28 = vadd.f32 %v1798_v32, %v1780_v24  ;;  %v3599_v32 = vld [vmem:[%s5525_s4 + $0x58] sm:$0xf] }
 0x345   :  { %v1834_v0 = vpop.f32.mrf.mxu0 }
 0x34b   :  { %v1801_v54 = vpop.f32.mrf.mxu2 }
 0x34d   :  { %v1836_v30 = vpop.f32.mrf.mxu0 }
 0x353   :  { %v1803_v1 = vpop.f32.mrf.mxu2 }
 0x35b   :  { %v1839_v23 = vpop.f32.mrf.mxu2 }
 0x363   :  { %v1841_v44 = vpop.f32.mrf.mxu2 }
 0x369   :  { %v1815_v47 = vpop.f32.mrf.mxu3 }
 0x36a   :  { %v1816_v33 = vadd.f32 %v1815_v47, %v1797_v58 }
 0x36c   :  { %v1835_v42 = vadd.f32 %v1834_v0, %v1816_v33 }
 0x36e   :  { %v1848_v7 = vmul.f32 0.01, %v1835_v42  ;;  %vm1844_vm11 = vcmp.ge.f32.partialorder %v1835_v42, 0.0 }
 0x370   :  { %v1852_v57 = vsel %vm1844_vm11, %v1835_v42, %v1848_v7 }
 0x371   :  { %v1817_v37 = vpop.f32.mrf.mxu3 }
 0x372   :  { %v1818_v46 = vadd.f32 %v1817_v37, %v1799_v28 }
 0x374   :  { %v1837_v41 = vadd.f32 %v1836_v30, %v1818_v46 }
 0x376   :  { %v1849_v45 = vmul.f32 0.01, %v1837_v41  ;;  %vm1845_vm10 = vcmp.ge.f32.partialorder %v1837_v41, 0.0 }
 0x378   :  { %v1853_v53 = vsel %vm1845_vm10, %v1837_v41, %v1849_v45 }
 0x379   :  { %v5121_v27 = vpack.c.bf16 %v1853_v53, %v1852_v57  ;;  %v3968_v57 = vld [vmem:[%s5521_s2 + $0x140] sm:$0xff] }
 0x38a   :  { %v1820_v63 = vpop.f32.mrf.mxu3 }
 0x38c   :  { %v1782_v61 = vpop.f32.mrf.mxu1 }
 0x38d   :  { %v1783_v22 = vadd.f32 %v1782_v61, %v1611_v21 }
 0x38f   :  { %v1802_v3 = vadd.f32 %v1801_v54, %v1783_v22 }
 0x391   :  { %v1821_v55 = vadd.f32 %v1820_v63, %v1802_v3 }
 0x392   :  { %v1822_v29 = vpop.f32.mrf.mxu3 }
 0x393   :  { %v1840_v34 = vadd.f32 %v1839_v23, %v1821_v55 }
 0x394   :  { %v1784_v13 = vpop.f32.mrf.mxu1 }
 0x395   :  { %v1785_v10 = vadd.f32 %v1784_v13, %v1611_v21  ;;  %v1850_v31 = vmul.f32 0.01, %v1840_v34  ;;  %vm1846_vm8 = vcmp.ge.f32.partialorder %v1840_v34, 0.0  ;;  %v3595_v13 = vld [vmem:[%s5525_s4 + $0x50] sm:$0xf] }
 0x397   :  { %v1804_v39 = vadd.f32 %v1803_v1, %v1785_v10  ;;  %v1854_v49 = vsel %vm1846_vm8, %v1840_v34, %v1850_v31  ;;  %v3962_v31 = vld [vmem:[%s5521_s2 + $0x110] sm:$0xff] }
 0x399   :  { %v1823_v43 = vadd.f32 %v1822_v29, %v1804_v39  ;;  %v3603_v39 = vld [vmem:[%s5525_s4 + $0x60] sm:$0xf] }
 0x39b   :  { %v1842_v36 = vadd.f32 %v1841_v44, %v1823_v43 }
 0x39d   :  { %vm1847_vm9 = vcmp.ge.f32.partialorder %v1842_v36, 0.0  ;;  %v1851_v48 = vmul.f32 0.01, %v1842_v36 }
 0x39f   :  { %v1855_v50 = vsel %vm1847_vm9, %v1842_v36, %v1851_v48  ;;  %v3970_v36 = vld [vmem:[%s5521_s2 + $0x150] sm:$0xff]  ;;  %v3961_v48 = vld [vmem:[%s5521_s2 + $0x108] sm:$0xff] }
 0x3a0   :  { %v5115_v51 = vpack.c.bf16 %v1855_v50, %v1854_v49  ;;  %v3969_v49 = vld [vmem:[%s5521_s2 + $0x148] sm:$0xff] }
 0x3a2   :  { %1868 = vmatpush.bf16.msra.mxu1 %v5115_v51  ;;  %1886 = vmatpush.bf16.msrb.mxu2 %v5115_v51 }
 0x3a3   :  { %1904 = vmatpush.bf16.msra.mxu3 %v5115_v51  ;;  %1922 = vmatpush.bf16.msra.mxu0 %v5115_v51 }
 0x3a6   :  { %1869 = vmatpush.bf16.msra.mxu1 %v5121_v27  ;;  %1887 = vmatpush.bf16.msrb.mxu2 %v5121_v27 }
 0x3a7   :  { %1905 = vmatpush.bf16.msra.mxu3 %v5121_v27  ;;  %1923 = vmatpush.bf16.msra.mxu0 %v5121_v27 }
 0x3a9   :  { %3556 = vmatmul.msk.bf16.vlgmr.msra.gmra.mxu1 %vm98_vm0, %v1858_v4  ;;  %3558 = vmatmul.msk.bf16.vlgmr.msrb.gmra.mxu2 %vm98_vm0, %v3557_v62 }
 0x3aa   :  { %1940 = vmatpush.bf16.msrb.mxu1 %v5115_v51  ;;  %1958 = vmatpush.bf16.msra.mxu2 %v5115_v51 }
 0x3ab   :  { %1976 = vmatpush.bf16.msrb.mxu3 %v5115_v51  ;;  %1994 = vmatpush.bf16.msrb.mxu0 %v5115_v51 }
 0x3ac   :  { %3560 = vmatmul.msk.bf16.vlgmr.msra.gmra.mxu3 %vm98_vm0, %v3559_v6  ;;  %3562 = vmatmul.msk.bf16.vlgmr.msra.gmra.mxu0 %vm98_vm0, %v3561_v35  ;;  %v3959_v35 = vld [vmem:[%s5521_s2 + $0xf8] sm:$0xff] }
 0x3ae   :  { %1941 = vmatpush.bf16.msrb.mxu1 %v5121_v27  ;;  %1959 = vmatpush.bf16.msra.mxu2 %v5121_v27 }
 0x3af   :  { %1977 = vmatpush.bf16.msrb.mxu3 %v5121_v27  ;;  %1995 = vmatpush.bf16.msrb.mxu0 %v5121_v27 }
 0x3b2   :  { %2012 = vmatpush.bf16.msra.mxu1 %v5115_v51  ;;  %2030 = vmatpush.bf16.msrb.mxu2 %v5115_v51 }
 0x3b3   :  { %2048 = vmatpush.bf16.msra.mxu3 %v5115_v51  ;;  %2066 = vmatpush.bf16.msra.mxu0 %v5115_v51 }
 0x3b6   :  { %2013 = vmatpush.bf16.msra.mxu1 %v5121_v27  ;;  %2031 = vmatpush.bf16.msrb.mxu2 %v5121_v27 }
 0x3b7   :  { %2049 = vmatpush.bf16.msra.mxu3 %v5121_v27  ;;  %2067 = vmatpush.bf16.msra.mxu0 %v5121_v27 }
 0x3b9   :  { %3564 = vmatmul.msk.bf16.vlgmr.msrb.gmra.mxu1 %vm98_vm0, %v3563_v9  ;;  %3566 = vmatmul.msk.bf16.vlgmr.msra.gmra.mxu2 %vm98_vm0, %v3565_v12  ;;  %v3967_v12 = vld [vmem:[%s5521_s2 + $0x138] sm:$0xff] }
 0x3ba   :  { %2084 = vmatpush.bf16.msrb.mxu1 %v5115_v51  ;;  %2102 = vmatpush.bf16.msra.mxu2 %v5115_v51 }
 0x3bc   :  { %3568 = vmatmul.msk.bf16.vlgmr.msrb.gmra.mxu3 %vm98_vm0, %v3567_v14  ;;  %3570 = vmatmul.msk.bf16.vlgmr.msrb.gmra.mxu0 %vm98_vm0, %v3569_v52  ;;  %v3958_v14 = vld [vmem:[%s5521_s2 + $0xf0] sm:$0xff] }
 0x3bd   :  { %2120 = vmatpush.bf16.msrb.mxu3 %v5115_v51  ;;  %2138 = vmatpush.bf16.msrb.mxu0 %v5115_v51 }
 0x3be   :  { %2085 = vmatpush.bf16.msrb.mxu1 %v5121_v27  ;;  %2103 = vmatpush.bf16.msra.mxu2 %v5121_v27 }
 0x3c1   :  { %2121 = vmatpush.bf16.msrb.mxu3 %v5121_v27  ;;  %2139 = vmatpush.bf16.msrb.mxu0 %v5121_v27 }
 0x3c9   :  { %3572 = vmatmul.msk.bf16.vlgmr.msra.gmra.mxu1 %vm98_vm0, %v3571_v25  ;;  %3574 = vmatmul.msk.bf16.vlgmr.msrb.gmra.mxu2 %vm98_vm0, %v3573_v60  ;;  %v3966_v25 = vld [vmem:[%s5521_s2 + $0x130] sm:$0xff] }
 0x3ca   :  { %2156 = vmatpush.bf16.msra.mxu1 %v5115_v51  ;;  %2174 = vmatpush.bf16.msrb.mxu2 %v5115_v51 }
 0x3cc   :  { %3576 = vmatmul.msk.bf16.vlgmr.msra.gmra.mxu3 %vm98_vm0, %v3575_v15  ;;  %3578 = vmatmul.msk.bf16.vlgmr.msra.gmra.mxu0 %vm98_vm0, %v3577_v20  ;;  %v3957_v20 = vld [vmem:[%s5521_s2 + $0xe8] sm:$0xff] }
 0x3cd   :  { %2192 = vmatpush.bf16.msra.mxu3 %v5115_v51  ;;  %2210 = vmatpush.bf16.msra.mxu0 %v5115_v51 }
 0x3ce   :  { %2157 = vmatpush.bf16.msra.mxu1 %v5121_v27  ;;  %2175 = vmatpush.bf16.msrb.mxu2 %v5121_v27 }
 0x3d1   :  { %2193 = vmatpush.bf16.msra.mxu3 %v5121_v27  ;;  %2211 = vmatpush.bf16.msra.mxu0 %v5121_v27 }
 0x3d9   :  { %3580 = vmatmul.msk.bf16.vlgmr.msrb.gmra.mxu1 %vm98_vm0, %v3579_v40  ;;  %3582 = vmatmul.msk.bf16.vlgmr.msra.gmra.mxu2 %vm98_vm0, %v3581_v8  ;;  %v3965_v8 = vld [vmem:[%s5521_s2 + $0x128] sm:$0xff] }
 0x3da   :  { %2228 = vmatpush.bf16.msrb.mxu1 %v5115_v51  ;;  %2246 = vmatpush.bf16.msra.mxu2 %v5115_v51 }
 0x3dc   :  { %3584 = vmatmul.msk.bf16.vlgmr.msrb.gmra.mxu3 %vm98_vm0, %v3583_v16  ;;  %3586 = vmatmul.msk.bf16.vlgmr.msrb.gmra.mxu0 %vm98_vm0, %v3585_v38 }
 0x3dd   :  { %2264 = vmatpush.bf16.msrb.mxu3 %v5115_v51  ;;  %2282 = vmatpush.bf16.msrb.mxu0 %v5115_v51 }
 0x3de   :  { %2229 = vmatpush.bf16.msrb.mxu1 %v5121_v27  ;;  %2247 = vmatpush.bf16.msra.mxu2 %v5121_v27 }
 0x3e1   :  { %2265 = vmatpush.bf16.msrb.mxu3 %v5121_v27  ;;  %2283 = vmatpush.bf16.msrb.mxu0 %v5121_v27 }
 0x3e9   :  { %3588 = vmatmul.msk.bf16.vlgmr.msra.gmra.mxu1 %vm98_vm0, %v3587_v2  ;;  %3590 = vmatmul.msk.bf16.vlgmr.msrb.gmra.mxu2 %vm98_vm0, %v3589_v11 }
 0x3ea   :  { %2300 = vmatpush.bf16.msra.mxu1 %v5115_v51  ;;  %2808 = vmatpush.bf16.msrb.mxu2 %v3962_v31  ;;  %v3960_v51 = vld [vmem:[%s5521_s2 + $0x100] sm:$0xff] }
 0x3ec   :  { %3592 = vmatmul.msk.bf16.vlgmr.msra.gmra.mxu3 %vm98_vm0, %v3591_v19  ;;  %3594 = vmatmul.msk.bf16.vlgmr.msra.gmra.mxu0 %vm98_vm0, %v3593_v59 }
 0x3ed   :  { %2821 = vmatpush.bf16.msra.mxu3 %v3970_v36 }
 0x3ee   :  { %2301 = vmatpush.bf16.msra.mxu1 %v5121_v27  ;;  %2809 = vmatpush.bf16.msrb.mxu2 %v3961_v48 }
 0x3f1   :  { %2822 = vmatpush.bf16.msra.mxu3 %v3969_v49 }
 0x3f2   :  { %2810 = vmatpush.bf16.msrb.mxu2 %v3960_v51 }
 0x3f5   :  { %2823 = vmatpush.bf16.msra.mxu3 %v3968_v57 }
 0x3f6   :  { %2811 = vmatpush.bf16.msrb.mxu2 %v3959_v35 }
 0x3f9   :  { %3598 = vmatmul.msk.bf16.vlgmr.msra.gmra.mxu2 %vm98_vm0, %v3597_v18  ;;  %3596 = vmatmul.msk.bf16.vlgmr.msrb.gmra.mxu1 %vm98_vm0, %v3595_v13  ;;  %v3985_v13 = vld [vmem:[%s5521_s2 + $0x1c8] sm:$0xff] }
 0x3fa   :  { %2824 = vmatpush.bf16.msra.mxu3 %v3967_v12  ;;  %2812 = vmatpush.bf16.msrb.mxu2 %v3958_v14  ;;  %v3988_v12 = vld [vmem:[%s5521_s2 + $0x1e0] sm:$0xff] }
 0x3fb   :  { %v4000_v14 = vld [vmem:[%s5521_s2 + $0x240] sm:$0xff] }
 0x3fc   :  { %3600 = vmatmul.msk.bf16.vlgmr.msrb.gmra.mxu3 %vm98_vm0, %v3599_v32  ;;  %3602 = vmatmul.msk.bf16.vlgmr.msrb.gmra.mxu0 %vm98_vm0, %v3601_v17 }
 0x3fe   :  { %2825 = vmatpush.bf16.msra.mxu3 %v3966_v25  ;;  %2813 = vmatpush.bf16.msrb.mxu2 %v3957_v20  ;;  %v3983_v25 = vld [vmem:[%s5521_s2 + $0x1b8] sm:$0xff]  ;;  %v3982_v20 = vld [vmem:[%s5521_s2 + $0x1b0] sm:$0xff] }
 0x402   :  { %2826 = vmatpush.bf16.msra.mxu3 %v3965_v8  ;;  %v3998_v8 = vld [vmem:[%s5521_s2 + $0x230] sm:$0xff] }
 0x409   :  { %3604 = vmatmul.msk.bf16.vlgmr.msra.gmra.mxu1 %vm98_vm0, %v3603_v39 }
 0x426   :  { %v5278_v45 = vpop.f32.mrf.mxu1 }
 0x429   :  { %v1925_v47 = vpop.f32.mrf.mxu0 }
 0x42c   :  { %v1889_v54 = vpop.f32.mrf.mxu2 }
 0x42e   :  { %v1873_v62 = vpop.f32.mrf.mxu1 }
 0x42f   :  { %v1907_v56 = vpop.f32.mrf.mxu3 }
 0x431   :  { %v1927_v37 = vpop.f32.mrf.mxu0 }
 0x432   :  { %v3963_v37 = vld [vmem:[%s5521_s2 + $0x118] sm:$0xff] }
 0x434   :  { %v1891_v1 = vpop.f32.mrf.mxu2 }
 0x436   :  { %v5307_v15 = vpop.f32.mrf.mxu1 }
 0x437   :  { %v1909_v21 = vpop.f32.mrf.mxu3 }
 0x438   :  { %v3978_v21 = vld [vmem:[%s5521_s2 + $0x190] sm:$0xff] }
 0x439   :  { %v1997_v0 = vpop.f32.mrf.mxu0  ;;  %2834 = vmatpush.bf16.msra.mxu0 %v3978_v21 }
 0x43a   :  { %v4251_v61 = vpack.i.bf16 %v1997_v0, %v1925_v47  ;;  %v3964_v47 = vld [vmem:[%s5521_s2 + $0x120] sm:$0xff]  ;;  %v3994_v0 = vld [vmem:[%s5521_s2 + $0x210] sm:$0xff] }
 0x43b   :  { %2827 = vmatpush.bf16.msra.mxu3 %v3964_v47 }
 0x43c   :  { %4252 = vrot.lane.b32.xlu2 %v4251_v61, %s4297_s15  ;;  %v1961_v22 = vpop.f32.mrf.mxu2  ;;  %v3977_v61 = vld [vmem:[%s5521_s2 + $0x188] sm:$0xff] }
 0x43d   :  { %v4241_v63 = vpack.i.bf16 %v1961_v22, %v1889_v54  ;;  %v3956_v54 = vld [vmem:[%s5521_s2 + $0xe0] sm:$0xff]  ;;  %v3993_v22 = vld [vmem:[%s5521_s2 + $0x208] sm:$0xff]  ;;  %2835 = vmatpush.bf16.msra.mxu0 %v3977_v61 }
 0x43e   :  { %v1945_v19 = vpop.f32.mrf.mxu1  ;;  %2814 = vmatpush.bf16.msrb.mxu2 %v3956_v54 }
 0x43f   :  { %v1979_v3 = vpop.f32.mrf.mxu3  ;;  %4242 = vrot.lane.b32.xlu0 %v4241_v63, %s4293_s0  ;;  %2828 = vmatpush.bf16.msra.mxu3 %v3963_v37  ;;  %v3986_v63 = vld [vmem:[%s5521_s2 + $0x1d0] sm:$0xff]  ;;  %v3996_v19 = vld [vmem:[%s5521_s2 + $0x220] sm:$0xff] }
 0x440   :  { %v4246_v23 = vpack.i.bf16 %v1979_v3, %v1907_v56  ;;  %v3955_v56 = vld [vmem:[%s5521_s2 + $0xd8] sm:$0xff]  ;;  %v4002_v3 = vld [vmem:[%s5521_s2 + $0x250] sm:$0xff]  ;;  %2847 = vmatpush.bf16.msrb.mxu1 %v3986_v63 }
 0x441   :  { %v1999_v24 = vpop.f32.mrf.mxu0 }
 0x442   :  { %4247 = vrot.lane.b32.xlu1 %v4246_v23, %s4295_s30  ;;  %2815 = vmatpush.bf16.msrb.mxu2 %v3955_v56  ;;  %v3976_v23 = vld [vmem:[%s5521_s2 + $0x180] sm:$0xff] }
 0x443   :  { %2873 = vmatpush.bf16.msrb.mxu3 %v4002_v3  ;;  %v3992_v24 = vld [vmem:[%s5521_s2 + $0x200] sm:$0xff]  ;;  %2836 = vmatpush.bf16.msra.mxu0 %v3976_v23 }
 0x444   :  { %v1963_v26 = vpop.f32.mrf.mxu2  ;;  %2848 = vmatpush.bf16.msrb.mxu1 %v3985_v13 }
 0x446   :  { %v5330_v1 = vpop.f32.mrf.mxu1  ;;  %2860 = vmatpush.bf16.msra.mxu2 %v3994_v0 }
 0x447   :  { %v1981_v28 = vpop.f32.mrf.mxu3 }
 0x448   :  { %v3975_v28 = vld [vmem:[%s5521_s2 + $0x178] sm:$0xff] }
 0x449   :  { %v2069_v55 = vpop.f32.mrf.mxu0  ;;  %2837 = vmatpush.bf16.msra.mxu0 %v3975_v28 }
 0x44a   :  { %2861 = vmatpush.bf16.msra.mxu2 %v3993_v22 }
 0x44c   :  { %v2033_v58 = vpop.f32.mrf.mxu2 }
 0x44e   :  { %v2017_v26 = vpop.f32.mrf.mxu1  ;;  %2862 = vmatpush.bf16.msra.mxu2 %v3992_v24 }
 0x44f   :  { %v2051_v46 = vpop.f32.mrf.mxu3 }
 0x451   :  { %v2071_v10 = vpop.f32.mrf.mxu0 }
 0x452   :  { %v4001_v10 = vld [vmem:[%s5521_s2 + $0x248] sm:$0xff] }
 0x453   :  { %2874 = vmatpush.bf16.msrb.mxu3 %v4001_v10 }
 0x454   :  { %v2035_v30 = vpop.f32.mrf.mxu2 }
 0x456   :  { %v5374_v30 = vpop.f32.mrf.mxu1 }
 0x457   :  { %v2053_v33 = vpop.f32.mrf.mxu3  ;;  %2875 = vmatpush.bf16.msrb.mxu3 %v4000_v14  ;;  %v2504_v14 = vperm.slane %v5112_v5, 2 }
 0x458   :  { %v3973_v33 = vld [vmem:[%s5521_s2 + $0x168] sm:$0xff] }
 0x459   :  { %v2141_v34 = vpop.f32.mrf.mxu0 }
 0x45c   :  { %v2105_v29 = vpop.f32.mrf.mxu2 }
 0x45f   :  { %v2123_v41 = vpop.f32.mrf.mxu3 }
 0x461   :  { %v2143_v43 = vpop.f32.mrf.mxu0 }
 0x464   :  { %v2107_v44 = vpop.f32.mrf.mxu2 }
 0x467   :  { %v2125_v42 = vpop.f32.mrf.mxu3 }
 0x469   :  { %v2213_v7 = vpop.f32.mrf.mxu0 }
 0x46a   :  { %v4256_v50 = vpack.i.bf16 %v2213_v7, %v2069_v55  ;;  %v3991_v55 = vld [vmem:[%s5521_s2 + $0x1f8] sm:$0xff] }
 0x46b   :  { %2863 = vmatpush.bf16.msra.mxu2 %v3991_v55 }
 0x46c   :  { %4257 = vrot.lane.b32.xlu2 %v4256_v50, %s4297_s15  ;;  %v2177_v53 = vpop.f32.mrf.mxu2 }
 0x46d   :  { %v4261_v27 = vpack.i.bf16 %v2177_v53, %v2033_v58  ;;  %v3974_v58 = vld [vmem:[%s5521_s2 + $0x170] sm:$0xff] }
 0x46e   :  { %2838 = vmatpush.bf16.msra.mxu0 %v3974_v58 }
 0x46f   :  { %v2195_v4 = vpop.f32.mrf.mxu3  ;;  %4262 = vrot.lane.b32.xlu0 %v4261_v27, %s4293_s0 }
 0x470   :  { %v4266_v6 = vpack.i.bf16 %v2195_v4, %v2051_v46  ;;  %v3990_v46 = vld [vmem:[%s5521_s2 + $0x1f0] sm:$0xff] }
 0x471   :  { %v2215_v9 = vpop.f32.mrf.mxu0  ;;  %2864 = vmatpush.bf16.msra.mxu2 %v3990_v46 }
 0x472   :  { %4267 = vrot.lane.b32.xlu1 %v4266_v6, %s4295_s30  ;;  %2839 = vmatpush.bf16.msra.mxu0 %v3973_v33  ;;  %v3984_v9 = vld [vmem:[%s5521_s2 + $0x1c0] sm:$0xff] }
 0x473   :  { %2849 = vmatpush.bf16.msrb.mxu1 %v3984_v9  ;;  %v4011_v9 = vld [vmem:[%s5521_s2 + $0x298] sm:$0xff] }
 0x474   :  { %v2179_v52 = vpop.f32.mrf.mxu2 }
 0x475   :  { %v3971_v52 = vld [vmem:[%s5521_s2 + $0x158] sm:$0xff] }
 0x477   :  { %v2197_v60 = vpop.f32.mrf.mxu3  ;;  %2850 = vmatpush.bf16.msrb.mxu1 %v3983_v25 }
 0x478   :  { %v3987_v60 = vld [vmem:[%s5521_s2 + $0x1d8] sm:$0xff] }
 0x479   :  { %v2285_v40 = vpop.f32.mrf.mxu0 }
 0x47a   :  { %v4281_v16 = vpack.i.bf16 %v2141_v34, %v2285_v40  ;;  %v3989_v34 = vld [vmem:[%s5521_s2 + $0x1e8] sm:$0xff] }
 0x47b   :  { %2865 = vmatpush.bf16.msra.mxu2 %v3989_v34  ;;  %2851 = vmatpush.bf16.msrb.mxu1 %v3982_v20 }
 0x47c   :  { %4282 = vrot.lane.b32.xlu2 %v4281_v16, %s4297_s15  ;;  %v2249_v38 = vpop.f32.mrf.mxu2  ;;  %v3981_v16 = vld [vmem:[%s5521_s2 + $0x1a8] sm:$0xff] }
 0x47d   :  { %v4271_v2 = vpack.i.bf16 %v2105_v29, %v2249_v38  ;;  %v3997_v38 = vld [vmem:[%s5521_s2 + $0x228] sm:$0xff] }
 0x47f   :  { %v2267_v11 = vpop.f32.mrf.mxu3  ;;  %4272 = vrot.lane.b32.xlu0 %v4271_v2, %s4293_s0  ;;  %2866 = vmatpush.bf16.msra.mxu2 %v3988_v12  ;;  %v4019_v12 = vld [vmem:[%s5521_s2 + $0x2d8] sm:$0xff] }
 0x480   :  { %v4276_v59 = vpack.i.bf16 %v2123_v41, %v2267_v11  ;;  %v2089_v41 = vpop.f32.mrf.mxu1  ;;  %2852 = vmatpush.bf16.msrb.mxu1 %v3981_v16  ;;  %v3980_v11 = vld [vmem:[%s5521_s2 + $0x1a0] sm:$0xff] }
 0x481   :  { %v2287_v18 = vpop.f32.mrf.mxu0 }
 0x482   :  { %4277 = vrot.lane.b32.xlu1 %v4276_v59, %s4295_s30  ;;  %v4004_v59 = vld [vmem:[%s5521_s2 + $0x260] sm:$0xff]  ;;  %v3979_v18 = vld [vmem:[%s5521_s2 + $0x198] sm:$0xff] }
 0x483   :  { %2867 = vmatpush.bf16.msra.mxu2 %v3987_v60  ;;  %v4010_v60 = vld [vmem:[%s5521_s2 + $0x290] sm:$0xff] }
 0x484   :  { %v2251_v32 = vpop.f32.mrf.mxu2  ;;  %2853 = vmatpush.bf16.msrb.mxu1 %v3980_v11 }
 0x485   :  { %v3995_v32 = vld [vmem:[%s5521_s2 + $0x218] sm:$0xff] }
 0x487   :  { %v2269_v17 = vpop.f32.mrf.mxu3 }
 0x488   :  { %v2159_v6 = vpop.f32.mrf.mxu1  ;;  %v4003_v17 = vld [vmem:[%s5521_s2 + $0x258] sm:$0xff]  ;;  %2854 = vmatpush.bf16.msrb.mxu1 %v3979_v18 }
 0x490   :  { %v2161_v35 = vpop.f32.mrf.mxu1 }
 0x491   :  { %v4012_v35 = vld [vmem:[%s5521_s2 + $0x2a0] sm:$0xff] }
 0x492   :  { %3046 = vmatpush.bf16.msra.mxu1 %v4012_v35 }
 0x496   :  { %v4253_v39 = vpop.permute.xlu2 %4252  ;;  %3047 = vmatpush.bf16.msra.mxu1 %v4011_v9 }
 0x497   :  { %v4255_v49 = vunpack.i.h.bf16 %v4253_v39  ;;  %v4254_v50 = vunpack.i.l.bf16 %v4253_v39 }
 0x498   :  { %v2231_v40 = vpop.f32.mrf.mxu1 }
 0x49a   :  { %3048 = vmatpush.bf16.msra.mxu1 %v4010_v60 }
 0x4a0   :  { %v2233_v2 = vpop.f32.mrf.mxu1 }
 0x4a8   :  { %v2303_v47 = vpop.f32.mrf.mxu1 }
 0x4b0   :  { %v2305_v37 = vpop.f32.mrf.mxu1 }
 0x4b1   :  { %v4243_v29 = vpop.permute.xlu0 %4242 }
 0x4b2   :  { %v4245_v43 = vunpack.i.h.bf16 %v4243_v29  ;;  %v4244_v44 = vunpack.i.l.bf16 %v4243_v29 }
 0x4b4   :  { %v4248_v42 = vpop.permute.xlu1 %4247  ;;  %v2355_v48 = vsel %vm98_vm0, %v5278_v45, %v4244_v44  ;;  %v2358_v7 = vsel %vm98_vm0, %v5307_v15, %v4245_v43  ;;  %v3972_v45 = vld [vmem:[%s5521_s2 + $0x160] sm:$0xff]  ;;  %v3999_v15 = vld [vmem:[%s5521_s2 + $0x238] sm:$0xff] }
 0x4b5   :  { %v4250_v31 = vunpack.i.h.bf16 %v4248_v42  ;;  %v4249_v36 = vunpack.i.l.bf16 %v4248_v42  ;;  %2840 = vmatpush.bf16.msra.mxu0 %v3972_v45  ;;  %2876 = vmatpush.bf16.msrb.mxu3 %v3999_v15  ;;  %v4020_v45 = vld [vmem:[%s5521_s2 + $0x2e0] sm:$0xff]  ;;  %v4018_v15 = vld [vmem:[%s5521_s2 + $0x2d0] sm:$0xff] }
 0x4b7   :  { %v2356_v51 = vsel %vm1365_vm4, %v2355_v48, %v4249_v36  ;;  %v2359_v53 = vsel %vm1365_vm4, %v2358_v7, %v4250_v31 }
 0x4b8   :  { %v2357_v57 = vsel %vm1375_vm6, %v2356_v51, %v4254_v50  ;;  %v2360_v27 = vsel %vm1375_vm6, %v2359_v53, %v4255_v49  ;;  %v2403_v51 = vpack.c.bf16 %v2303_v47, %v2303_v47  ;;  %v4015_v47 = vld [vmem:[%s5521_s2 + $0x2b8] sm:$0xff] }
 0x4b9   :  { %v2397_v4 = vpack.c.bf16 %v2357_v57, %v2357_v57  ;;  %v2398_v62 = vpack.c.bf16 %v2360_v27, %v2360_v27  ;;  %2841 = vmatpush.bf16.msra.mxu0 %v3971_v52  ;;  %2877 = vmatpush.bf16.msrb.mxu3 %v3998_v8  ;;  %v4017_v8 = vld [vmem:[%s5521_s2 + $0x2c8] sm:$0xff] }
 0x4bb   :  { %2816 = vmatmul.bf16.vlgmr.msrb.gmra.mxu2 %v2397_v4  ;;  %2829 = vmatmul.bf16.vlgmr.msra.gmra.mxu3 %v2398_v62 }
 0x4bd   :  { %2878 = vmatpush.bf16.msrb.mxu3 %v3997_v38  ;;  %2892 = vmatpush.bf16.msrb.mxu0 %v4004_v59  ;;  %v4016_v59 = vld [vmem:[%s5521_s2 + $0x2c0] sm:$0xff] }
 0x4c1   :  { %2879 = vmatpush.bf16.msrb.mxu3 %v3996_v19  ;;  %2893 = vmatpush.bf16.msrb.mxu0 %v4003_v17  ;;  %v4008_v19 = vld [vmem:[%s5521_s2 + $0x280] sm:$0xff]  ;;  %v4007_v17 = vld [vmem:[%s5521_s2 + $0x278] sm:$0xff] }
 0x4c5   :  { %2880 = vmatpush.bf16.msrb.mxu3 %v3995_v32 }
 0x4c6   :  { %v4258_v54 = vpop.permute.xlu2 %4257 }
 0x4c7   :  { %v4260_v3 = vunpack.i.h.bf16 %v4258_v54  ;;  %v4259_v23 = vunpack.i.l.bf16 %v4258_v54 }
 0x4d6   :  { %v4283_v33 = vpop.permute.xlu2 %4282 }
 0x4d7   :  { %v4285_v44 = vunpack.i.h.bf16 %v4283_v33  ;;  %v4284_v42 = vunpack.i.l.bf16 %v4283_v33 }
 0x4e1   :  { %v4263_v56 = vpop.permute.xlu0 %4262 }
 0x4e2   :  { %v4265_v0 = vunpack.i.h.bf16 %v4263_v56  ;;  %v4264_v61 = vunpack.i.l.bf16 %v4263_v56 }
 0x4e4   :  { %v4268_v21 = vpop.permute.xlu1 %4267  ;;  %v2361_v24 = vsel %vm98_vm0, %v5330_v1, %v4264_v61  ;;  %v2391_v26 = vsel %vm98_vm0, %v2159_v6, %v4265_v0  ;;  %v4006_v0 = vld [vmem:[%s5521_s2 + $0x270] sm:$0xff] }
 0x4e5   :  { %v4270_v22 = vunpack.i.h.bf16 %v4268_v21  ;;  %v4269_v63 = vunpack.i.l.bf16 %v4268_v21  ;;  %v4014_v61 = vld [vmem:[%s5521_s2 + $0x2b0] sm:$0xff] }
 0x4e7   :  { %v2362_v28 = vsel %vm1365_vm4, %v2361_v24, %v4269_v63  ;;  %v2392_v55 = vsel %vm1365_vm4, %v2391_v26, %v4270_v22 }
 0x4e8   :  { %v2363_v13 = vsel %vm1375_vm6, %v2362_v28, %v4259_v23  ;;  %v2393_v58 = vsel %vm1375_vm6, %v2392_v55, %v4260_v3 }
 0x4e9   :  { %v2399_v46 = vpack.c.bf16 %v2363_v13, %v2363_v13  ;;  %v2401_v10 = vpack.c.bf16 %v2393_v58, %v2393_v58  ;;  %v4005_v13 = vld [vmem:[%s5521_s2 + $0x268] sm:$0xff] }
 0x4ea   :  { %v4013_v58 = vld [vmem:[%s5521_s2 + $0x2a8] sm:$0xff] }
 0x4eb   :  { %2842 = vmatmul.bf16.vlgmr.msra.gmra.mxu0 %v2399_v46  ;;  %2868 = vmatmul.bf16.vlgmr.msra.gmra.mxu2 %v2401_v10 }
 0x4ec   :  { %3059 = vmatpush.bf16.msra.mxu0 %v4020_v45 }
 0x4f0   :  { %3060 = vmatpush.bf16.msra.mxu0 %v4019_v12 }
 0x4f1   :  { %v4273_v34 = vpop.permute.xlu0 %4272 }
 0x4f2   :  { %v4275_v29 = vunpack.i.h.bf16 %v4273_v34  ;;  %v4274_v41 = vunpack.i.l.bf16 %v4273_v34 }
 0x4f4   :  { %v4278_v39 = vpop.permute.xlu1 %4277  ;;  %v2364_v31 = vsel %vm98_vm0, %v5374_v30, %v4275_v29  ;;  %v2394_v36 = vsel %vm98_vm0, %v2231_v40, %v4274_v41  ;;  %3061 = vmatpush.bf16.msra.mxu0 %v4018_v15  ;;  %v4009_v40 = vld [vmem:[%s5521_s2 + $0x288] sm:$0xff]  ;;  %s4299_s2 = smov 127  }
 0x4f5   :  { %v4280_v1 = vunpack.i.h.bf16 %v4278_v39  ;;  %v4279_v43 = vunpack.i.l.bf16 %v4278_v39  ;;  %3049 = vmatpush.bf16.msra.mxu1 %v4009_v40 }
 0x4f7   :  { %v2365_v48 = vsel %vm1365_vm4, %v2364_v31, %v4280_v1  ;;  %v2395_v7 = vsel %vm1365_vm4, %v2394_v36, %v4279_v43  ;;  %v3091_v43 = vld [vmem:[%s5526_s1] sm:$0x3] }
 0x4f8   :  { %v2366_v49 = vsel %vm1375_vm6, %v2365_v48, %v4285_v44  ;;  %v2396_v50 = vsel %vm1375_vm6, %v2395_v7, %v4284_v42  ;;  %3062 = vmatpush.bf16.msra.mxu0 %v4017_v8  ;;  %v3092_v44 = vperm.slane %v5112_v5, 6  ;;  %v3081_v42 = vperm.slane %v5112_v5, 5 }
 0x4f9   :  { %v2400_v53 = vpack.c.bf16 %v2366_v49, %v2366_v49  ;;  %v2402_v57 = vpack.c.bf16 %v2396_v50, %v2396_v50  ;;  %3050 = vmatpush.bf16.msra.mxu1 %v4008_v19  ;;  %v2949_v48 = vperm.slane %v5112_v5, 3 }
 0x4fa   :  { %v3093_v31 = vmul.f32 %v3092_v44, %v3091_v43  ;;  %3087 = vrot.lane.b32.xlu2 %v3081_v42, %s4299_s2 }
 0x4fb   :  { %2855 = vmatmul.bf16.vlgmr.msrb.gmra.mxu1 %v2400_v53  ;;  %2881 = vmatmul.bf16.vlgmr.msrb.gmra.mxu3 %v2402_v57  ;;  %v3075_v53 = vperm.slane %v5112_v5, 4 }
 0x4fc   :  { %3805 = vmatmul.msk.bf16.vlgmr.msrb.gmra.mxu0 %vm98_vm0, %v2403_v51  ;;  %v3095_v36 = vsel %vm3094_vm12, %v3093_v31, 0.0 }
 0x4fd   :  { %3063 = vmatpush.bf16.msra.mxu0 %v4016_v59  ;;  %3051 = vmatpush.bf16.msra.mxu1 %v4007_v17 }
 0x501   :  { %3064 = vmatpush.bf16.msra.mxu0 %v4015_v47  ;;  %3052 = vmatpush.bf16.msra.mxu1 %v4006_v0 }
 0x502   :  { %3099 = vrot.lane.b32.xlu2 %v3081_v42, %s4300_s17 }
 0x505   :  { %3065 = vmatpush.bf16.msra.mxu0 %v4014_v61  ;;  %3053 = vmatpush.bf16.msra.mxu1 %v4005_v13 }
 0x509   :  { %3066 = vmatpush.bf16.msra.mxu0 %v4013_v58 }
 0x53e   :  { %v2817_v27 = vpop.f32.mrf.mxu2  ;;  %v2830_v4 = vpop.f32.mrf.mxu3 }
 0x53f   :  { %v2818_v20 = vadd.f32 %v2817_v27, %v2504_v14 }
 0x541   :  { %v2831_v16 = vadd.f32 %v2830_v4, %v2818_v20 }
 0x546   :  { %v2819_v30 = vpop.f32.mrf.mxu2  ;;  %v2832_v62 = vpop.f32.mrf.mxu3 }
 0x554   :  { %v3088_v35 = vpop.permute.xlu2 %3087 }
 0x55c   :  { %v3100_v60 = vpop.permute.xlu2 %3099 }
 0x568   :  { %v2843_v6 = vpop.f32.mrf.mxu0 }
 0x569   :  { %v2844_v2 = vadd.f32 %v2843_v6, %v2831_v16 }
 0x56e   :  { %v2869_v52 = vpop.f32.mrf.mxu2 }
 0x570   :  { %v2845_v25 = vpop.f32.mrf.mxu0 }
 0x576   :  { %v2871_v38 = vpop.f32.mrf.mxu2 }
 0x578   :  { %v2856_v11 = vpop.f32.mrf.mxu1 }
 0x579   :  { %v2857_v18 = vadd.f32 %v2856_v11, %v2844_v2  ;;  %v2895_v32 = vpop.f32.mrf.mxu0 }
 0x57b   :  { %v2870_v54 = vadd.f32 %v2869_v52, %v2857_v18 }
 0x57e   :  { %v2882_v56 = vpop.f32.mrf.mxu3 }
 0x57f   :  { %v2883_v37 = vadd.f32 %v2882_v56, %v2870_v54 }
 0x580   :  { %v2858_v21 = vpop.f32.mrf.mxu1 }
 0x581   :  { %v2896_v22 = vadd.f32 %v2895_v32, %v2883_v37  ;;  %v2897_v63 = vpop.f32.mrf.mxu0 }
 0x583   :  { %vm2899_vm0 = vcmp.ge.f32.partialorder %v2896_v22, 0.0  ;;  %v2900_v3 = vmul.f32 0.01, %v2896_v22 }
 0x585   :  { %v2901_v23 = vsel %vm2899_vm0, %v2896_v22, %v2900_v3 }
 0x586   :  { %v2884_v24 = vpop.f32.mrf.mxu3  ;;  %v2903_v26 = vrot.slane %v2901_v23, 2  ;;  %v2909_v28 = vrot.slane %v2901_v23, 6  ;;  %v2907_v10 = vrot.slane %v2901_v23, 4 }
 0x588   :  { %v4286_v55 = vpack.i.bf16 %v2909_v28, %v2903_v26 }
 0x58a   :  { %4287 = vrot.lane.b32.xlu0 %v4286_v55, %s4295_s30 }
 0x5b4   :  { %3096 = vadd.xlane.f32.xlu0 %v3095_v36 }
 0x5fc   :  { %v4288_v46 = vpop.permute.xlu0 %4287 }
 0x5fd   :  { %v4290_v33 = vunpack.i.h.bf16 %v4288_v46  ;;  %v4289_v34 = vunpack.i.l.bf16 %v4288_v46 }
 0x5ff   :  { %v2914_v39 = vsel %vm1365_vm4, %v2907_v10, %v4290_v33  ;;  %v2913_v29 = vsel %vm1365_vm4, %v2901_v23, %v4289_v34 }
 0x600   :  { %v2916_v41 = vpack.c.bf16 %v2914_v39, %v2914_v39  ;;  %v2915_v1 = vpack.c.bf16 %v2913_v29, %v2913_v29 }
 0x602   :  { %3054 = vmatmul.bf16.vlgmr.msra.gmra.mxu1 %v2915_v1  ;;  %3067 = vmatmul.bf16.vlgmr.msra.gmra.mxu0 %v2916_v41 }
 0x627   :  { %v3097_v52 = vpop.xlane.xlu0 %3096 }
 0x67f   :  { %v3055_v7 = vpop.f32.mrf.mxu1  ;;  %v3068_v49 = vpop.f32.mrf.mxu0 }
 0x680   :  { %v3056_v50 = vadd.f32 %v3055_v7, %v2949_v48 }
 0x682   :  { %v3069_v51 = vadd.f32 %v3068_v49, %v3056_v50 }
 0x684   :  { %vm3072_vm13 = vcmp.ge.f32.partialorder %v3069_v51, 0.0  ;;  %v3073_v57 = vmul.f32 0.01, %v3069_v51 }
 0x686   :  { %v3074_v27 = vsel %vm3072_vm13, %v3069_v51, %v3073_v57 }
 0x687   :  { %v3057_v4 = vpop.f32.mrf.mxu1  ;;  %v3070_v30 = vpop.f32.mrf.mxu0  ;;  %v3076_v62 = vmul.f32 %v3075_v53, %v3074_v27 }
 0x689   :  { %v3078_v6 = vsel %vm3077_vm14, %v3076_v62, 0.0 }
 0x68a   :  { %3079 = vadd.xlane.f32.xlu1 %v3078_v6 }
 0x6fd   :  { %v3080_v45 = vpop.xlane.xlu1 %3079 }
 0x6fe   :  { %v3082_v9 = vadd.f32 %v3081_v42, %v3080_v45 }
 0x700   :  { %v3084_v12 = vmul.f32 0.01, %v3082_v9  ;;  %vm3083_vm15 = vcmp.ge.f32.partialorder %v3082_v9, 0.0 }
 0x702   :  { %v3085_v14 = vsel %vm3083_vm15, %v3082_v9, %v3084_v12 }
 0x703   :  { %v3090_v25 = vmul.f32 %v3088_v35, %v3085_v14 }
 0x705   :  { %v3098_v15 = vadd.f32 %v3097_v52, %v3090_v25 }
 0x707   :  { %v3102_v5 = vadd.f32 %v3100_v60, %v3098_v15 }
 0x709   :  { %v3103_v20 = vmin.f32 %v3102_v5, 5.0 }
 0x70b   :  { %3105 = vst.msk [vmem:[%s5527_s6] sm:$0x3] %vm3104_vm1, %v3103_v20 }

</bundles_post_ra>
